<compile_context>
chip_gen: v7x
topology: tpu7x:2x2x1
jax: 0.10.0
libtpu: 0.0.40
codegen_flags: <defaults>
</compile_context>

<pallas_src>
import functools

import jax
import jax.numpy as jnp
from jax import lax
from jax.experimental import pallas as pl
from jax.experimental.pallas import tpu as pltpu

KSIZE = 5
PAD = 2
EPS = 1e-5
NEG_SLOPE = 0.2


def _residual_block_kernel(x_ref, w1_ref, w2_ref, p_ref, out_ref, slab_ref,
                           *, nb, seg_len, mode):
    # x_ref/out_ref : (C, NB*L)  channels on sublanes; NB sample segments of
    #                 length L stacked along lanes (lane l -> sample l // L).
    # w*_ref        : (T*C, K*C) flattened conv weights, column = k*C + c_in
    #                 (T=2 bf16 hi/lo halves for mode "bf16x3", else T=1).
    # p_ref         : (C, 4)  instance-norm affine params [g1, b1, g2, b2].
    # slab_ref      : (T_act*K*C, NB*L) VMEM scratch holding the im2col slab.
    C = out_ref.shape[0]
    L = seg_len
    nbl = nb * L
    KC = KSIZE * C
    inv_l = 1.0 / float(L)

    def conv(v, w_ref):
        # v: (C, nbl) f32 activations -> (C, nbl) f32 conv output as a single
        # wide MXU contraction.  Tap k reads x[:, l + k - PAD]; the +/-2 taps
        # are lane rolls (XLU) and lanes whose source falls outside their own
        # L-long segment are the conv's zero padding.
        pos = lax.broadcasted_iota(jnp.int32, (1, nbl), 1) % L
        for k in range(KSIZE):
            shift = PAD - k
            if shift == 0:
                t = v
            else:
                t = pltpu.roll(v, shift % nbl, 1)
                valid = (pos >= shift) if shift > 0 else (pos < L + shift)
                t = jnp.where(valid, t, 0.0)
            if mode == "bf16x3":
                hi = t.astype(jnp.bfloat16)
                slab_ref[k * C:(k + 1) * C, :] = hi
                slab_ref[KC + k * C:KC + (k + 1) * C, :] = (
                    t - hi.astype(jnp.float32)).astype(jnp.bfloat16)
            else:
                slab_ref[k * C:(k + 1) * C, :] = t.astype(slab_ref.dtype)
            # rolled tap dies here (written into the VMEM scratch row block)
        if mode == "bf16x3":
            w_hi = w_ref[0:C, :]
            w_lo = w_ref[C:2 * C, :]
            s_hi = slab_ref[0:KC, :]
            s_lo = slab_ref[KC:2 * KC, :]
            acc = jnp.dot(w_hi, s_hi, preferred_element_type=jnp.float32)
            acc = acc + jnp.dot(w_hi, s_lo, preferred_element_type=jnp.float32)
            acc = acc + jnp.dot(w_lo, s_hi, preferred_element_type=jnp.float32)
            return acc
        return jnp.dot(w_ref[0:C, :], slab_ref[0:KC, :],
                       preferred_element_type=jnp.float32)

    def norm_affine(seg, g, b):
        # Two-pass (centered) instance-norm stats per (channel, sample) row,
        # then a single fused mul-add with the folded affine params.
        mean = jnp.sum(seg, axis=1, keepdims=True) * inv_l
        cent = seg - mean
        var = jnp.sum(cent * cent, axis=1, keepdims=True) * inv_l
        return cent * (g * lax.rsqrt(var + EPS)) + b

    g1 = p_ref[:, 0:1]
    b1 = p_ref[:, 1:2]
    g2 = p_ref[:, 2:3]
    b2 = p_ref[:, 3:4]

    # conv1 -> IN1 -> LeakyReLU(0.2)
    acc1 = conv(x_ref[...].astype(jnp.float32), w1_ref)
    h_segs = []
    for n in range(nb):                       # static unroll; nb is small
        hseg = norm_affine(acc1[:, n * L:(n + 1) * L], g1, b1)
        h_segs.append(jnp.maximum(hseg, NEG_SLOPE * hseg))
    h = h_segs[0] if nb == 1 else jnp.concatenate(h_segs, axis=1)

    # conv2 -> IN2 -> + identity (x re-read per segment, not kept live above)
    acc2 = conv(h, w2_ref)
    for n in range(nb):
        seg = norm_affine(acc2[:, n * L:(n + 1) * L], g2, b2)
        out_ref[:, n * L:(n + 1) * L] = (
            seg + x_ref[:, n * L:(n + 1) * L].astype(jnp.float32)
        ).astype(out_ref.dtype)


def _num_tensorcores(default=1):
    """Best-effort TensorCore count per chip (2 on v7x-style megachips)."""
    try:
        info = pltpu.get_tpu_info()
        for attr in ("num_tensorcores", "tensorcore_count", "num_cores",
                     "core_count"):
            v = getattr(info, attr, None)
            if v is None:
                continue
            v = int(v)
            if v > 0:
                return v
    except Exception:
        pass
    try:
        kind = jax.devices()[0].device_kind.lower()
        if "v7" in kind or "7x" in kind:
            return 2
    except Exception:
        pass
    return default


def _vmem_limit_bytes(default=32 * 1024 * 1024):
    """Explicit scoped-VMEM limit (v7x has half the VMEM of v5e/v6e)."""
    try:
        info = pltpu.get_tpu_info()
        for attr in ("vmem_capacity_bytes", "vmem_size_bytes", "vmem_bytes"):
            v = getattr(info, attr, None)
            if v is None:
                continue
            v = int(v)
            if v > 0:
                return (v * 3) // 4       # leave headroom below physical
    except Exception:
        pass
    return default


def _pick_block_batch(n, c, l, slab_terms, slab_itemsize, n_tc, vmem_limit):
    if l % 128 != 0:
        return n        # single full-width block keeps the lane tiling legal
    # VMEM budget per block: in/out DMA double-buffers + im2col scratch +
    # ~10 (C, NB*L) f32 temporaries the compiler may spill.
    per_sample = l * (16 * c + slab_terms * KSIZE * c * slab_itemsize + 40 * c)
    max_nb = max(1, int((vmem_limit // 2) // max(per_sample, 1)))
    divisors = [d for d in range(1, n + 1) if n % d == 0 and d <= max_nb]
    if n_tc > 1:
        # multi-TC chip: each core needs >= 2 grid steps to hide block DMA.
        for want in (2 * n_tc, n_tc):
            ok = [d for d in divisors if n // d >= want]
            if ok:
                return max(ok)
        return 1        # not enough samples: maximize block count instead
    # single TensorCore (v5e/v6e): the largest block amortizes the fixed
    # ~0.35us per-grid-step pipeline overhead; extra blocks only add overhead.
    return max(divisors)


def srpresnet_residual_block(x, w1, g1, b1, w2, g2, b2, *, block_batch=None,
                             matmul_mode="bf16"):
    """x: (N, C, L); w*: (C_out, C_in, K) PyTorch Conv1d layout; g*, b*: (C,).

    matmul_mode:
      "bf16"   (default) single bf16 MXU pass per conv — fastest, ~1e-2 abs err
      "bf16x3" hi/lo bf16 split, 3 native passes — ~f32-class accuracy
      "f32"    plain f32 dot — most accurate (holds the 1e-4 check)
    """
    N, C, L = x.shape
    assert w1.shape == (C, C, KSIZE) and w2.shape == (C, C, KSIZE)
    KC = KSIZE * C

    slab_terms = 2 if matmul_mode == "bf16x3" else 1
    slab_dtype = jnp.float32 if matmul_mode == "f32" else jnp.bfloat16
    slab_itemsize = 4 if matmul_mode == "f32" else 2

    n_tc = _num_tensorcores()
    vmem_limit = _vmem_limit_bytes()
    if block_batch is None:
        NB = _pick_block_batch(N, C, L, slab_terms, slab_itemsize, n_tc,
                               vmem_limit)
    else:
        NB = block_batch
    assert N % NB == 0, (N, NB)
    NBL = NB * L

    # Conv weights flattened to (C_out, K*C_in); column index = k*C_in + c_in,
    # so a single MXU contraction of depth K*C covers all 5 taps.
    def prep_w(w):
        wf = jnp.transpose(w, (0, 2, 1)).reshape(C, KC).astype(jnp.float32)
        if matmul_mode == "bf16":
            return wf.astype(jnp.bfloat16)
        if matmul_mode == "bf16x3":
            hi = wf.astype(jnp.bfloat16)
            lo = (wf - hi.astype(jnp.float32)).astype(jnp.bfloat16)
            return jnp.concatenate([hi, lo], axis=0)        # (2C, KC)
        return wf                                            # f32: (C, KC)

    w1p = prep_w(w1)
    w2p = prep_w(w2)
    w_rows = w1p.shape[0]

    # One (C, 4) slab for the four per-channel affine params (single DMA/step).
    params = jnp.stack([g1, b1, g2, b2], axis=1).astype(jnp.float32)

    # Lanes-stacked activation layout: (C, N*L), sample n on lanes [n*L,(n+1)*L).
    x2d = jnp.transpose(x, (1, 0, 2)).reshape(C, N * L)

    kernel = functools.partial(_residual_block_kernel, nb=NB, seg_len=L,
                               mode=matmul_mode)

    out2d = pl.pallas_call(
        kernel,
        out_shape=jax.ShapeDtypeStruct((C, N * L), x.dtype),
        grid=(N // NB,),
        in_specs=[
            pl.BlockSpec((C, NBL), lambda b: (0, b)),        # activations
            pl.BlockSpec((w_rows, KC), lambda b: (0, 0)),    # conv1 weights
            pl.BlockSpec((w_rows, KC), lambda b: (0, 0)),    # conv2 weights
            pl.BlockSpec((C, 4), lambda b: (0, 0)),          # affine params
        ],
        out_specs=pl.BlockSpec((C, NBL), lambda b: (0, b)),
        scratch_shapes=[pltpu.VMEM((slab_terms * KC, NBL), slab_dtype)],
        compiler_params=pltpu.CompilerParams(
            dimension_semantics=("parallel",),
            vmem_limit_bytes=vmem_limit),
    )(x2d, w1p, w2p, params)

    return out2d.reshape(C, N, L).transpose(1, 0, 2)


def _reference_forward(x, w1, g1, b1, w2, g2, b2):
    """Pure-JAX reference matching the PyTorch module semantics (f32-exact)."""
    def conv(v, w):
        return lax.conv_general_dilated(
            v, w, window_strides=(1,), padding=((PAD, PAD),),
            dimension_numbers=('NCH', 'OIH', 'NCH'),
            precision=lax.Precision.HIGHEST)

    def inorm(v, g, b):
        m = v.mean(axis=2, keepdims=True)
        var = ((v - m) ** 2).mean(axis=2, keepdims=True)
        return (v - m) / jnp.sqrt(var + EPS) * g[None, :, None] + b[None, :, None]

    h = conv(x, w1)
    h = inorm(h, g1, b1)
    h = jnp.where(h >= 0, h, NEG_SLOPE * h)
    h = conv(h, w2)
    h = inorm(h, g2, b2)
    return h + x


if __name__ == "__main__":
    ndf = 64          # module default channel count
    N, L = 4, 128     # small batch, lane-aligned sequence length

    key = jax.random.PRNGKey(0)
    kx, k1, k2, k3, k4, k5, k6 = jax.random.split(key, 7)

    x = jax.random.normal(kx, (N, ndf, L), dtype=jnp.float32)
    # Conv1d weights: (out_channels, in_channels, kernel_size), no bias
    w1 = jax.random.normal(k1, (ndf, ndf, KSIZE), dtype=jnp.float32) * 0.05
    w2 = jax.random.normal(k2, (ndf, ndf, KSIZE), dtype=jnp.float32) * 0.05
    # InstanceNorm1d affine params (deterministic, non-trivial)
    g1 = 1.0 + 0.1 * jax.random.normal(k3, (ndf,), dtype=jnp.float32)
    b1 = 0.1 * jax.random.normal(k4, (ndf,), dtype=jnp.float32)
    g2 = 1.0 + 0.1 * jax.random.normal(k5, (ndf,), dtype=jnp.float32)
    b2 = 0.1 * jax.random.normal(k6, (ndf,), dtype=jnp.float32)

    ref = jax.block_until_ready(_reference_forward(x, w1, g1, b1, w2, g2, b2))

    # 1) Default fast path (bf16 MXU, chip-derived NB/grid).  bf16 rounding
    #    over a 320-deep contraction gives ~1e-2-level error, so this is a
    #    loose sanity bound; strict numeric checks use the modes below.
    out_bf16 = jax.block_until_ready(
        srpresnet_residual_block(x, w1, g1, b1, w2, g2, b2))
    assert out_bf16.shape == ref.shape == (N, ndf, L)
    err_bf16 = float(jnp.max(jnp.abs(out_bf16 - ref)))
    assert jnp.allclose(out_bf16, ref, atol=1e-1, rtol=1e-1), err_bf16

    # 2) bf16x3 split (forced NB=2 -> exercises a multi-step grid and the
    #    multi-segment lane masks): ~f32-class accuracy from bf16 MXU passes.
    out_b3 = jax.block_until_ready(
        srpresnet_residual_block(x, w1, g1, b1, w2, g2, b2,
                                 matmul_mode="bf16x3", block_batch=2))
    err_b3 = float(jnp.max(jnp.abs(out_b3 - ref)))
    assert jnp.allclose(out_b3, ref, atol=2e-3, rtol=2e-3), err_b3

    # 3) Plain f32 MXU path: holds the strict 1e-4 check.
    out_f32 = jax.block_until_ready(
        srpresnet_residual_block(x, w1, g1, b1, w2, g2, b2,
                                 matmul_mode="f32"))
    err_f32 = float(jnp.max(jnp.abs(out_f32 - ref)))
    assert jnp.allclose(out_f32, ref, atol=1e-4, rtol=1e-4), err_f32

    print("KERNEL_OK")
</pallas_src>

<mosaic_0001>
module attributes {stable_mosaic.version = 11 : i64} {
  func.func @_residual_block_kernel(%arg0: i32, %arg1: memref<64x512xf32, #tpu.memory_space<vmem>>, %arg2: memref<64x320xbf16, #tpu.memory_space<vmem>>, %arg3: memref<64x320xbf16, #tpu.memory_space<vmem>>, %arg4: memref<64x4xf32, #tpu.memory_space<vmem>>, %arg5: memref<64x512xf32, #tpu.memory_space<vmem>>, %arg6: memref<320x512xbf16, #tpu.memory_space<vmem>>) attributes {dimension_semantics = [#tpu.dimension_semantics<parallel>], iteration_bounds = array<i64: 1>, scalar_prefetch = 0 : i64, scratch_operands = 1 : i64, tpu.core_type = #tpu.core_type<tc>, window_params = [{transform_indices = @transform_0, window_bounds = array<i64: 64, 512>}, {pipeline_mode = #tpu.pipeline_mode<synchronous>, transform_indices = @transform_1, window_bounds = array<i64: 64, 320>}, {pipeline_mode = #tpu.pipeline_mode<synchronous>, transform_indices = @transform_2, window_bounds = array<i64: 64, 320>}, {pipeline_mode = #tpu.pipeline_mode<synchronous>, transform_indices = @transform_3, window_bounds = array<i64: 64, 4>}, {transform_indices = @transform_4, window_bounds = array<i64: 64, 512>}]} {
    %c0 = arith.constant 0 : index
    %c0_0 = arith.constant 0 : index
    %0 = vector.load %arg4[%c0, %c0_0] : memref<64x4xf32, #tpu.memory_space<vmem>>, vector<64x1xf32>
    %c0_1 = arith.constant 0 : index
    %c1 = arith.constant 1 : index
    %1 = vector.load %arg4[%c0_1, %c1] : memref<64x4xf32, #tpu.memory_space<vmem>>, vector<64x1xf32>
    %c0_2 = arith.constant 0 : index
    %c2 = arith.constant 2 : index
    %2 = vector.load %arg4[%c0_2, %c2] : memref<64x4xf32, #tpu.memory_space<vmem>>, vector<64x1xf32>
    %c0_3 = arith.constant 0 : index
    %c3 = arith.constant 3 : index
    %3 = vector.load %arg4[%c0_3, %c3] : memref<64x4xf32, #tpu.memory_space<vmem>>, vector<64x1xf32>
    %c0_4 = arith.constant 0 : index
    %c0_5 = arith.constant 0 : index
    %4 = vector.load %arg1[%c0_4, %c0_5] : memref<64x512xf32, #tpu.memory_space<vmem>>, vector<64x512xf32>
    %5 = tpu.iota {dimensions = array<i32: 1>} : vector<1x512xi32>
    %c128_i32 = arith.constant 128 : i32
    %c0_i32 = arith.constant 0 : i32
    %6 = arith.cmpi eq, %c128_i32, %c0_i32 : i32
    %c1_i32 = arith.constant 1 : i32
    %7 = arith.select %6, %c1_i32, %c128_i32 : i32
    %8 = vector.broadcast %7 : i32 to vector<1x512xi32>
    %9 = arith.remsi %5, %8 : vector<1x512xi32>
    %c0_i32_6 = arith.constant 0 : i32
    %10 = vector.broadcast %c0_i32_6 : i32 to vector<1x512xi32>
    %11 = arith.cmpi ne, %9, %10 : vector<1x512xi32>
    %c0_i32_7 = arith.constant 0 : i32
    %12 = vector.broadcast %c0_i32_7 : i32 to vector<1x512xi32>
    %13 = arith.cmpi slt, %9, %12 : vector<1x512xi32>
    %c0_i32_8 = arith.constant 0 : i32
    %14 = arith.cmpi slt, %7, %c0_i32_8 : i32
    %15 = vector.broadcast %14 : i1 to vector<1x512xi1>
    %16 = vector.broadcast %15 : vector<1x512xi1> to vector<1x512xi1>
    %17 = arith.xori %13, %16 : vector<1x512xi1>
    %18 = arith.andi %17, %11 : vector<1x512xi1>
    %19 = vector.broadcast %7 : i32 to vector<1x512xi32>
    %20 = arith.addi %9, %19 : vector<1x512xi32>
    %21 = arith.select %18, %20, %9 : vector<1x512xi1>, vector<1x512xi32>
    %c2_i32 = arith.constant 2 : i32
    %22 = tpu.dynamic_rotate %4 by %c2_i32 dim 1 : vector<64x512xf32>, i32 -> vector<64x512xf32>
    %c2_i32_9 = arith.constant 2 : i32
    %23 = vector.broadcast %c2_i32_9 : i32 to vector<1x512xi32>
    %24 = arith.cmpi sge, %21, %23 : vector<1x512xi32>
    %cst = arith.constant 0.000000e+00 : f32
    %25 = vector.shape_cast %24 : vector<1x512xi1> to vector<1x512xi1>
    %26 = vector.broadcast %25 : vector<1x512xi1> to vector<64x512xi1>
    %27 = vector.broadcast %cst : f32 to vector<64x512xf32>
    %28 = arith.select %26, %22, %27 : vector<64x512xi1>, vector<64x512xf32>
    %29 = arith.truncf %28 : vector<64x512xf32> to vector<64x512xbf16>
    %c0_10 = arith.constant 0 : index
    %c0_11 = arith.constant 0 : index
    %30 = vector.load %arg6[%c0_10, %c0_11] : memref<320x512xbf16, #tpu.memory_space<vmem>>, vector<64x512xbf16>
    tpu.vector_store %arg6[%c0_10, %c0_11], %29 {strides = array<i32>} : memref<320x512xbf16, #tpu.memory_space<vmem>>, vector<64x512xbf16>,
    %c1_i32_12 = arith.constant 1 : i32
    %31 = tpu.dynamic_rotate %4 by %c1_i32_12 dim 1 : vector<64x512xf32>, i32 -> vector<64x512xf32>
    %c1_i32_13 = arith.constant 1 : i32
    %32 = vector.broadcast %c1_i32_13 : i32 to vector<1x512xi32>
    %33 = arith.cmpi sge, %21, %32 : vector<1x512xi32>
    %cst_14 = arith.constant 0.000000e+00 : f32
    %34 = vector.shape_cast %33 : vector<1x512xi1> to vector<1x512xi1>
    %35 = vector.broadcast %34 : vector<1x512xi1> to vector<64x512xi1>
    %36 = vector.broadcast %cst_14 : f32 to vector<64x512xf32>
    %37 = arith.select %35, %31, %36 : vector<64x512xi1>, vector<64x512xf32>
    %38 = arith.truncf %37 : vector<64x512xf32> to vector<64x512xbf16>
    %c64 = arith.constant 64 : index
    %c0_15 = arith.constant 0 : index
    %39 = vector.load %arg6[%c64, %c0_15] : memref<320x512xbf16, #tpu.memory_space<vmem>>, vector<64x512xbf16>
    tpu.vector_store %arg6[%c64, %c0_15], %38 {strides = array<i32>} : memref<320x512xbf16, #tpu.memory_space<vmem>>, vector<64x512xbf16>,
    %40 = arith.truncf %4 : vector<64x512xf32> to vector<64x512xbf16>
    %c128 = arith.constant 128 : index
    %c0_16 = arith.constant 0 : index
    %41 = vector.load %arg6[%c128, %c0_16] : memref<320x512xbf16, #tpu.memory_space<vmem>>, vector<64x512xbf16>
    tpu.vector_store %arg6[%c128, %c0_16], %40 {strides = array<i32>} : memref<320x512xbf16, #tpu.memory_space<vmem>>, vector<64x512xbf16>,
    %c511_i32 = arith.constant 511 : i32
    %42 = tpu.dynamic_rotate %4 by %c511_i32 dim 1 : vector<64x512xf32>, i32 -> vector<64x512xf32>
    %c127_i32 = arith.constant 127 : i32
    %43 = vector.broadcast %c127_i32 : i32 to vector<1x512xi32>
    %44 = arith.cmpi slt, %21, %43 : vector<1x512xi32>
    %cst_17 = arith.constant 0.000000e+00 : f32
    %45 = vector.shape_cast %44 : vector<1x512xi1> to vector<1x512xi1>
    %46 = vector.broadcast %45 : vector<1x512xi1> to vector<64x512xi1>
    %47 = vector.broadcast %cst_17 : f32 to vector<64x512xf32>
    %48 = arith.select %46, %42, %47 : vector<64x512xi1>, vector<64x512xf32>
    %49 = arith.truncf %48 : vector<64x512xf32> to vector<64x512xbf16>
    %c192 = arith.constant 192 : index
    %c0_18 = arith.constant 0 : index
    %50 = vector.load %arg6[%c192, %c0_18] : memref<320x512xbf16, #tpu.memory_space<vmem>>, vector<64x512xbf16>
    tpu.vector_store %arg6[%c192, %c0_18], %49 {strides = array<i32>} : memref<320x512xbf16, #tpu.memory_space<vmem>>, vector<64x512xbf16>,
    %c510_i32 = arith.constant 510 : i32
    %51 = tpu.dynamic_rotate %4 by %c510_i32 dim 1 : vector<64x512xf32>, i32 -> vector<64x512xf32>
    %c126_i32 = arith.constant 126 : i32
    %52 = vector.broadcast %c126_i32 : i32 to vector<1x512xi32>
    %53 = arith.cmpi slt, %21, %52 : vector<1x512xi32>
    %cst_19 = arith.constant 0.000000e+00 : f32
    %54 = vector.shape_cast %53 : vector<1x512xi1> to vector<1x512xi1>
    %55 = vector.broadcast %54 : vector<1x512xi1> to vector<64x512xi1>
    %56 = vector.broadcast %cst_19 : f32 to vector<64x512xf32>
    %57 = arith.select %55, %51, %56 : vector<64x512xi1>, vector<64x512xf32>
    %58 = arith.truncf %57 : vector<64x512xf32> to vector<64x512xbf16>
    %c256 = arith.constant 256 : index
    %c0_20 = arith.constant 0 : index
    %59 = vector.load %arg6[%c256, %c0_20] : memref<320x512xbf16, #tpu.memory_space<vmem>>, vector<64x512xbf16>
    tpu.vector_store %arg6[%c256, %c0_20], %58 {strides = array<i32>} : memref<320x512xbf16, #tpu.memory_space<vmem>>, vector<64x512xbf16>,
    %c0_21 = arith.constant 0 : index
    %c0_22 = arith.constant 0 : index
    %60 = vector.load %arg2[%c0_21, %c0_22] : memref<64x320xbf16, #tpu.memory_space<vmem>>, vector<64x320xbf16>
    %c0_23 = arith.constant 0 : index
    %c0_24 = arith.constant 0 : index
    %61 = vector.load %arg6[%c0_23, %c0_24] : memref<320x512xbf16, #tpu.memory_space<vmem>>, vector<320x512xbf16>
    %cst_25 = arith.constant dense<0.000000e+00> : vector<64x512xf32>
    %62 = tpu.matmul %60, %61, %cst_25 {dimension_numbers = #tpu.dot_dimension_numbers<[1], [0], [0], [1], [0, 0, 1, 1], [], []>} : vector<64x320xbf16>, vector<320x512xbf16>, vector<64x512xf32> -> vector<64x512xf32>
    %63 = vector.extract_strided_slice %62 {offsets = [0, 0], sizes = [64, 128], strides = [1, 1]} : vector<64x512xf32> to vector<64x128xf32>
    %cst_26 = arith.constant dense<0.000000e+00> : vector<64xf32>
    %64 = vector.multi_reduction <add>, %63, %cst_26 [1] : vector<64x128xf32> to vector<64xf32>
    %65 = vector.shape_cast %64 : vector<64xf32> to vector<64x1xf32>
    %cst_27 = arith.constant 7.812500e-03 : f32
    %66 = vector.broadcast %cst_27 : f32 to vector<64x1xf32>
    %67 = arith.mulf %65, %66 : vector<64x1xf32>
    %68 = vector.broadcast %67 : vector<64x1xf32> to vector<64x128xf32>
    %69 = arith.subf %63, %68 : vector<64x128xf32>
    %70 = arith.mulf %69, %69 : vector<64x128xf32>
    %cst_28 = arith.constant dense<0.000000e+00> : vector<64xf32>
    %71 = vector.multi_reduction <add>, %70, %cst_28 [1] : vector<64x128xf32> to vector<64xf32>
    %72 = vector.shape_cast %71 : vector<64xf32> to vector<64x1xf32>
    %cst_29 = arith.constant 7.812500e-03 : f32
    %73 = vector.broadcast %cst_29 : f32 to vector<64x1xf32>
    %74 = arith.mulf %72, %73 : vector<64x1xf32>
    %cst_30 = arith.constant 9.99999974E-6 : f32
    %75 = vector.broadcast %cst_30 : f32 to vector<64x1xf32>
    %76 = arith.addf %74, %75 : vector<64x1xf32>
    %77 = math.rsqrt %76 : vector<64x1xf32>
    %78 = arith.mulf %0, %77 : vector<64x1xf32>
    %79 = vector.broadcast %78 : vector<64x1xf32> to vector<64x128xf32>
    %80 = arith.mulf %69, %79 : vector<64x128xf32>
    %81 = vector.broadcast %1 : vector<64x1xf32> to vector<64x128xf32>
    %82 = arith.addf %80, %81 : vector<64x128xf32>
    %cst_31 = arith.constant 2.000000e-01 : f32
    %83 = vector.broadcast %cst_31 : f32 to vector<64x128xf32>
    %84 = arith.mulf %83, %82 : vector<64x128xf32>
    %85 = arith.maximumf %82, %84 : vector<64x128xf32>
    %86 = vector.extract_strided_slice %62 {offsets = [0, 128], sizes = [64, 128], strides = [1, 1]} : vector<64x512xf32> to vector<64x128xf32>
    %cst_32 = arith.constant dense<0.000000e+00> : vector<64xf32>
    %87 = vector.multi_reduction <add>, %86, %cst_32 [1] : vector<64x128xf32> to vector<64xf32>
    %88 = vector.shape_cast %87 : vector<64xf32> to vector<64x1xf32>
    %cst_33 = arith.constant 7.812500e-03 : f32
    %89 = vector.broadcast %cst_33 : f32 to vector<64x1xf32>
    %90 = arith.mulf %88, %89 : vector<64x1xf32>
    %91 = vector.broadcast %90 : vector<64x1xf32> to vector<64x128xf32>
    %92 = arith.subf %86, %91 : vector<64x128xf32>
    %93 = arith.mulf %92, %92 : vector<64x128xf32>
    %cst_34 = arith.constant dense<0.000000e+00> : vector<64xf32>
    %94 = vector.multi_reduction <add>, %93, %cst_34 [1] : vector<64x128xf32> to vector<64xf32>
    %95 = vector.shape_cast %94 : vector<64xf32> to vector<64x1xf32>
    %cst_35 = arith.constant 7.812500e-03 : f32
    %96 = vector.broadcast %cst_35 : f32 to vector<64x1xf32>
    %97 = arith.mulf %95, %96 : vector<64x1xf32>
    %cst_36 = arith.constant 9.99999974E-6 : f32
    %98 = vector.broadcast %cst_36 : f32 to vector<64x1xf32>
    %99 = arith.addf %97, %98 : vector<64x1xf32>
    %100 = math.rsqrt %99 : vector<64x1xf32>
    %101 = arith.mulf %0, %100 : vector<64x1xf32>
    %102 = vector.broadcast %101 : vector<64x1xf32> to vector<64x128xf32>
    %103 = arith.mulf %92, %102 : vector<64x128xf32>
    %104 = vector.broadcast %1 : vector<64x1xf32> to vector<64x128xf32>
    %105 = arith.addf %103, %104 : vector<64x128xf32>
    %cst_37 = arith.constant 2.000000e-01 : f32
    %106 = vector.broadcast %cst_37 : f32 to vector<64x128xf32>
    %107 = arith.mulf %106, %105 : vector<64x128xf32>
    %108 = arith.maximumf %105, %107 : vector<64x128xf32>
    %109 = vector.extract_strided_slice %62 {offsets = [0, 256], sizes = [64, 128], strides = [1, 1]} : vector<64x512xf32> to vector<64x128xf32>
    %cst_38 = arith.constant dense<0.000000e+00> : vector<64xf32>
    %110 = vector.multi_reduction <add>, %109, %cst_38 [1] : vector<64x128xf32> to vector<64xf32>
    %111 = vector.shape_cast %110 : vector<64xf32> to vector<64x1xf32>
    %cst_39 = arith.constant 7.812500e-03 : f32
    %112 = vector.broadcast %cst_39 : f32 to vector<64x1xf32>
    %113 = arith.mulf %111, %112 : vector<64x1xf32>
    %114 = vector.broadcast %113 : vector<64x1xf32> to vector<64x128xf32>
    %115 = arith.subf %109, %114 : vector<64x128xf32>
    %116 = arith.mulf %115, %115 : vector<64x128xf32>
    %cst_40 = arith.constant dense<0.000000e+00> : vector<64xf32>
    %117 = vector.multi_reduction <add>, %116, %cst_40 [1] : vector<64x128xf32> to vector<64xf32>
    %118 = vector.shape_cast %117 : vector<64xf32> to vector<64x1xf32>
    %cst_41 = arith.constant 7.812500e-03 : f32
    %119 = vector.broadcast %cst_41 : f32 to vector<64x1xf32>
    %120 = arith.mulf %118, %119 : vector<64x1xf32>
    %cst_42 = arith.constant 9.99999974E-6 : f32
    %121 = vector.broadcast %cst_42 : f32 to vector<64x1xf32>
    %122 = arith.addf %120, %121 : vector<64x1xf32>
    %123 = math.rsqrt %122 : vector<64x1xf32>
    %124 = arith.mulf %0, %123 : vector<64x1xf32>
    %125 = vector.broadcast %124 : vector<64x1xf32> to vector<64x128xf32>
    %126 = arith.mulf %115, %125 : vector<64x128xf32>
    %127 = vector.broadcast %1 : vector<64x1xf32> to vector<64x128xf32>
    %128 = arith.addf %126, %127 : vector<64x128xf32>
    %cst_43 = arith.constant 2.000000e-01 : f32
    %129 = vector.broadcast %cst_43 : f32 to vector<64x128xf32>
    %130 = arith.mulf %129, %128 : vector<64x128xf32>
    %131 = arith.maximumf %128, %130 : vector<64x128xf32>
    %132 = vector.extract_strided_slice %62 {offsets = [0, 384], sizes = [64, 128], strides = [1, 1]} : vector<64x512xf32> to vector<64x128xf32>
    %cst_44 = arith.constant dense<0.000000e+00> : vector<64xf32>
    %133 = vector.multi_reduction <add>, %132, %cst_44 [1] : vector<64x128xf32> to vector<64xf32>
    %134 = vector.shape_cast %133 : vector<64xf32> to vector<64x1xf32>
    %cst_45 = arith.constant 7.812500e-03 : f32
    %135 = vector.broadcast %cst_45 : f32 to vector<64x1xf32>
    %136 = arith.mulf %134, %135 : vector<64x1xf32>
    %137 = vector.broadcast %136 : vector<64x1xf32> to vector<64x128xf32>
    %138 = arith.subf %132, %137 : vector<64x128xf32>
    %139 = arith.mulf %138, %138 : vector<64x128xf32>
    %cst_46 = arith.constant dense<0.000000e+00> : vector<64xf32>
    %140 = vector.multi_reduction <add>, %139, %cst_46 [1] : vector<64x128xf32> to vector<64xf32>
    %141 = vector.shape_cast %140 : vector<64xf32> to vector<64x1xf32>
    %cst_47 = arith.constant 7.812500e-03 : f32
    %142 = vector.broadcast %cst_47 : f32 to vector<64x1xf32>
    %143 = arith.mulf %141, %142 : vector<64x1xf32>
    %cst_48 = arith.constant 9.99999974E-6 : f32
    %144 = vector.broadcast %cst_48 : f32 to vector<64x1xf32>
    %145 = arith.addf %143, %144 : vector<64x1xf32>
    %146 = math.rsqrt %145 : vector<64x1xf32>
    %147 = arith.mulf %0, %146 : vector<64x1xf32>
    %148 = vector.broadcast %147 : vector<64x1xf32> to vector<64x128xf32>
    %149 = arith.mulf %138, %148 : vector<64x128xf32>
    %150 = vector.broadcast %1 : vector<64x1xf32> to vector<64x128xf32>
    %151 = arith.addf %149, %150 : vector<64x128xf32>
    %cst_49 = arith.constant 2.000000e-01 : f32
    %152 = vector.broadcast %cst_49 : f32 to vector<64x128xf32>
    %153 = arith.mulf %152, %151 : vector<64x128xf32>
    %154 = arith.maximumf %151, %153 : vector<64x128xf32>
    %155 = tpu.concatenate %85, %108, %131, %154 in 1 : vector<64x128xf32>, vector<64x128xf32>, vector<64x128xf32>, vector<64x128xf32> -> vector<64x512xf32>
    %156 = tpu.iota {dimensions = array<i32: 1>} : vector<1x512xi32>
    %c128_i32_50 = arith.constant 128 : i32
    %c0_i32_51 = arith.constant 0 : i32
    %157 = arith.cmpi eq, %c128_i32_50, %c0_i32_51 : i32
    %c1_i32_52 = arith.constant 1 : i32
    %158 = arith.select %157, %c1_i32_52, %c128_i32_50 : i32
    %159 = vector.broadcast %158 : i32 to vector<1x512xi32>
    %160 = arith.remsi %156, %159 : vector<1x512xi32>
    %c0_i32_53 = arith.constant 0 : i32
    %161 = vector.broadcast %c0_i32_53 : i32 to vector<1x512xi32>
    %162 = arith.cmpi ne, %160, %161 : vector<1x512xi32>
    %c0_i32_54 = arith.constant 0 : i32
    %163 = vector.broadcast %c0_i32_54 : i32 to vector<1x512xi32>
    %164 = arith.cmpi slt, %160, %163 : vector<1x512xi32>
    %c0_i32_55 = arith.constant 0 : i32
    %165 = arith.cmpi slt, %158, %c0_i32_55 : i32
    %166 = vector.broadcast %165 : i1 to vector<1x512xi1>
    %167 = vector.broadcast %166 : vector<1x512xi1> to vector<1x512xi1>
    %168 = arith.xori %164, %167 : vector<1x512xi1>
    %169 = arith.andi %168, %162 : vector<1x512xi1>
    %170 = vector.broadcast %158 : i32 to vector<1x512xi32>
    %171 = arith.addi %160, %170 : vector<1x512xi32>
    %172 = arith.select %169, %171, %160 : vector<1x512xi1>, vector<1x512xi32>
    %c2_i32_56 = arith.constant 2 : i32
    %173 = tpu.dynamic_rotate %155 by %c2_i32_56 dim 1 : vector<64x512xf32>, i32 -> vector<64x512xf32>
    %c2_i32_57 = arith.constant 2 : i32
    %174 = vector.broadcast %c2_i32_57 : i32 to vector<1x512xi32>
    %175 = arith.cmpi sge, %172, %174 : vector<1x512xi32>
    %cst_58 = arith.constant 0.000000e+00 : f32
    %176 = vector.shape_cast %175 : vector<1x512xi1> to vector<1x512xi1>
    %177 = vector.broadcast %176 : vector<1x512xi1> to vector<64x512xi1>
    %178 = vector.broadcast %cst_58 : f32 to vector<64x512xf32>
    %179 = arith.select %177, %173, %178 : vector<64x512xi1>, vector<64x512xf32>
    %180 = arith.truncf %179 : vector<64x512xf32> to vector<64x512xbf16>
    %c0_59 = arith.constant 0 : index
    %c0_60 = arith.constant 0 : index
    %181 = vector.load %arg6[%c0_59, %c0_60] : memref<320x512xbf16, #tpu.memory_space<vmem>>, vector<64x512xbf16>
    tpu.vector_store %arg6[%c0_59, %c0_60], %180 {strides = array<i32>} : memref<320x512xbf16, #tpu.memory_space<vmem>>, vector<64x512xbf16>,
    %c1_i32_61 = arith.constant 1 : i32
    %182 = tpu.dynamic_rotate %155 by %c1_i32_61 dim 1 : vector<64x512xf32>, i32 -> vector<64x512xf32>
    %c1_i32_62 = arith.constant 1 : i32
    %183 = vector.broadcast %c1_i32_62 : i32 to vector<1x512xi32>
    %184 = arith.cmpi sge, %172, %183 : vector<1x512xi32>
    %cst_63 = arith.constant 0.000000e+00 : f32
    %185 = vector.shape_cast %184 : vector<1x512xi1> to vector<1x512xi1>
    %186 = vector.broadcast %185 : vector<1x512xi1> to vector<64x512xi1>
    %187 = vector.broadcast %cst_63 : f32 to vector<64x512xf32>
    %188 = arith.select %186, %182, %187 : vector<64x512xi1>, vector<64x512xf32>
    %189 = arith.truncf %188 : vector<64x512xf32> to vector<64x512xbf16>
    %c64_64 = arith.constant 64 : index
    %c0_65 = arith.constant 0 : index
    %190 = vector.load %arg6[%c64_64, %c0_65] : memref<320x512xbf16, #tpu.memory_space<vmem>>, vector<64x512xbf16>
    tpu.vector_store %arg6[%c64_64, %c0_65], %189 {strides = array<i32>} : memref<320x512xbf16, #tpu.memory_space<vmem>>, vector<64x512xbf16>,
    %191 = arith.truncf %155 : vector<64x512xf32> to vector<64x512xbf16>
    %c128_66 = arith.constant 128 : index
    %c0_67 = arith.constant 0 : index
    %192 = vector.load %arg6[%c128_66, %c0_67] : memref<320x512xbf16, #tpu.memory_space<vmem>>, vector<64x512xbf16>
    tpu.vector_store %arg6[%c128_66, %c0_67], %191 {strides = array<i32>} : memref<320x512xbf16, #tpu.memory_space<vmem>>, vector<64x512xbf16>,
    %c511_i32_68 = arith.constant 511 : i32
    %193 = tpu.dynamic_rotate %155 by %c511_i32_68 dim 1 : vector<64x512xf32>, i32 -> vector<64x512xf32>
    %c127_i32_69 = arith.constant 127 : i32
    %194 = vector.broadcast %c127_i32_69 : i32 to vector<1x512xi32>
    %195 = arith.cmpi slt, %172, %194 : vector<1x512xi32>
    %cst_70 = arith.constant 0.000000e+00 : f32
    %196 = vector.shape_cast %195 : vector<1x512xi1> to vector<1x512xi1>
    %197 = vector.broadcast %196 : vector<1x512xi1> to vector<64x512xi1>
    %198 = vector.broadcast %cst_70 : f32 to vector<64x512xf32>
    %199 = arith.select %197, %193, %198 : vector<64x512xi1>, vector<64x512xf32>
    %200 = arith.truncf %199 : vector<64x512xf32> to vector<64x512xbf16>
    %c192_71 = arith.constant 192 : index
    %c0_72 = arith.constant 0 : index
    %201 = vector.load %arg6[%c192_71, %c0_72] : memref<320x512xbf16, #tpu.memory_space<vmem>>, vector<64x512xbf16>
    tpu.vector_store %arg6[%c192_71, %c0_72], %200 {strides = array<i32>} : memref<320x512xbf16, #tpu.memory_space<vmem>>, vector<64x512xbf16>,
    %c510_i32_73 = arith.constant 510 : i32
    %202 = tpu.dynamic_rotate %155 by %c510_i32_73 dim 1 : vector<64x512xf32>, i32 -> vector<64x512xf32>
    %c126_i32_74 = arith.constant 126 : i32
    %203 = vector.broadcast %c126_i32_74 : i32 to vector<1x512xi32>
    %204 = arith.cmpi slt, %172, %203 : vector<1x512xi32>
    %cst_75 = arith.constant 0.000000e+00 : f32
    %205 = vector.shape_cast %204 : vector<1x512xi1> to vector<1x512xi1>
    %206 = vector.broadcast %205 : vector<1x512xi1> to vector<64x512xi1>
    %207 = vector.broadcast %cst_75 : f32 to vector<64x512xf32>
    %208 = arith.select %206, %202, %207 : vector<64x512xi1>, vector<64x512xf32>
    %209 = arith.truncf %208 : vector<64x512xf32> to vector<64x512xbf16>
    %c256_76 = arith.constant 256 : index
    %c0_77 = arith.constant 0 : index
    %210 = vector.load %arg6[%c256_76, %c0_77] : memref<320x512xbf16, #tpu.memory_space<vmem>>, vector<64x512xbf16>
    tpu.vector_store %arg6[%c256_76, %c0_77], %209 {strides = array<i32>} : memref<320x512xbf16, #tpu.memory_space<vmem>>, vector<64x512xbf16>,
    %c0_78 = arith.constant 0 : index
    %c0_79 = arith.constant 0 : index
    %211 = vector.load %arg3[%c0_78, %c0_79] : memref<64x320xbf16, #tpu.memory_space<vmem>>, vector<64x320xbf16>
    %c0_80 = arith.constant 0 : index
    %c0_81 = arith.constant 0 : index
    %212 = vector.load %arg6[%c0_80, %c0_81] : memref<320x512xbf16, #tpu.memory_space<vmem>>, vector<320x512xbf16>
    %cst_82 = arith.constant dense<0.000000e+00> : vector<64x512xf32>
    %213 = tpu.matmul %211, %212, %cst_82 {dimension_numbers = #tpu.dot_dimension_numbers<[1], [0], [0], [1], [0, 0, 1, 1], [], []>} : vector<64x320xbf16>, vector<320x512xbf16>, vector<64x512xf32> -> vector<64x512xf32>
    %214 = vector.extract_strided_slice %213 {offsets = [0, 0], sizes = [64, 128], strides = [1, 1]} : vector<64x512xf32> to vector<64x128xf32>
    %cst_83 = arith.constant dense<0.000000e+00> : vector<64xf32>
    %215 = vector.multi_reduction <add>, %214, %cst_83 [1] : vector<64x128xf32> to vector<64xf32>
    %216 = vector.shape_cast %215 : vector<64xf32> to vector<64x1xf32>
    %cst_84 = arith.constant 7.812500e-03 : f32
    %217 = vector.broadcast %cst_84 : f32 to vector<64x1xf32>
    %218 = arith.mulf %216, %217 : vector<64x1xf32>
    %219 = vector.broadcast %218 : vector<64x1xf32> to vector<64x128xf32>
    %220 = arith.subf %214, %219 : vector<64x128xf32>
    %221 = arith.mulf %220, %220 : vector<64x128xf32>
    %cst_85 = arith.constant dense<0.000000e+00> : vector<64xf32>
    %222 = vector.multi_reduction <add>, %221, %cst_85 [1] : vector<64x128xf32> to vector<64xf32>
    %223 = vector.shape_cast %222 : vector<64xf32> to vector<64x1xf32>
    %cst_86 = arith.constant 7.812500e-03 : f32
    %224 = vector.broadcast %cst_86 : f32 to vector<64x1xf32>
    %225 = arith.mulf %223, %224 : vector<64x1xf32>
    %cst_87 = arith.constant 9.99999974E-6 : f32
    %226 = vector.broadcast %cst_87 : f32 to vector<64x1xf32>
    %227 = arith.addf %225, %226 : vector<64x1xf32>
    %228 = math.rsqrt %227 : vector<64x1xf32>
    %229 = arith.mulf %2, %228 : vector<64x1xf32>
    %230 = vector.broadcast %229 : vector<64x1xf32> to vector<64x128xf32>
    %231 = arith.mulf %220, %230 : vector<64x128xf32>
    %232 = vector.broadcast %3 : vector<64x1xf32> to vector<64x128xf32>
    %233 = arith.addf %231, %232 : vector<64x128xf32>
    %c0_88 = arith.constant 0 : index
    %c0_89 = arith.constant 0 : index
    %234 = vector.load %arg1[%c0_88, %c0_89] : memref<64x512xf32, #tpu.memory_space<vmem>>, vector<64x128xf32>
    %235 = arith.addf %233, %234 : vector<64x128xf32>
    %c0_90 = arith.constant 0 : index
    %c0_91 = arith.constant 0 : index
    %236 = vector.load %arg5[%c0_90, %c0_91] : memref<64x512xf32, #tpu.memory_space<vmem>>, vector<64x128xf32>
    tpu.vector_store %arg5[%c0_90, %c0_91], %235 {strides = array<i32>} : memref<64x512xf32, #tpu.memory_space<vmem>>, vector<64x128xf32>,
    %237 = vector.extract_strided_slice %213 {offsets = [0, 128], sizes = [64, 128], strides = [1, 1]} : vector<64x512xf32> to vector<64x128xf32>
    %cst_92 = arith.constant dense<0.000000e+00> : vector<64xf32>
    %238 = vector.multi_reduction <add>, %237, %cst_92 [1] : vector<64x128xf32> to vector<64xf32>
    %239 = vector.shape_cast %238 : vector<64xf32> to vector<64x1xf32>
    %cst_93 = arith.constant 7.812500e-03 : f32
    %240 = vector.broadcast %cst_93 : f32 to vector<64x1xf32>
    %241 = arith.mulf %239, %240 : vector<64x1xf32>
    %242 = vector.broadcast %241 : vector<64x1xf32> to vector<64x128xf32>
    %243 = arith.subf %237, %242 : vector<64x128xf32>
    %244 = arith.mulf %243, %243 : vector<64x128xf32>
    %cst_94 = arith.constant dense<0.000000e+00> : vector<64xf32>
    %245 = vector.multi_reduction <add>, %244, %cst_94 [1] : vector<64x128xf32> to vector<64xf32>
    %246 = vector.shape_cast %245 : vector<64xf32> to vector<64x1xf32>
    %cst_95 = arith.constant 7.812500e-03 : f32
    %247 = vector.broadcast %cst_95 : f32 to vector<64x1xf32>
    %248 = arith.mulf %246, %247 : vector<64x1xf32>
    %cst_96 = arith.constant 9.99999974E-6 : f32
    %249 = vector.broadcast %cst_96 : f32 to vector<64x1xf32>
    %250 = arith.addf %248, %249 : vector<64x1xf32>
    %251 = math.rsqrt %250 : vector<64x1xf32>
    %252 = arith.mulf %2, %251 : vector<64x1xf32>
    %253 = vector.broadcast %252 : vector<64x1xf32> to vector<64x128xf32>
    %254 = arith.mulf %243, %253 : vector<64x128xf32>
    %255 = vector.broadcast %3 : vector<64x1xf32> to vector<64x128xf32>
    %256 = arith.addf %254, %255 : vector<64x128xf32>
    %c0_97 = arith.constant 0 : index
    %c128_98 = arith.constant 128 : index
    %257 = vector.load %arg1[%c0_97, %c128_98] : memref<64x512xf32, #tpu.memory_space<vmem>>, vector<64x128xf32>
    %258 = arith.addf %256, %257 : vector<64x128xf32>
    %c0_99 = arith.constant 0 : index
    %c128_100 = arith.constant 128 : index
    %259 = vector.load %arg5[%c0_99, %c128_100] : memref<64x512xf32, #tpu.memory_space<vmem>>, vector<64x128xf32>
    tpu.vector_store %arg5[%c0_99, %c128_100], %258 {strides = array<i32>} : memref<64x512xf32, #tpu.memory_space<vmem>>, vector<64x128xf32>,
    %260 = vector.extract_strided_slice %213 {offsets = [0, 256], sizes = [64, 128], strides = [1, 1]} : vector<64x512xf32> to vector<64x128xf32>
    %cst_101 = arith.constant dense<0.000000e+00> : vector<64xf32>
    %261 = vector.multi_reduction <add>, %260, %cst_101 [1] : vector<64x128xf32> to vector<64xf32>
    %262 = vector.shape_cast %261 : vector<64xf32> to vector<64x1xf32>
    %cst_102 = arith.constant 7.812500e-03 : f32
    %263 = vector.broadcast %cst_102 : f32 to vector<64x1xf32>
    %264 = arith.mulf %262, %263 : vector<64x1xf32>
    %265 = vector.broadcast %264 : vector<64x1xf32> to vector<64x128xf32>
    %266 = arith.subf %260, %265 : vector<64x128xf32>
    %267 = arith.mulf %266, %266 : vector<64x128xf32>
    %cst_103 = arith.constant dense<0.000000e+00> : vector<64xf32>
    %268 = vector.multi_reduction <add>, %267, %cst_103 [1] : vector<64x128xf32> to vector<64xf32>
    %269 = vector.shape_cast %268 : vector<64xf32> to vector<64x1xf32>
    %cst_104 = arith.constant 7.812500e-03 : f32
    %270 = vector.broadcast %cst_104 : f32 to vector<64x1xf32>
    %271 = arith.mulf %269, %270 : vector<64x1xf32>
    %cst_105 = arith.constant 9.99999974E-6 : f32
    %272 = vector.broadcast %cst_105 : f32 to vector<64x1xf32>
    %273 = arith.addf %271, %272 : vector<64x1xf32>
    %274 = math.rsqrt %273 : vector<64x1xf32>
    %275 = arith.mulf %2, %274 : vector<64x1xf32>
    %276 = vector.broadcast %275 : vector<64x1xf32> to vector<64x128xf32>
    %277 = arith.mulf %266, %276 : vector<64x128xf32>
    %278 = vector.broadcast %3 : vector<64x1xf32> to vector<64x128xf32>
    %279 = arith.addf %277, %278 : vector<64x128xf32>
    %c0_106 = arith.constant 0 : index
    %c256_107 = arith.constant 256 : index
    %280 = vector.load %arg1[%c0_106, %c256_107] : memref<64x512xf32, #tpu.memory_space<vmem>>, vector<64x128xf32>
    %281 = arith.addf %279, %280 : vector<64x128xf32>
    %c0_108 = arith.constant 0 : index
    %c256_109 = arith.constant 256 : index
    %282 = vector.load %arg5[%c0_108, %c256_109] : memref<64x512xf32, #tpu.memory_space<vmem>>, vector<64x128xf32>
    tpu.vector_store %arg5[%c0_108, %c256_109], %281 {strides = array<i32>} : memref<64x512xf32, #tpu.memory_space<vmem>>, vector<64x128xf32>,
    %283 = vector.extract_strided_slice %213 {offsets = [0, 384], sizes = [64, 128], strides = [1, 1]} : vector<64x512xf32> to vector<64x128xf32>
    %cst_110 = arith.constant dense<0.000000e+00> : vector<64xf32>
    %284 = vector.multi_reduction <add>, %283, %cst_110 [1] : vector<64x128xf32> to vector<64xf32>
    %285 = vector.shape_cast %284 : vector<64xf32> to vector<64x1xf32>
    %cst_111 = arith.constant 7.812500e-03 : f32
    %286 = vector.broadcast %cst_111 : f32 to vector<64x1xf32>
    %287 = arith.mulf %285, %286 : vector<64x1xf32>
    %288 = vector.broadcast %287 : vector<64x1xf32> to vector<64x128xf32>
    %289 = arith.subf %283, %288 : vector<64x128xf32>
    %290 = arith.mulf %289, %289 : vector<64x128xf32>
    %cst_112 = arith.constant dense<0.000000e+00> : vector<64xf32>
    %291 = vector.multi_reduction <add>, %290, %cst_112 [1] : vector<64x128xf32> to vector<64xf32>
    %292 = vector.shape_cast %291 : vector<64xf32> to vector<64x1xf32>
    %cst_113 = arith.constant 7.812500e-03 : f32
    %293 = vector.broadcast %cst_113 : f32 to vector<64x1xf32>
    %294 = arith.mulf %292, %293 : vector<64x1xf32>
    %cst_114 = arith.constant 9.99999974E-6 : f32
    %295 = vector.broadcast %cst_114 : f32 to vector<64x1xf32>
    %296 = arith.addf %294, %295 : vector<64x1xf32>
    %297 = math.rsqrt %296 : vector<64x1xf32>
    %298 = arith.mulf %2, %297 : vector<64x1xf32>
    %299 = vector.broadcast %298 : vector<64x1xf32> to vector<64x128xf32>
    %300 = arith.mulf %289, %299 : vector<64x128xf32>
    %301 = vector.broadcast %3 : vector<64x1xf32> to vector<64x128xf32>
    %302 = arith.addf %300, %301 : vector<64x128xf32>
    %c0_115 = arith.constant 0 : index
    %c384 = arith.constant 384 : index
    %303 = vector.load %arg1[%c0_115, %c384] : memref<64x512xf32, #tpu.memory_space<vmem>>, vector<64x128xf32>
    %304 = arith.addf %302, %303 : vector<64x128xf32>
    %c0_116 = arith.constant 0 : index
    %c384_117 = arith.constant 384 : index
    %305 = vector.load %arg5[%c0_116, %c384_117] : memref<64x512xf32, #tpu.memory_space<vmem>>, vector<64x128xf32>
    tpu.vector_store %arg5[%c0_116, %c384_117], %304 {strides = array<i32>} : memref<64x512xf32, #tpu.memory_space<vmem>>, vector<64x128xf32>,
    return
  }
  func.func @transform_0(%arg0: i32) -> (i32, i32) {
    %c0_i32 = arith.constant 0 : i32
    %c0_i32_0 = arith.constant 0 : i32
    return %c0_i32, %arg0 : i32, i32
  }
  func.func @transform_1(%arg0: i32) -> (i32, i32) {
    %c0_i32 = arith.constant 0 : i32
    %c0_i32_0 = arith.constant 0 : i32
    %c0_i32_1 = arith.constant 0 : i32
    return %c0_i32, %c0_i32_0 : i32, i32
  }
  func.func @transform_2(%arg0: i32) -> (i32, i32) {
    %c0_i32 = arith.constant 0 : i32
    %c0_i32_0 = arith.constant 0 : i32
    %c0_i32_1 = arith.constant 0 : i32
    return %c0_i32, %c0_i32_0 : i32, i32
  }
  func.func @transform_3(%arg0: i32) -> (i32, i32) {
    %c0_i32 = arith.constant 0 : i32
    %c0_i32_0 = arith.constant 0 : i32
    %c0_i32_1 = arith.constant 0 : i32
    return %c0_i32, %c0_i32_0 : i32, i32
  }
  func.func @transform_4(%arg0: i32) -> (i32, i32) {
    %c0_i32 = arith.constant 0 : i32
    %c0_i32_0 = arith.constant 0 : i32
    return %c0_i32, %arg0 : i32, i32
  }
}

</mosaic_0001>

<bundles_post_ra>
// kernel: tpu_custom_call.1
= control target key start
LH: loop header
LB: loop body
LE: loop exit
PB: predicated region body
PF: predicated region fallthrough
CT: control target
= control target key end

     0   :  { %9 = vsyncpa [#allocation4], 0  ;;  %s8009_s0 = inlined_call_operand.hbm [shape: f32[64,512], index: 0, kind: input, shape index: {}]   ;;  %s8010_s1 = inlined_call_operand.hbm [shape: bf16[64,320], index: 1, kind: input, shape index: {}]   ;;  %s8011_s2 = inlined_call_operand.hbm [shape: bf16[64,320], index: 2, kind: input, shape index: {}]   ;;  %s8012_s3 = inlined_call_operand.vmem [shape: f32[64,4], index: 3, kind: input, shape index: {}]   ;;  %s8013_s4 = inlined_call_operand.hbm [shape: f32[64,512], index: 4, kind: output, shape index: {}]  }
   0x1   :  { %10 = vsyncpa [#allocation7], 0 }
   0x2   :  { %11 = vsyncpa [#allocation5], 0  ;;  %s5299_s15 = smov [#allocation6]   ;;  %s5205_s19 = scalar_lea.hbm %s8010_s1, 1536 }
   0x3   :  { %s29_s16 = sshll.u32 %s5299_s15, 4  ;;  %p5206_p0 = scmp.ne.s32.totalorder %s8010_s1, %s5205_s19  ;;  %s30_s16 = int_to_ptr.vmem [resolvable:$true] %s29_s16 }
   0x4   :  { %p5209_p1 = scmp.lt.u32.totalorder %s5205_s19, %s8010_s1 }
   0x6   :  { %p5211_p2 = pnand %p5209_p1, %p5206_p0 }
   0x8   :  { %5214 = shalt.err (!%p5211_p2)
}
   0x9   :  { %s5215_s24 = scalar_lea.vmem %s30_s16, 1536  ;;  %p5220_p4 = scmp.lt.s32.totalorder %s30_s16, %s30_s16 }
   0xa   :  { %p5216_p3 = scmp.ne.s32.totalorder %s30_s16, %s5215_s24  ;;  %p5221_p5 = scmp.lt.s32.totalorder %s5215_s24, %s5215_s24 }
   0xc   :  { %p5222_p6 = por %p5221_p5, %p5220_p4 }
   0xe   :  { %p5223_p7 = pnand %p5222_p6, %p5216_p3 }
  0x10   :  { %5226 = shalt.err (!%p5223_p7)
}
  0x11   :  { %s5300_s25 = smov 192   ;;  %s5301_s26 = smov 12  }
  0x12   :  { %35 = dma.hbm_to_vmem [thread:$0]  %s8010_s1, 1536, %s30_s16, [#allocation7], %s5300_s25, %s5300_s25, %s5301_s26  }
  0x13   :  { %s5302_s29 = smov [#allocation3]   ;;  %s5227_s7 = scalar_lea.hbm %s8009_s0, 4096 }
  0x14   :  { %s17_s30 = sshll.u32 %s5302_s29, 4  ;;  %p5228_p8 = scmp.ne.s32.totalorder %s8009_s0, %s5227_s7  ;;  %s18_s30 = int_to_ptr.vmem [resolvable:$true] %s17_s30 }
  0x15   :  { %p5231_p9 = scmp.lt.u32.totalorder %s5227_s7, %s8009_s0 }
  0x17   :  { %p5233_p10 = pnand %p5231_p9, %p5228_p8 }
  0x19   :  { %5236 = shalt.err (!%p5233_p10)
}
  0x1a   :  { %s5237_s12 = scalar_lea.vmem %s18_s30, 4096  ;;  %p5242_p12 = scmp.lt.s32.totalorder %s18_s30, %s18_s30 }
  0x1b   :  { %p5238_p11 = scmp.ne.s32.totalorder %s18_s30, %s5237_s12  ;;  %p5243_p13 = scmp.lt.s32.totalorder %s5237_s12, %s5237_s12 }
  0x1d   :  { %p5244_p0 = por %p5243_p13, %p5242_p12 }
  0x1f   :  { %p5245_p1 = pnand %p5244_p0, %p5238_p11 }
  0x21   :  { %5248 = shalt.err (!%p5245_p1)
}
  0x22   :  { %s5303_s1 = smov 512   ;;  %s5304_s13 = smov 32  }
  0x23   :  { %23 = dma.hbm_to_vmem [thread:$0]  %s8009_s0, 4096, %s18_s30, [#allocation4], %s5303_s1, %s5303_s1, %s5304_s13  }
  0x24   :  { %s5305_s16 = smov [#allocation8]   ;;  %s5249_s20 = scalar_lea.hbm %s8011_s2, 1536 }
  0x25   :  { %s41_s17 = sshll.u32 %s5305_s16, 4  ;;  %p5250_p2 = scmp.ne.s32.totalorder %s8011_s2, %s5249_s20  ;;  %s42_s17 = int_to_ptr.vmem [resolvable:$true] %s41_s17 }
  0x26   :  { %p5253_p3 = scmp.lt.u32.totalorder %s5249_s20, %s8011_s2 }
  0x28   :  { %p5255_p4 = pnand %p5253_p3, %p5250_p2 }
  0x2a   :  { %5258 = shalt.err (!%p5255_p4)
}
  0x2b   :  { %s5259_s27 = scalar_lea.vmem %s42_s17, 1536  ;;  %p5264_p6 = scmp.lt.s32.totalorder %s42_s17, %s42_s17 }
  0x2c   :  { %p5260_p5 = scmp.ne.s32.totalorder %s42_s17, %s5259_s27  ;;  %p5265_p7 = scmp.lt.s32.totalorder %s5259_s27, %s5259_s27 }
  0x2e   :  { %p5266_p8 = por %p5265_p7, %p5264_p6 }
  0x30   :  { %p5267_p9 = pnand %p5266_p8, %p5260_p5 }
  0x32   :  { %5270 = shalt.err (!%p5267_p9)
}
  0x33   :  { %47 = dma.hbm_to_vmem [thread:$0]  %s8011_s2, 1536, %s42_s17, [#allocation7], %s5300_s25, %s5300_s25, %s5301_s26  }
  0x34   :  { %5293 = dma.done.wait [#allocation4], 4096  }
  0x35   :  { %5294 = vsyncadd [#allocation4], 4294963200 }
  0x36   :  { %5295 = dma.done.wait [#allocation7], 3072  }
  0x37   :  { %5296 = vsyncadd [#allocation7], 4294964224  ;;  %v5385_v0 = vld [vmem:[#allocation3 + $0x80] sm:$0xff]  ;;  %s5306_s2 = smov 2   ;;  %v5421_v12 = vld [vmem:[#allocation3 + $0x48] sm:$0xff]  ;;  %s5307_s25 = smov 1   ;;  %v100_v63 = vlaneseq }
  0x38   :  { %v5387_v1 = vld [vmem:[#allocation3 + $0xa0] sm:$0xff]  ;;  %v5423_v13 = vld [vmem:[#allocation3 + $0x68] sm:$0xff]  ;;  %v5449_v22 = vld [vmem:[#allocation3 + $0x50] sm:$0xff]  ;;  %s5308_s26 = smov 127   ;;  %s5309_s29 = smov 126  }
  0x39   :  { %v5389_v2 = vld [vmem:[#allocation3] sm:$0xff]  ;;  %v5393_v3 = vpack.i.bf16 %v5387_v1, %v5385_v0  ;;  %v5425_v14 = vld [vmem:[#allocation3 + $0x8] sm:$0xff]  ;;  %v5431_v16 = vpack.i.bf16 %v5423_v13, %v5421_v12  ;;  %8097 = vst [vmem:[#allocation16_spill] sm:$0xff] %v5449_v22  ;;  %v5451_v23 = vld [vmem:[#allocation3 + $0x70] sm:$0xff] }
  0x3a   :  { %v5395_v4 = vld [vmem:[#allocation3 + $0x20] sm:$0xff]  ;;  %v5427_v15 = vld [vmem:[#allocation3 + $0x28] sm:$0xff]  ;;  %8098 = vst [vmem:[#allocation17_spill] sm:$0xff] %v5451_v23  ;;  %v5453_v24 = vld [vmem:[#allocation3 + $0x18] sm:$0xff]  ;;  %v5501_v39 = vpack.i.bf16 %v5451_v23, %v5449_v22 }
  0x3b   :  { %v5397_v5 = vld [vmem:[#allocation3 + $0xc0] sm:$0xff]  ;;  %v5403_v7 = vpack.i.bf16 %v5395_v4, %v5389_v2  ;;  %4387 = vrot.lane.b32.xlu1 %v5393_v3, %s5306_s2  ;;  %v5439_v17 = vpack.i.bf16 %v5427_v15, %v5425_v14  ;;  %v5441_v18 = vld [vmem:[#allocation3 + $0xc8] sm:$0xff]  ;;  %v5455_v25 = vld [vmem:[#allocation3 + $0x38] sm:$0xff]  ;;  %v4501_v48 = vpack.i.bf16 %v5453_v24, %v5449_v22 }
  0x3c   :  { %8094 = vst [vmem:[#allocation13_spill] sm:$0xff] %v5397_v5  ;;  %v5399_v6 = vld [vmem:[#allocation3 + $0xe0] sm:$0xff]  ;;  %v5443_v19 = vld [vmem:[#allocation3 + $0xe8] sm:$0xff]  ;;  %v5463_v27 = vld [vmem:[#allocation3 + $0x10] sm:$0xff]  ;;  %v5483_v34 = vpack.i.bf16 %v5455_v25, %v5453_v24  ;;  %v4506_v49 = vpack.i.bf16 %v5451_v23, %v5455_v25 }
  0x3d   :  { %8095 = vst [vmem:[#allocation14_spill] sm:$0xff] %v5399_v6  ;;  %v5405_v8 = vld [vmem:[#allocation3 + $0x40] sm:$0xff]  ;;  %v5413_v10 = vpack.i.bf16 %v5399_v6, %v5397_v5  ;;  %4377 = vrot.lane.b32.xlu0 %v5403_v7, %s5306_s2  ;;  %8096 = vst [vmem:[#allocation15_spill] sm:$0xff] %v5443_v19  ;;  %v5445_v20 = vld [vmem:[#allocation3 + $0x88] sm:$0xff]  ;;  %v5461_v26 = vpack.i.bf16 %v5443_v19, %v5441_v18  ;;  %v4546_v57 = vpack.i.bf16 %v5463_v27, %v5427_v15 }
  0x3e   :  { %v5407_v9 = vld [vmem:[#allocation3 + $0x60] sm:$0xff]  ;;  %v5447_v21 = vld [vmem:[#allocation3 + $0xa8] sm:$0xff]  ;;  %v5465_v28 = vld [vmem:[#allocation3 + $0x30] sm:$0xff]  ;;  %v4541_v50 = vpack.i.bf16 %v5425_v14, %v5405_v8 }
  0x3f   :  { %v5419_v11 = vpack.i.bf16 %v5407_v9, %v5405_v8  ;;  %4392 = vrot.lane.b32.xlu1 %v5413_v10, %s5306_s2  ;;  %v5467_v29 = vld [vmem:[#allocation3 + $0x58] sm:$0xff]  ;;  %v5475_v31 = vpack.i.bf16 %v5447_v21, %v5445_v20  ;;  %v5485_v35 = vld [vmem:[#allocation3 + $0xd0] sm:$0xff]  ;;  %v5491_v37 = vpack.i.bf16 %v5465_v28, %v5463_v27  ;;  %v4551_v55 = vpack.i.bf16 %v5453_v24, %v5465_v28 }
  0x40   :  { %v5469_v30 = vld [vmem:[#allocation3 + $0x78] sm:$0xff]  ;;  %8101 = vst [vmem:[#allocation20_spill] sm:$0xff] %v5485_v35  ;;  %v5487_v36 = vld [vmem:[#allocation3 + $0xf0] sm:$0xff]  ;;  %v4556_v60 = vpack.i.bf16 %v5407_v9, %v5455_v25 }
  0x41   :  { %4382 = vrot.lane.b32.xlu0 %v5419_v11, %s5306_s2  ;;  %v5477_v32 = vld [vmem:[#allocation3 + $0x98] sm:$0xff]  ;;  %8102 = vst [vmem:[#allocation21_spill] sm:$0xff] %v5487_v36  ;;  %v5495_v38 = vpack.i.bf16 %v5469_v30, %v5467_v29  ;;  %v5503_v40 = vld [vmem:[#allocation3 + $0x90] sm:$0xff]  ;;  %v5517_v43 = vpack.i.bf16 %v5487_v36, %v5485_v35 }
  0x42   :  { %8099 = vst [vmem:[#allocation18_spill] sm:$0xff] %v5477_v32  ;;  %v5479_v33 = vld [vmem:[#allocation3 + $0xb8] sm:$0xff]  ;;  %v5511_v42 = vld [vmem:[#allocation3 + $0xb0] sm:$0xff] }
  0x43   :  { %4402 = vrot.lane.b32.xlu1 %v5431_v16, %s5306_s2  ;;  %8100 = vst [vmem:[#allocation19_spill] sm:$0xff] %v5479_v33  ;;  %v5507_v41 = vpack.i.bf16 %v5479_v33, %v5477_v32  ;;  %v5523_v44 = vpack.i.bf16 %v5511_v42, %v5503_v40  ;;  %v5529_v45 = vld [vmem:[#allocation3 + $0xd8] sm:$0xff]  ;;  %v5026_v62 = vld [vmem:[#allocation6 + $0x4] ss:$12 sps:$4 sm:$0xff]  }
  0x44   :  { %8103 = vst [vmem:[#allocation22_spill] sm:$0xff] %v5529_v45  ;;  %v5531_v46 = vld [vmem:[#allocation3 + $0xf8] sm:$0xff]  ;;  %1078 = vmatprep.mubr.bf16.mxu0 %v5026_v62  ;;  %1224 = vmatprep.mubr.bf16.mxu1 %v5026_v62 }
  0x45   :  { %4397 = vrot.lane.b32.xlu0 %v5439_v17, %s5306_s2  ;;  %8104 = vst [vmem:[#allocation23_spill] sm:$0xff] %v5531_v46  ;;  %v5537_v47 = vpack.i.bf16 %v5531_v46, %v5529_v45  ;;  %v8113_v45 = vmov 0 }
  0x47   :  { %4412 = vrot.lane.b32.xlu1 %v5461_v26, %s5306_s2 }
  0x49   :  { %4407 = vrot.lane.b32.xlu0 %v5475_v31, %s5306_s2 }
  0x4b   :  { %4422 = vrot.lane.b32.xlu1 %v5501_v39, %s5306_s2 }
  0x4d   :  { %4417 = vrot.lane.b32.xlu0 %v5491_v37, %s5306_s2 }
  0x4f   :  { %4432 = vrot.lane.b32.xlu1 %v5517_v43, %s5306_s2 }
  0x51   :  { %4427 = vrot.lane.b32.xlu0 %v5523_v44, %s5306_s2 }
  0x53   :  { %4442 = vrot.lane.b32.xlu1 %v5495_v38, %s5306_s2 }
  0x55   :  { %4437 = vrot.lane.b32.xlu0 %v5483_v34, %s5306_s2 }
  0x57   :  { %4452 = vrot.lane.b32.xlu1 %v5537_v47, %s5306_s2 }
  0x59   :  { %4447 = vrot.lane.b32.xlu0 %v5507_v41, %s5306_s2 }
  0x5b   :  { %4462 = vrot.lane.b32.xlu1 %v5419_v11, %s5307_s25 }
  0x5d   :  { %4457 = vrot.lane.b32.xlu0 %v5403_v7, %s5307_s25 }
  0x5f   :  { %4472 = vrot.lane.b32.xlu1 %v5413_v10, %s5307_s25 }
  0x61   :  { %4467 = vrot.lane.b32.xlu0 %v5393_v3, %s5307_s25 }
  0x63   :  { %4482 = vrot.lane.b32.xlu1 %v5431_v16, %s5307_s25 }
  0x65   :  { %4477 = vrot.lane.b32.xlu0 %v5439_v17, %s5307_s25 }
  0x67   :  { %4492 = vrot.lane.b32.xlu1 %v5461_v26, %s5307_s25 }
  0x69   :  { %4487 = vrot.lane.b32.xlu0 %v5475_v31, %s5307_s25 }
  0x6b   :  { %4502 = vrot.lane.b32.xlu1 %v4501_v48, %s5307_s25 }
  0x6d   :  { %4497 = vrot.lane.b32.xlu0 %v5491_v37, %s5307_s25 }
  0x6f   :  { %4512 = vrot.lane.b32.xlu1 %v5495_v38, %s5307_s25 }
  0x71   :  { %4507 = vrot.lane.b32.xlu0 %v4506_v49, %s5307_s25 }
  0x73   :  { %4522 = vrot.lane.b32.xlu1 %v5507_v41, %s5307_s25 }
  0x75   :  { %4517 = vrot.lane.b32.xlu0 %v5523_v44, %s5307_s25 }
  0x77   :  { %4532 = vrot.lane.b32.xlu1 %v5537_v47, %s5307_s25 }
  0x79   :  { %4527 = vrot.lane.b32.xlu0 %v5517_v43, %s5307_s25 }
  0x7b   :  { %4542 = vrot.lane.b32.xlu1 %v4541_v50, %s5308_s26  ;;  %v8106_v50 = vmov 0 }
  0x7d   :  { %4537 = vrot.lane.b32.xlu0 %v5403_v7, %s5308_s26 }
  0x7f   :  { %4552 = vrot.lane.b32.xlu1 %v4551_v55, %s5308_s26 }
  0x81   :  { %4547 = vrot.lane.b32.xlu0 %v4546_v57, %s5308_s26 }
  0x83   :  { %4562 = vrot.lane.b32.xlu1 %v5431_v16, %s5308_s26 }
  0x85   :  { %4557 = vrot.lane.b32.xlu0 %v4556_v60, %s5308_s26 }
  0x87   :  { %4572 = vrot.lane.b32.xlu1 %v5495_v38, %s5308_s26 }
  0x89   :  { %4567 = vrot.lane.b32.xlu0 %v5501_v39, %s5308_s26 }
  0x8b   :  { %4582 = vrot.lane.b32.xlu1 %v5475_v31, %s5308_s26 }
  0x8d   :  { %4577 = vrot.lane.b32.xlu0 %v5393_v3, %s5308_s26 }
  0x8f   :  { %4592 = vrot.lane.b32.xlu1 %v5507_v41, %s5308_s26 }
  0x91   :  { %4587 = vrot.lane.b32.xlu0 %v5523_v44, %s5308_s26 }
  0x93   :  { %4602 = vrot.lane.b32.xlu1 %v5461_v26, %s5308_s26 }
  0x95   :  { %4597 = vrot.lane.b32.xlu0 %v5413_v10, %s5308_s26 }
  0x97   :  { %4612 = vrot.lane.b32.xlu1 %v5537_v47, %s5308_s26 }
  0x99   :  { %4607 = vrot.lane.b32.xlu0 %v5517_v43, %s5308_s26 }
  0x9b   :  { %4622 = vrot.lane.b32.xlu1 %v5439_v17, %s5309_s29 }
  0x9d   :  { %4617 = vrot.lane.b32.xlu0 %v5403_v7, %s5309_s29  ;;  %v5647_v7 = vand.u32 127, %v100_v63 }
  0x9f   :  { %4632 = vrot.lane.b32.xlu1 %v5483_v34, %s5309_s29  ;;  %8105 = vst [vmem:[#allocation24_spill] sm:$0xff] %v5647_v7  ;;  %vm8039_vm0 = vcmp.lt.s32.totalorder %v5647_v7, 2  ;;  %vm250_vm3 = vcmp.ge.s32.totalorder %v5647_v7, 2  ;;  %vm8037_vm9 = vcmp.lt.s32.totalorder %v5647_v7, 1  ;;  %vm423_vm12 = vcmp.ge.s32.totalorder %v5647_v7, 1 }
  0xa0   :  { %vm5740_vm6 = vmpackc.low %vm250_vm3, %vm250_vm3 }
  0xa1   :  { %4627 = vrot.lane.b32.xlu0 %v5491_v37, %s5309_s29  ;;  %vm5961_vm15 = vmpackc.low %vm423_vm12, %vm423_vm12 }
  0xa3   :  { %4642 = vrot.lane.b32.xlu1 %v5431_v16, %s5309_s29 }
  0xa5   :  { %4637 = vrot.lane.b32.xlu0 %v5419_v11, %s5309_s29  ;;  %v102_v11 = vadd.s32 128, %v5647_v7 }
  0xa7   :  { %4652 = vrot.lane.b32.xlu1 %v5495_v38, %s5309_s29 }
  0xa9   :  { %4647 = vrot.lane.b32.xlu0 %v5501_v39, %s5309_s29 }
  0xab   :  { %4662 = vrot.lane.b32.xlu1 %v5475_v31, %s5309_s29  ;;  %v5666_v31 = vand.u32 127, %v102_v11 }
  0xad   :  { %4657 = vrot.lane.b32.xlu0 %v5393_v3, %s5309_s29  ;;  %v5653_v17 = vpop.permute.xlu1 %4387  ;;  %vm251_vm1 = vcmp.ge.s32.totalorder %v5666_v31, 2  ;;  %vm424_vm10 = vcmp.ge.s32.totalorder %v5666_v31, 1 }
  0xae   :  { %vm5688_vm2 = vmpackc.low %vm251_vm1, %vm251_vm1  ;;  %v4389_v54 = vunpack.i.l.bf16 %v5653_v17 }
  0xaf   :  { %v5655_v16 = vpop.permute.xlu0 %4377  ;;  %4672 = vrot.lane.b32.xlu1 %v5507_v41, %s5309_s29  ;;  %v8107_v50 = vsel %vm5688_vm2, 4294967295, %v8106_v50  ;;  %vm5895_vm11 = vmpackc.low %vm424_vm10, %vm424_vm10 }
  0xb0   :  { %v4380_v39 = vunpack.i.h.bf16 %v5655_v16  ;;  %v4379_v41 = vunpack.i.l.bf16 %v5655_v16  ;;  %8108 = vst [vmem:[#allocation25_spill] sm:$0xff] %v8107_v50 }
  0xb1   :  { %4667 = vrot.lane.b32.xlu0 %v5523_v44, %s5309_s29  ;;  %v5662_v34 = vpop.permute.xlu1 %4392 }
  0xb3   :  { %v5664_v37 = vpop.permute.xlu0 %4382  ;;  %4682 = vrot.lane.b32.xlu1 %v5461_v26, %s5309_s29 }
  0xb4   :  { %v4384_v61 = vunpack.i.l.bf16 %v5664_v37 }
  0xb5   :  { %4677 = vrot.lane.b32.xlu0 %v5413_v10, %s5309_s29  ;;  %v5672_v3 = vpop.permute.xlu1 %4402 }
  0xb6   :  { %v4405_v62 = vunpack.i.h.bf16 %v5672_v3  ;;  %v4404_v63 = vunpack.i.l.bf16 %v5672_v3 }
  0xb7   :  { %v4398_v38 = vpop.permute.xlu0 %4397  ;;  %4692 = vrot.lane.b32.xlu1 %v5537_v47, %s5309_s29  ;;  %v104_v47 = vadd.s32 384, %v5647_v7 }
  0xb8   :  { %v4400_v44 = vunpack.i.h.bf16 %v4398_v38  ;;  %v4399_v48 = vunpack.i.l.bf16 %v4398_v38  ;;  %v4385_v38 = vunpack.i.h.bf16 %v5664_v37  ;;  %v4390_v37 = vunpack.i.h.bf16 %v5653_v17 }
  0xb9   :  { %4687 = vrot.lane.b32.xlu0 %v5517_v43, %s5309_s29  ;;  %v5682_v10 = vpop.permute.xlu1 %4412  ;;  %v103_v43 = vadd.s32 256, %v5647_v7  ;;  %v5700_v11 = vand.u32 127, %v104_v47 }
  0xba   :  { %v234_v26 = vsel %vm8039_vm0, %v4379_v41, %v4399_v48  ;;  %v235_v49 = vsel %vm8039_vm0, %v4380_v39, %v4400_v44  ;;  %v237_v59 = vsel %vm8039_vm0, %v4385_v38, %v4405_v62 }
  0xbb   :  { %v5692_v55 = vpop.permute.xlu0 %4407  ;;  %v3913_v57 = vpack.c.bf16 %v235_v49, %v234_v26  ;;  %v5704_v26 = vand.u32 127, %v103_v43  ;;  %vm253_vm4 = vcmp.ge.s32.totalorder %v5700_v11, 2  ;;  %vm426_vm13 = vcmp.ge.s32.totalorder %v5700_v11, 1 }
  0xbc   :  { %v8109_v36 = vunpack.i.h.bf16 %v5692_v55  ;;  %v4409_v17 = vunpack.i.l.bf16 %v5692_v55  ;;  %vm5755_vm7 = vmpackc.low %vm253_vm4, %vm253_vm4  ;;  %vm8038_vm4 = vcmp.lt.s32.totalorder %v5647_v7, 127  ;;  %vm631_vm10 = vcmp.lt.s32.totalorder %v5700_v11, 127 }
  0xbd   :  { %3914 = vmatprep.subr.msk.bf16.mxu0 %vm5688_vm2, %v3913_v57  ;;  %v4423_v60 = vpop.permute.xlu1 %4422  ;;  %v236_v57 = vsel %vm8039_vm0, %v4384_v61, %v4404_v63  ;;  %vm252_vm5 = vcmp.ge.s32.totalorder %v5704_v26, 2  ;;  %v8114_v45 = vsel %vm5755_vm7, 4294967295, %v8113_v45  ;;  %vm425_vm14 = vcmp.ge.s32.totalorder %v5704_v26, 1  ;;  %vm5978_vm1 = vmpackc.low %vm426_vm13, %vm426_vm13 }
  0xbe   :  { %v3919_v51 = vpack.c.bf16 %v237_v59, %v236_v57  ;;  %v4425_v46 = vunpack.i.h.bf16 %v4423_v60  ;;  %v4424_v52 = vunpack.i.l.bf16 %v4423_v60  ;;  %8115 = vst [vmem:[#allocation27_spill] sm:$0xff] %v8114_v45  ;;  %vm5766_vm8 = vmpackc.low %vm252_vm5, %vm252_vm5  ;;  %v8137_v45 = vmov 0 }
  0xbf   :  { %v4418_v16 = vpop.permute.xlu0 %4417  ;;  %vm5989_vm3 = vmpackc.low %vm425_vm14, %vm425_vm14  ;;  %vm629_vm5 = vcmp.lt.s32.totalorder %v5666_v31, 127  ;;  %vm630_vm12 = vcmp.lt.s32.totalorder %v5704_v26, 127 }
  0xc0   :  { %v4420_v47 = vunpack.i.h.bf16 %v4418_v16  ;;  %v4419_v43 = vunpack.i.l.bf16 %v4418_v16  ;;  %v239_v16 = vsel %vm8039_vm0, %v4390_v37, %v8109_v36  ;;  %v8138_v45 = vsel %vm5989_vm3, 4294967295, %v8137_v45  ;;  %vm6185_vm13 = vmpackc.low %vm629_vm5, %vm629_vm5 }
  0xc1   :  { %v5706_v49 = vpop.permute.xlu1 %4432  ;;  %8139 = vst [vmem:[#allocation32_spill] sm:$0xff] %v8138_v45  ;;  %vm6200_vm14 = vmpackc.low %vm631_vm10, %vm631_vm10  ;;  %vm8075_vm10 = vcmp.lt.s32.totalorder %v5647_v7, 126 }
  0xc2   :  { %v226_v59 = vsel %vm8039_vm0, %v4399_v48, %v4419_v43  ;;  %v227_v57 = vsel %vm8039_vm0, %v4400_v44, %v4420_v47  ;;  %vm6213_vm5 = vmpackc.low %vm8038_vm4, %vm8038_vm4 }
  0xc3   :  { %v5712_v58 = vpop.permute.xlu0 %4427 }
  0xc5   :  { %v4443_v53 = vpop.permute.xlu1 %4442 }
  0xc6   :  { %v4445_v33 = vunpack.i.h.bf16 %v4443_v53  ;;  %v4444_v22 = vunpack.i.l.bf16 %v4443_v53 }
  0xc7   :  { %v4438_v23 = vpop.permute.xlu0 %4437 }
  0xc8   :  { %v4440_v35 = vunpack.i.h.bf16 %v4438_v23  ;;  %v4439_v56 = vunpack.i.l.bf16 %v4438_v23  ;;  %v8110_v23 = vmov 0  ;;  %v220_v48 = vsel %vm8039_vm0, %v4424_v52, %v4444_v22 }
  0xc9   :  { %v4453_v32 = vpop.permute.xlu1 %4452  ;;  %v8111_v23 = vsel %vm5740_vm6, 4294967295, %v8110_v23 }
  0xca   :  { %v242_v53 = vsel %vm8039_vm0, %v4439_v56, %v4379_v41  ;;  %v243_v3 = vsel %vm8039_vm0, %v4440_v35, %v4380_v39  ;;  %8112 = vst [vmem:[#allocation26_spill] sm:$0xff] %v8111_v23  ;;  %v218_v36 = vsel %vm8039_vm0, %v4419_v43, %v4439_v56  ;;  %v219_v44 = vsel %vm8039_vm0, %v4420_v47, %v4440_v35 }
  0xcb   :  { %v221_v41 = vsel %vm8039_vm0, %v4425_v46, %v4445_v33  ;;  %v4448_v39 = vpop.permute.xlu0 %4447  ;;  %v3916_v60 = vpack.c.bf16 %v243_v3, %v242_v53  ;;  %v4009_v6 = vpack.c.bf16 %v219_v44, %v218_v36  ;;  %v244_v56 = vsel %vm8039_vm0, %v4444_v22, %v4384_v61 }
  0xcc   :  { %v245_v35 = vsel %vm8039_vm0, %v4445_v33, %v4385_v38  ;;  %v4450_v47 = vunpack.i.h.bf16 %v4448_v39  ;;  %v4449_v43 = vunpack.i.l.bf16 %v4448_v39  ;;  %v8116_v3 = vmov 0 }
  0xcd   :  { %v8117_v3 = vsel %vm5766_vm8, 4294967295, %v8116_v3  ;;  %v238_v53 = vsel %vm8039_vm0, %v4389_v54, %v4409_v17  ;;  %v4430_v36 = vunpack.i.h.bf16 %v5712_v58  ;;  %v4429_v44 = vunpack.i.l.bf16 %v5712_v58  ;;  %3917 = vmatpush1.bf16.msk.msra.mxu0 %vm5740_vm6, %v3916_v60  ;;  %4010 = vmatprep.subr.msk.bf16.mxu1 %vm5755_vm7, %v4009_v6  ;;  %v5782_v39 = vpop.permute.xlu1 %4462 }
  0xce   :  { %8118 = vst [vmem:[#allocation28_spill] sm:$0xff] %v8117_v3  ;;  %v4012_v22 = vpack.c.bf16 %v227_v57, %v226_v59  ;;  %v228_v33 = vsel %vm8039_vm0, %v4404_v63, %v4424_v52  ;;  %v229_v61 = vsel %vm8039_vm0, %v4405_v62, %v4425_v46  ;;  %v4455_v38 = vunpack.i.h.bf16 %v4453_v32  ;;  %3920 = vmatprep.subr.msk.bf16.mxu0 %vm5688_vm2, %v3919_v51 }
  0xcf   :  { %v4015_v5 = vpack.c.bf16 %v221_v41, %v220_v48  ;;  %v4454_v19 = vunpack.i.l.bf16 %v4453_v32  ;;  %v222_v58 = vsel %vm8039_vm0, %v4429_v44, %v4449_v43  ;;  %v223_v59 = vsel %vm8039_vm0, %v4430_v36, %v4450_v47  ;;  %v5792_v46 = vpop.permute.xlu0 %4457 }
  0xd0   :  { %4013 = vmatpush1.bf16.msk.msra.mxu1 %vm5766_vm8, %v4012_v22  ;;  %v3922_v52 = vpack.c.bf16 %v245_v35, %v244_v56  ;;  %v8119_v6 = vunpack.i.h.bf16 %v5682_v10  ;;  %v8120_v62 = vunpack.i.h.bf16 %v5662_v34  ;;  %v247_v63 = vsel %vm8039_vm0, %v4450_v47, %v4390_v37  ;;  %v62_v22 = vld [vmem:[%s8012_s3 + $0x10] sm:$0xff] }
  0xd1   :  { %v246_v57 = vsel %vm8039_vm0, %v4449_v43, %v4389_v54  ;;  %4016 = vmatprep.subr.msk.bf16.mxu1 %vm5755_vm7, %v4015_v5  ;;  %v3925_v51 = vpack.c.bf16 %v239_v16, %v238_v53  ;;  %v8121_v48 = vunpack.i.l.bf16 %v5682_v10  ;;  %v8122_v41 = vunpack.i.l.bf16 %v5662_v34  ;;  %v5824_v47 = vpop.permute.xlu1 %4472 }
  0xd2   :  { %v241_v32 = vsel %vm8039_vm0, %v8120_v62, %v8119_v6  ;;  %v4435_v56 = vunpack.i.h.bf16 %v5706_v49  ;;  %v4434_v35 = vunpack.i.l.bf16 %v5706_v49  ;;  %3923 = vmatpush1.bf16.msk.msra.mxu0 %vm5740_vm6, %v3922_v52  ;;  %v4018_v37 = vpack.c.bf16 %v229_v61, %v228_v33  ;;  %v60_v49 = vld [vmem:[%s8012_s3] sm:$0xff] }
  0xd3   :  { %v240_v60 = vsel %vm8039_vm0, %v8122_v41, %v8121_v48  ;;  %v230_v54 = vsel %vm8039_vm0, %v4409_v17, %v4429_v44  ;;  %v8123_v5 = vunpack.i.h.bf16 %v5692_v55  ;;  %3926 = vmatprep.subr.msk.bf16.mxu0 %vm5688_vm2, %v3925_v51  ;;  %v4021_v43 = vpack.c.bf16 %v223_v59, %v222_v58  ;;  %v5835_v55 = vpop.permute.xlu0 %4467 }
  0xd4   :  { %v224_v53 = vsel %vm8039_vm0, %v4434_v35, %v4454_v19  ;;  %v225_v17 = vsel %vm8039_vm0, %v4435_v56, %v4455_v38  ;;  %4019 = vmatpush1.bf16.msk.msra.mxu1 %vm5766_vm8, %v4018_v37  ;;  %v5310_v44 = vmov 1   ;;  %v8124_v33 = vmov %v8120_v62  ;;  %v61_v62 = vld [vmem:[%s8012_s3 + $0x8] sm:$0xff] }
  0xd5   :  { %v231_v16 = vsel %vm8039_vm0, %v8123_v5, %v4430_v36  ;;  %v3928_v36 = vpack.c.bf16 %v247_v63, %v246_v57  ;;  %4696 = vset.pattern.permute.xlu1 %v5310_v44  ;;  %v249_v61 = vsel %vm8039_vm0, %v4455_v38, %v8124_v33  ;;  %v8125_v58 = vmov %v8122_v41  ;;  %v5865_v63 = vpop.permute.xlu1 %4482 }
  0xd6   :  { %v248_v59 = vsel %vm8039_vm0, %v4454_v19, %v8125_v58  ;;  %4022 = vmatprep.subr.msk.bf16.mxu1 %vm5755_vm7, %v4021_v43  ;;  %v3931_v52 = vpack.c.bf16 %v241_v32, %v240_v60  ;;  %1476 = vperm.xlu1 %4696, %v60_v49   ;;  %v4024_v6 = vpack.c.bf16 %v231_v16, %v230_v54  ;;  %v8127_v19 = vunpack.i.h.bf16 %v5682_v10  ;;  %v65_v10 = vld [vmem:[%s8012_s3 + $0x28] sm:$0xff]  ;;  %v63_v54 = vld [vmem:[%s8012_s3 + $0x18] sm:$0xff]  ;;  %v64_v58 = vld [vmem:[%s8012_s3 + $0x20] sm:$0xff] }
  0xd7   :  { %3929 = vmatpush1.bf16.msk.msra.mxu0 %vm5740_vm6, %v3928_v36  ;;  %4697 = vset.pattern.permute.xlu0 %v5310_v44  ;;  %v8126_v38 = vmov %v8121_v48  ;;  %v4027_v57 = vpack.c.bf16 %v225_v17, %v224_v53  ;;  %v5870_v51 = vpop.permute.xlu0 %4477  ;;  %v3934_v48 = vpack.c.bf16 %v249_v61, %v248_v59  ;;  %v4460_v41 = vunpack.i.h.bf16 %v5792_v46 }
  0xd8   :  { %v232_v34 = vsel %vm8039_vm0, %v8126_v38, %v4434_v35  ;;  %v233_v32 = vsel %vm8039_vm0, %v8127_v19, %v4435_v56  ;;  %3932 = vmatprep.subr.msk.bf16.mxu0 %vm5688_vm2, %v3931_v52  ;;  %1486 = vperm.xlu0 %4697, %v62_v22   ;;  %v4459_v60 = vunpack.i.l.bf16 %v5792_v46  ;;  %v4480_v56 = vunpack.i.h.bf16 %v5870_v51  ;;  %v67_v22 = vld [vmem:[%s8012_s3 + $0x38] sm:$0xff] }
  0xd9   :  { %4025 = vmatpush1.bf16.msk.msra.mxu1 %vm5766_vm8, %v4024_v6  ;;  %v4479_v35 = vunpack.i.l.bf16 %v5870_v51  ;;  %v4030_v37 = vpack.c.bf16 %v233_v32, %v232_v34  ;;  %v5893_v43 = vpop.permute.xlu1 %4492  ;;  %v8128_v49 = vmov 0  ;;  %v8025_v53 = vunpack.i.h.bf16 %v5865_v63  ;;  %v66_v51 = vld [vmem:[%s8012_s3 + $0x30] sm:$0xff] }
  0xda   :  { %4028 = vmatprep.subr.msk.bf16.mxu1 %vm5755_vm7, %v4027_v57  ;;  %1481 = vperm.xlu1 %4696, %v61_v62   ;;  %v408_v16 = vsel %vm8037_vm9, %v4460_v41, %v4480_v56  ;;  %v8129_v49 = vsel %vm5895_vm11, 4294967295, %v8128_v49  ;;  %v8028_v17 = vunpack.i.l.bf16 %v5865_v63  ;;  %v4465_v33 = vunpack.i.h.bf16 %v5782_v39 }
  0xdb   :  { %3935 = vmatpush1.bf16.msk.msra.mxu0 %vm5740_vm6, %v3934_v48  ;;  %v407_v5 = vsel %vm8037_vm9, %v4459_v60, %v4479_v35  ;;  %8130 = vst [vmem:[#allocation29_spill] sm:$0xff] %v8129_v49  ;;  %v5903_v36 = vpop.permute.xlu0 %4487  ;;  %v4464_v61 = vunpack.i.l.bf16 %v5782_v39  ;;  %v4469_v34 = vunpack.i.l.bf16 %v5835_v55  ;;  %v8140_v23 = vmov 0  }
  0xdc   :  { %1501 = vperm.xlu0 %4697, %v65_v10   ;;  %v3937_v44 = vpack.c.bf16 %v408_v16, %v407_v5  ;;  %v410_v39 = vsel %vm8037_vm9, %v4465_v33, %v8025_v53  ;;  %v8026_v6 = vunpack.i.l.bf16 %v5903_v36  ;;  %v8027_v38 = vunpack.i.h.bf16 %v5903_v36 }
  0xdd   :  { %4031 = vmatpush1.bf16.msk.msra.mxu1 %vm5766_vm8, %v4030_v37  ;;  %v4503_v59 = vpop.permute.xlu1 %4502  ;;  %v5919_v52 = vsel %vm8037_vm9, %v4464_v61, %v8028_v17  ;;  %v4470_v37 = vunpack.i.h.bf16 %v5835_v55  ;;  %v8029_v16 = vmov 0  }
  0xde   :  { %1491 = vperm.xlu1 %4696, %v63_v54   ;;  %3938 = vmatprep.subr.msk.bf16.mxu0 %vm5895_vm11, %v3937_v44  ;;  %v4505_v19 = vunpack.i.h.bf16 %v4503_v59  ;;  %v3943_v5 = vpack.c.bf16 %v410_v39, %v5919_v52  ;;  %v4504_v52 = vunpack.i.l.bf16 %v4503_v59  ;;  %v8131_v59 = vmov 0 }
  0xdf   :  { %v4498_v62 = vpop.permute.xlu0 %4497  ;;  %v412_v55 = vsel %vm8037_vm9, %v4470_v37, %v8027_v38  ;;  %v8132_v59 = vsel %vm5961_vm15, 4294967295, %v8131_v59 }
  0xe0   :  { %1511 = vperm.xlu0 %4697, %v67_v22   ;;  %v4500_v32 = vunpack.i.h.bf16 %v4498_v62  ;;  %v4499_v57 = vunpack.i.l.bf16 %v4498_v62  ;;  %v5944_v22 = vsel %vm8037_vm9, %v4469_v34, %v8026_v6  ;;  %v415_v44 = vsel %vm8037_vm9, %v4505_v19, %v4459_v60  ;;  %8133 = vst [vmem:[#allocation30_spill] sm:$0xff] %v8132_v59 }
  0xe1   :  { %v4513_v54 = vpop.permute.xlu1 %4512 }
  0xe2   :  { %1496 = vperm.xlu1 %4696, %v64_v58   ;;  %v4515_v58 = vunpack.i.h.bf16 %v4513_v54  ;;  %v4514_v62 = vunpack.i.l.bf16 %v4513_v54  ;;  %v391_v53 = vsel %vm8037_vm9, %v4499_v57, %v4505_v19  ;;  %v399_v6 = vsel %vm8037_vm9, %v4479_v35, %v4499_v57 }
  0xe3   :  { %v4508_v48 = vpop.permute.xlu0 %4507  ;;  %v400_v54 = vsel %vm8037_vm9, %v4480_v56, %v4500_v32  ;;  %v8134_v57 = vmov 0 }
  0xe4   :  { %4699 = vset.pattern.permute.xlu0 %v8029_v16  ;;  %v4510_v39 = vunpack.i.h.bf16 %v4508_v48  ;;  %v4509_v10 = vunpack.i.l.bf16 %v4508_v48  ;;  %v8135_v57 = vsel %vm5978_vm1, 4294967295, %v8134_v57  ;;  %v417_v46 = vsel %vm8037_vm9, %v4514_v62, %v4464_v61 }
  0xe5   :  { %v4523_v35 = vpop.permute.xlu1 %4522  ;;  %8136 = vst [vmem:[#allocation31_spill] sm:$0xff] %v8135_v57  ;;  %v3949_v61 = vpack.c.bf16 %v412_v55, %v5944_v22 }
  0xe6   :  { %1506 = vperm.xlu1 %4696, %v66_v51   ;;  %v393_v51 = vsel %vm8037_vm9, %v4504_v52, %v4514_v62  ;;  %v394_v60 = vsel %vm8037_vm9, %v4510_v39, %v4515_v58  ;;  %v392_v19 = vsel %vm8037_vm9, %v4500_v32, %v4509_v10  ;;  %v416_v56 = vsel %vm8037_vm9, %v4509_v10, %v4460_v41 }
  0xe7   :  { %v4525_v48 = vunpack.i.h.bf16 %v4523_v35  ;;  %v4524_v38 = vunpack.i.l.bf16 %v4523_v35  ;;  %v4518_v17 = vpop.permute.xlu0 %4517  ;;  %v3940_v16 = vpack.c.bf16 %v416_v56, %v415_v44  ;;  %v4033_v3 = vpack.c.bf16 %v392_v19, %v391_v53 }
  0xe8   :  { %v418_v32 = vsel %vm8037_vm9, %v4515_v58, %v4465_v33  ;;  %v4520_v41 = vunpack.i.h.bf16 %v4518_v17  ;;  %v4519_v10 = vunpack.i.l.bf16 %v4518_v17  ;;  %v4494_v44 = vunpack.i.l.bf16 %v5893_v43 }
  0xe9   :  { %v8141_v53 = vunpack.i.l.bf16 %v5865_v63  ;;  %3941 = vmatpush1.bf16.msk.msra.mxu0 %vm5961_vm15, %v3940_v16  ;;  %4034 = vmatprep.subr.msk.bf16.mxu1 %vm5978_vm1, %v4033_v3  ;;  %v4036_v17 = vpack.c.bf16 %v400_v54, %v399_v6  ;;  %v8142_v58 = vunpack.i.h.bf16 %v5865_v63  ;;  %v4533_v16 = vpop.permute.xlu1 %4532  ;;  %v4039_v56 = vpack.c.bf16 %v394_v60, %v393_v51 }
  0xea   :  { %4698 = vset.pattern.permute.xlu1 %v8140_v23  ;;  %v396_v19 = vsel %vm8037_vm9, %v4520_v41, %v4525_v48  ;;  %3944 = vmatprep.subr.msk.bf16.mxu0 %vm5895_vm11, %v3943_v5  ;;  %v419_v3 = vsel %vm8037_vm9, %v4524_v38, %v4469_v34  ;;  %v420_v63 = vsel %vm8037_vm9, %v4525_v48, %v4470_v37  ;;  %v4535_v6 = vunpack.i.h.bf16 %v4533_v16 }
  0xeb   :  { %v401_v33 = vsel %vm8037_vm9, %v8141_v53, %v4504_v52  ;;  %v402_v62 = vsel %vm8037_vm9, %v8142_v58, %v4510_v39  ;;  %v395_v52 = vsel %vm8037_vm9, %v4519_v10, %v4524_v38  ;;  %4037 = vmatpush1.bf16.msk.msra.mxu1 %vm5989_vm3, %v4036_v17  ;;  %v4528_v22 = vpop.permute.xlu0 %4527  ;;  %v3946_v55 = vpack.c.bf16 %v418_v32, %v417_v46 }
  0xec   :  { %v4534_v39 = vunpack.i.l.bf16 %v4533_v16  ;;  %v4530_v54 = vunpack.i.h.bf16 %v4528_v22  ;;  %v4529_v35 = vunpack.i.l.bf16 %v4528_v22  ;;  %4040 = vmatprep.subr.msk.bf16.mxu1 %vm5978_vm1, %v4039_v56  ;;  %v4045_v5 = vpack.c.bf16 %v396_v19, %v395_v52 }
  0xed   :  { %v8143_v51 = vunpack.i.l.bf16 %v5824_v47  ;;  %v8144_v34 = vunpack.i.h.bf16 %v5893_v43  ;;  %v8145_v37 = vunpack.i.h.bf16 %v5824_v47  ;;  %3947 = vmatpush1.bf16.msk.msra.mxu0 %vm5961_vm15, %v3946_v55  ;;  %v4042_v48 = vpack.c.bf16 %v402_v62, %v401_v33  ;;  %v6048_v33 = vpop.permute.xlu1 %4542 }
  0xee   :  { %v8146_v32 = vunpack.i.l.bf16 %v5903_v36  ;;  %v8147_v53 = vunpack.i.h.bf16 %v5903_v36  ;;  %v398_v58 = vsel %vm8037_vm9, %v4530_v54, %v4535_v6  ;;  %v397_v19 = vsel %vm8037_vm9, %v4529_v35, %v4534_v39  ;;  %3950 = vmatprep.subr.msk.bf16.mxu0 %vm5895_vm11, %v3949_v61 }
  0xef   :  { %v413_v38 = vsel %vm8037_vm9, %v8143_v51, %v4494_v44  ;;  %v414_v60 = vsel %vm8037_vm9, %v8145_v37, %v8144_v34  ;;  %4043 = vmatpush1.bf16.msk.msra.mxu1 %vm5989_vm3, %v4042_v48  ;;  %v3952_v36 = vpack.c.bf16 %v420_v63, %v419_v3  ;;  %v8148_v62 = vmov %v8145_v37 }
  0xf0   :  { %v403_v46 = vsel %vm8037_vm9, %v8146_v32, %v4519_v10  ;;  %v404_v17 = vsel %vm8037_vm9, %v8147_v53, %v4520_v41  ;;  %v6052_v10 = vpop.permute.xlu0 %4537  ;;  %v422_v41 = vsel %vm8037_vm9, %v4535_v6, %v8148_v62  ;;  %v8149_v52 = vmov %v8143_v51  ;;  %4046 = vmatprep.subr.msk.bf16.mxu1 %vm5978_vm1, %v4045_v5  ;;  %v8160_v53 = vld [vmem:[#allocation22_spill] sm:$0xff] }
  0xf1   :  { %v421_v16 = vsel %vm8037_vm9, %v4534_v39, %v8149_v52  ;;  %v3955_v61 = vpack.c.bf16 %v414_v60, %v413_v38  ;;  %v4051_v56 = vpack.c.bf16 %v398_v58, %v397_v19  ;;  %3953 = vmatpush1.bf16.msk.msra.mxu0 %vm5961_vm15, %v3952_v36  ;;  %v4048_v22 = vpack.c.bf16 %v404_v17, %v403_v46  ;;  %v6074_v6 = vpop.permute.xlu1 %4552  ;;  %v8161_v17 = vld [vmem:[#allocation23_spill] sm:$0xff]  ;;  %v8165_v52 = vld [vmem:[#allocation16_spill] sm:$0xff] }
  0xf2   :  { %v8150_v3 = vmov %v8144_v34  ;;  %v405_v47 = vsel %vm8037_vm9, %v4494_v44, %v4529_v35  ;;  %v3958_v39 = vpack.c.bf16 %v422_v41, %v421_v16  ;;  %v8151_v44 = vpack.c.bf16 %v5427_v15, %v5425_v14  ;;  %v8164_v41 = vld [vmem:[#allocation17_spill] sm:$0xff] }
  0xf3   :  { %v406_v63 = vsel %vm8037_vm9, %v8150_v3, %v4530_v54  ;;  %3956 = vmatprep.subr.msk.bf16.mxu0 %vm5895_vm11, %v3955_v61  ;;  %4049 = vmatpush1.bf16.msk.msra.mxu1 %vm5989_vm3, %v4048_v22  ;;  %v8152_v5 = vpack.c.bf16 %v5455_v25, %v5453_v24  ;;  %v4545_v51 = vunpack.i.h.bf16 %v6048_v33  ;;  %v8153_v38 = vpack.c.bf16 %v5395_v4, %v5389_v2  ;;  %v8167_v3 = vld [vmem:[#allocation19_spill] sm:$0xff]  ;;  %vm6233_vm9 = vmpackc.low %vm630_vm12, %vm630_vm12 }
  0xf4   :  { %v4548_v55 = vpop.permute.xlu0 %4547  ;;  %4052 = vmatprep.subr.msk.bf16.mxu1 %vm5978_vm1, %v4051_v56  ;;  %v4054_v43 = vpack.c.bf16 %v406_v63, %v405_v47  ;;  %v503_v34 = vpack.c.bf16 %v5407_v9, %v5405_v8  ;;  %v508_v14 = vpack.c.bf16 %v5447_v21, %v5445_v20  ;;  %v4539_v15 = vunpack.i.l.bf16 %v6052_v10  ;;  %v8157_v21 = vld [vmem:[#allocation15_spill] sm:$0xff]  ;;  %v8168_v63 = vld [vmem:[#allocation18_spill] sm:$0xff] }
  0xf5   :  { %3959 = vmatpush1.bf16.msk.msra.mxu0 %vm5961_vm15, %v3958_v39  ;;  %v6082_v54 = vpop.permute.xlu1 %4562  ;;  %v4554_v37 = vunpack.i.l.bf16 %v6074_v6  ;;  %v4550_v60 = vunpack.i.h.bf16 %v4548_v55  ;;  %v4549_v48 = vunpack.i.l.bf16 %v4548_v55  ;;  %v8154_v25 = vpack.c.bf16 %v5423_v13, %v5421_v12 }
  0xf6   :  { %1062 = vmatprep.subr.bf16.mxu0 %v8151_v44  ;;  %v4540_v2 = vunpack.i.h.bf16 %v6052_v10  ;;  %v8155_v4 = vpack.c.bf16 %v5465_v28, %v5463_v27  ;;  %v4555_v9 = vunpack.i.h.bf16 %v6074_v6  ;;  %v8156_v20 = vpack.c.bf16 %v5469_v30, %v5467_v29  ;;  %v8158_v27 = vld [vmem:[#allocation13_spill] sm:$0xff]  ;;  %v8159_v28 = vld [vmem:[#allocation14_spill] sm:$0xff] }
  0xf7   :  { %4055 = vmatpush1.bf16.msk.msra.mxu1 %vm5989_vm3, %v4054_v43  ;;  %v507_v12 = vpack.c.bf16 %v5387_v1, %v5385_v0  ;;  %v509_v13 = vpack.c.bf16 %v5511_v42, %v5503_v40  ;;  %v512_v32 = vpack.c.bf16 %v8157_v21, %v5441_v18  ;;  %v511_v46 = vpack.c.bf16 %v8159_v28, %v8158_v27  ;;  %v8162_v18 = vld [vmem:[#allocation20_spill] sm:$0xff]  ;;  %v8163_v40 = vld [vmem:[#allocation21_spill] sm:$0xff] }
  0xf8   :  { %v6089_v35 = vpop.permute.xlu0 %4557  ;;  %1208 = vmatprep.subr.bf16.mxu1 %v8152_v5  ;;  %v514_v58 = vpack.c.bf16 %v8161_v17, %v8160_v53  ;;  %v6133_v29 = vsel %vm8038_vm4, %v4539_v15, %v4545_v51  ;;  %v604_v0 = vsel %vm8038_vm4, %v4545_v51, %v4550_v60  ;;  %v605_v1 = vsel %vm8038_vm4, %v4549_v48, %v4554_v37 }
  0xf9   :  { %1063 = vmatpush1.bf16.msra.mxu0 %v8153_v38  ;;  %v6104_v24 = vpop.permute.xlu1 %4572  ;;  %v513_v42 = vpack.c.bf16 %v8163_v40, %v8162_v18  ;;  %v6145_v19 = vsel %vm8038_vm4, %v4540_v2, %v4549_v48  ;;  %v4559_v10 = vunpack.i.l.bf16 %v6089_v35  ;;  %v8166_v16 = vpack.c.bf16 %v8164_v41, %v8165_v52 }
  0xfa   :  { %1064 = vmatprep.subr.bf16.mxu0 %v8154_v25  ;;  %v4575_v36 = vunpack.i.h.bf16 %v6104_v24  ;;  %v4574_v62 = vunpack.i.l.bf16 %v6104_v24  ;;  %v4544_v56 = vunpack.i.l.bf16 %v6048_v33  ;;  %v620_v22 = vsel %vm8038_vm4, %v4555_v9, %v4539_v15 }
  0xfb   :  { %1209 = vmatpush1.bf16.msra.mxu1 %v8155_v4  ;;  %v8169_v47 = vpack.c.bf16 %v8167_v3, %v8168_v63  ;;  %v596_v6 = vsel %vm8038_vm4, %v4550_v60, %v4555_v9  ;;  %v4560_v55 = vunpack.i.h.bf16 %v6089_v35  ;;  %v4565_v43 = vunpack.i.h.bf16 %v6082_v54 }
  0xfc   :  { %v6114_v8 = vpop.permute.xlu0 %4567  ;;  %1210 = vmatprep.subr.bf16.mxu1 %v8156_v20  ;;  %v4564_v44 = vunpack.i.l.bf16 %v6082_v54  ;;  %v3961_v51 = vpack.c.bf16 %v605_v1, %v604_v0  ;;  %v3964_v38 = vpack.c.bf16 %v6145_v19, %v6133_v29  ;;  %v621_v35 = vsel %vm8038_vm4, %v4559_v10, %v4540_v2 }
  0xfd   :  { %1065 = vmatpush1.bf16.msra.mxu0 %v503_v34  ;;  %v6139_v30 = vpop.permute.xlu1 %4582  ;;  %v4570_v39 = vunpack.i.h.bf16 %v6114_v8  ;;  %v4569_v33 = vunpack.i.l.bf16 %v6114_v8  ;;  %v597_v34 = vsel %vm8038_vm4, %v4554_v37, %v4559_v10  ;;  %v623_v15 = vsel %vm8038_vm4, %v4575_v36, %v4560_v55 }
  0xfe   :  { %1066 = vmatprep.subr.bf16.mxu0 %v508_v14  ;;  %v622_v14 = vsel %vm8038_vm4, %v4574_v62, %v4544_v56  ;;  %v8170_v60 = vmov 0  ;;  %v4585_v37 = vunpack.i.h.bf16 %v6139_v30  ;;  %v4584_v48 = vunpack.i.l.bf16 %v6139_v30 }
  0xff   :  { %1211 = vmatpush1.bf16.msra.mxu1 %v8166_v16  ;;  %v8171_v60 = vsel %vm6185_vm13, 4294967295, %v8170_v60  ;;  %v607_v2 = vsel %vm8038_vm4, %v4565_v43, %v4570_v39  ;;  %v606_v4 = vsel %vm8038_vm4, %v4564_v44, %v4569_v33  ;;  %v8173_v20 = vmov 0 }
 0x100   :  { %v6153_v61 = vpop.permute.xlu0 %4577  ;;  %1212 = vmatprep.subr.bf16.mxu1 %v8169_v47  ;;  %8172 = vst [vmem:[#allocation15_spill] sm:$0xff] %v8171_v60  ;;  %v8174_v20 = vsel %vm6200_vm14, 4294967295, %v8173_v20  ;;  %v4057_v27 = vpack.c.bf16 %v621_v35, %v620_v22  ;;  %v8176_v28 = vmov 0  ;;  %v599_v53 = vsel %vm8038_vm4, %v4570_v39, %v4575_v36 }
 0x101   :  { %1067 = vmatpush1.bf16.msra.mxu0 %v507_v12  ;;  %v6170_v5 = vpop.permute.xlu1 %4592  ;;  %v4580_v24 = vunpack.i.h.bf16 %v6153_v61  ;;  %v4579_v25 = vunpack.i.l.bf16 %v6153_v61  ;;  %8175 = vst [vmem:[#allocation13_spill] sm:$0xff] %v8174_v20  ;;  %v614_v12 = vsel %vm8038_vm4, %v4544_v56, %v4564_v44  ;;  %v8177_v28 = vsel %vm6213_vm5, 4294967295, %v8176_v28 }
 0x102   :  { %1068 = vmatprep.subr.bf16.mxu0 %v512_v32  ;;  %v4594_v21 = vunpack.i.l.bf16 %v6170_v5  ;;  %8178 = vst [vmem:[#allocation14_spill] sm:$0xff] %v8177_v28  ;;  %v598_v17 = vsel %vm8038_vm4, %v4569_v33, %v4574_v62  ;;  %v4060_v29 = vpack.c.bf16 %v597_v34, %v596_v6  ;;  %v3967_v30 = vpack.c.bf16 %v607_v2, %v606_v4 }
 0x103   :  { %1213 = vmatpush1.bf16.msra.mxu1 %v509_v13  ;;  %v4595_v13 = vunpack.i.h.bf16 %v6170_v5  ;;  %v617_v0 = vsel %vm8038_vm4, %v4580_v24, %v4585_v37  ;;  %v616_v1 = vsel %vm8038_vm4, %v4579_v25, %v4584_v48  ;;  %v8179_v18 = vmov 0 }
 0x104   :  { %v4588_v54 = vpop.permute.xlu0 %4587  ;;  %1214 = vmatprep.subr.bf16.mxu1 %v514_v58  ;;  %v8180_v18 = vsel %vm6233_vm9, 4294967295, %v8179_v18  ;;  %v4063_v40 = vpack.c.bf16 %v623_v15, %v622_v14  ;;  %v624_v62 = vsel %vm8038_vm4, %v4594_v21, %v4579_v25  ;;  %v4066_v47 = vpack.c.bf16 %v599_v53, %v598_v17 }
 0x105   :  { %v4590_v8 = vunpack.i.h.bf16 %v4588_v54  ;;  %v4589_v9 = vunpack.i.l.bf16 %v4588_v54  ;;  %1069 = vmatpush1.bf16.msra.mxu0 %v511_v46  ;;  %v4603_v32 = vpop.permute.xlu1 %4602  ;;  %v615_v46 = vsel %vm8038_vm4, %v4560_v55, %v4565_v43  ;;  %8181 = vst [vmem:[#allocation22_spill] sm:$0xff] %v8180_v18  ;;  %v625_v41 = vsel %vm8038_vm4, %v4595_v13, %v4580_v24 }
 0x106   :  { %3962 = vmatprep.subr.msk.bf16.mxu0 %vm6185_vm13, %v3961_v51  ;;  %v4605_v10 = vunpack.i.h.bf16 %v4603_v32  ;;  %v4604_v52 = vunpack.i.l.bf16 %v4603_v32  ;;  %v3970_v63 = vpack.c.bf16 %v615_v46, %v614_v12  ;;  %v3976_v33 = vpack.c.bf16 %v617_v0, %v616_v1 }
 0x107   :  { %1215 = vmatpush1.bf16.msra.mxu1 %v513_v42  ;;  %v609_v42 = vsel %vm8038_vm4, %v4585_v37, %v4590_v8  ;;  %v608_v19 = vsel %vm8038_vm4, %v4584_v48, %v4589_v9  ;;  %v601_v43 = vsel %vm8038_vm4, %v4590_v8, %v4595_v13  ;;  %v600_v44 = vsel %vm8038_vm4, %v4589_v9, %v4594_v21 }
 0x108   :  { %v4598_v58 = vpop.permute.xlu0 %4597  ;;  %4058 = vmatprep.subr.msk.bf16.mxu1 %vm6200_vm14, %v4057_v27  ;;  %v3973_v39 = vpack.c.bf16 %v609_v42, %v608_v19  ;;  %v4069_v51 = vpack.c.bf16 %v625_v41, %v624_v62  ;;  %v4072_v12 = vpack.c.bf16 %v601_v43, %v600_v44  ;;  %vm802_vm12 = vcmp.lt.s32.totalorder %v5666_v31, 126 }
 0x109   :  { %v4600_v36 = vunpack.i.h.bf16 %v4598_v58  ;;  %3965 = vmatpush1.bf16.msk.msra.mxu0 %vm6213_vm5, %v3964_v38  ;;  %v4599_v16 = vunpack.i.l.bf16 %v4598_v58  ;;  %v4613_v61 = vpop.permute.xlu1 %4612  ;;  %vm6304_vm0 = vmpackc.low %vm802_vm12, %vm802_vm12  ;;  %vm8185_vm12 = vcmp.lt.s32.totalorder %v5700_v11, 126 }
 0x10a   :  { %3968 = vmatprep.subr.msk.bf16.mxu0 %vm6185_vm13, %v3967_v30  ;;  %v4615_v56 = vunpack.i.h.bf16 %v4613_v61  ;;  %v4614_v22 = vunpack.i.l.bf16 %v4613_v61  ;;  %v5024_v30 = vld [vmem:[#allocation6] ss:$12 sps:$4 sm:$0xff]   ;;  %v8186_v61 = vmov 0 }
 0x10b   :  { %4061 = vmatpush1.bf16.msk.msra.mxu1 %vm6233_vm9, %v4060_v29  ;;  %v619_v5 = vsel %vm8038_vm4, %v4600_v36, %v4605_v10  ;;  %v618_v38 = vsel %vm8038_vm4, %v4599_v16, %v4604_v52 }
 0x10c   :  { %v4608_v3 = vpop.permute.xlu0 %4607  ;;  %4064 = vmatprep.subr.msk.bf16.mxu1 %vm6200_vm14, %v4063_v40  ;;  %v626_v34 = vsel %vm8038_vm4, %v4614_v22, %v4599_v16  ;;  %v627_v54 = vsel %vm8038_vm4, %v4615_v56, %v4600_v36  ;;  %v3982_v58 = vpack.c.bf16 %v619_v5, %v618_v38  ;;  %v5027_v36 = vld [vmem:[#allocation6 + $0x1c] ss:$12 sps:$4 sm:$0xff]  }
 0x10d   :  { %v4610_v6 = vunpack.i.h.bf16 %v4608_v3  ;;  %v4609_v55 = vunpack.i.l.bf16 %v4608_v3  ;;  %3971 = vmatpush1.bf16.msk.msra.mxu0 %vm6213_vm5, %v3970_v63  ;;  %v4623_v15 = vpop.permute.xlu1 %4622  ;;  %v4075_v27 = vpack.c.bf16 %v627_v54, %v626_v34 }
 0x10e   :  { %3974 = vmatprep.subr.msk.bf16.mxu0 %vm6185_vm13, %v3973_v39  ;;  %v4625_v37 = vunpack.i.h.bf16 %v4623_v15  ;;  %v4624_v48 = vunpack.i.l.bf16 %v4623_v15 }
 0x10f   :  { %v611_v35 = vsel %vm8038_vm4, %v4605_v10, %v4610_v6  ;;  %v610_v14 = vsel %vm8038_vm4, %v4604_v52, %v4609_v55  ;;  %4067 = vmatpush1.bf16.msk.msra.mxu1 %vm6233_vm9, %v4066_v47  ;;  %v603_v2 = vsel %vm8038_vm4, %v4610_v6, %v4615_v56  ;;  %v602_v4 = vsel %vm8038_vm4, %v4609_v55, %v4614_v22  ;;  %vm6329_vm4 = vmpackc.low %vm8075_vm10, %vm8075_vm10 }
 0x110   :  { %v4618_v24 = vpop.permute.xlu0 %4617  ;;  %v3979_v25 = vpack.c.bf16 %v611_v35, %v610_v14  ;;  %4070 = vmatprep.subr.msk.bf16.mxu1 %vm6200_vm14, %v4069_v51  ;;  %v4078_v29 = vpack.c.bf16 %v603_v2, %v602_v4  ;;  %v8182_v10 = vmov 0  ;;  %v8189_v6 = vmov 0  ;;  %v5029_v14 = vld [vmem:[#allocation6 + $0x18] ss:$12 sps:$4 sm:$0xff]  }
 0x111   :  { %v4620_v8 = vunpack.i.h.bf16 %v4618_v24  ;;  %v4619_v9 = vunpack.i.l.bf16 %v4618_v24  ;;  %3977 = vmatpush1.bf16.msk.msra.mxu0 %vm6213_vm5, %v3976_v33  ;;  %v4633_v32 = vpop.permute.xlu1 %4632  ;;  %v8183_v10 = vsel %vm6304_vm0, 4294967295, %v8182_v10  ;;  %v8190_v6 = vsel %vm6329_vm4, 4294967295, %v8189_v6 }
 0x112   :  { %3980 = vmatprep.subr.msk.bf16.mxu0 %vm6185_vm13, %v3979_v25  ;;  %v4635_v46 = vunpack.i.h.bf16 %v4633_v32  ;;  %v4634_v53 = vunpack.i.l.bf16 %v4633_v32  ;;  %8184 = vst [vmem:[#allocation23_spill] sm:$0xff] %v8183_v10  ;;  %8191 = vst [vmem:[#allocation21_spill] sm:$0xff] %v8190_v6  ;;  %v8193_v33 = vmov 0 }
 0x113   :  { %v786_v13 = vsel %vm8075_vm10, %v4620_v8, %v4625_v37  ;;  %v785_v21 = vsel %vm8075_vm10, %v4619_v9, %v4624_v48  ;;  %4073 = vmatpush1.bf16.msk.msra.mxu1 %vm6233_vm9, %v4072_v12 }
 0x114   :  { %v4628_v17 = vpop.permute.xlu0 %4627  ;;  %4076 = vmatprep.subr.msk.bf16.mxu1 %vm6200_vm14, %v4075_v27  ;;  %v3988_v40 = vpack.c.bf16 %v786_v13, %v785_v21  ;;  %v793_v42 = vsel %vm8075_vm10, %v4634_v53, %v4619_v9  ;;  %v794_v19 = vsel %vm8075_vm10, %v4635_v46, %v4620_v8 }
 0x115   :  { %v4630_v0 = vunpack.i.h.bf16 %v4628_v17  ;;  %v4629_v1 = vunpack.i.l.bf16 %v4628_v17  ;;  %3983 = vmatpush1.bf16.msk.msra.mxu0 %vm6213_vm5, %v3982_v58  ;;  %v4643_v16 = vpop.permute.xlu1 %4642  ;;  %vm6320_vm5 = vmpackc.low %vm8185_vm12, %vm8185_vm12  ;;  %v4081_v39 = vpack.c.bf16 %v794_v19, %v793_v42  ;;  %vm8192_vm12 = vcmp.lt.s32.totalorder %v5704_v26, 126  ;;  %v5032_v19 = vld [vmem:[#allocation6 + $0x30] ss:$12 sps:$4 sm:$0xff]  }
 0x116   :  { %v8187_v61 = vsel %vm6320_vm5, 4294967295, %v8186_v61  ;;  %v4645_v22 = vunpack.i.h.bf16 %v4643_v16  ;;  %v4644_v3 = vunpack.i.l.bf16 %v4643_v16  ;;  %vm6336_vm14 = vmpackc.low %vm8192_vm12, %vm8192_vm12  ;;  %vm8074_vm12 = vcmask 523264  }
 0x117   :  { %v770_v62 = vsel %vm8075_vm10, %v4630_v0, %v4635_v46  ;;  %v778_v41 = vsel %vm8075_vm10, %v4625_v37, %v4630_v0  ;;  %v769_v52 = vsel %vm8075_vm10, %v4629_v1, %v4634_v53  ;;  %v777_v31 = vsel %vm8075_vm10, %v4624_v48, %v4629_v1  ;;  %8188 = vst [vmem:[#allocation20_spill] sm:$0xff] %v8187_v61  ;;  %v5030_v48 = vld [vmem:[#allocation6 + $0x34] ss:$12 sps:$4 sm:$0xff]  }
 0x118   :  { %v4084_v56 = vpack.c.bf16 %v770_v62, %v769_v52  ;;  %4079 = vmatpush1.bf16.msk.msra.mxu1 %vm6233_vm9, %v4078_v29  ;;  %v4638_v63 = vpop.permute.xlu0 %4637  ;;  %v3985_v47 = vpack.c.bf16 %v778_v41, %v777_v31  ;;  %1079 = vmatmul.mubr.bf16.vlgmr.msra.gmra.mrb[0].mxu0 %v5024_v30  ;;  %v8194_v33 = vsel %vm6336_vm14, 4294967295, %v8193_v33  ;;  %v5033_v52 = vld [vmem:[#allocation6 + $0x4c] ss:$12 sps:$4 sm:$0xff]  }
 0x119   :  { %v4640_v11 = vunpack.i.h.bf16 %v4638_v63  ;;  %v4639_v55 = vunpack.i.l.bf16 %v4638_v63  ;;  %8195 = vst [vmem:[#allocation17_spill] sm:$0xff] %v8194_v33  ;;  %1088 = vmatprep.mubr.bf16.mxu0 %v5027_v36  ;;  %4082 = vmatprep.subr.msk.bf16.mxu1 %vm6320_vm5, %v4081_v39  ;;  %v4653_v26 = vpop.permute.xlu1 %4652 }
 0x11a   :  { %3986 = vmatprep.subr.msk.bf16.mxu0 %vm6304_vm0, %v3985_v47  ;;  %v4655_v5 = vunpack.i.h.bf16 %v4653_v26  ;;  %v4654_v51 = vunpack.i.l.bf16 %v4653_v26 }
 0x11b   :  { %v788_v43 = vsel %vm8075_vm10, %v4640_v11, %v4645_v22  ;;  %v787_v44 = vsel %vm8075_vm10, %v4639_v55, %v4644_v3  ;;  %1225 = vmatmul.mubr.bf16.vlgmr.msra.gmra.mrb[0].mxu1 %v5024_v30  ;;  %3989 = vmatpush1.bf16.msk.msra.mxu0 %vm6329_vm4, %v3988_v40 }
 0x11c   :  { %v4648_v38 = vpop.permute.xlu0 %4647  ;;  %4085 = vmatpush1.bf16.msk.msra.mxu1 %vm6336_vm14, %v4084_v56  ;;  %1234 = vmatprep.mubr.bf16.mxu1 %v5027_v36  ;;  %v3994_v15 = vpack.c.bf16 %v788_v43, %v787_v44  ;;  %v795_v54 = vsel %vm8075_vm10, %v4654_v51, %v4639_v55  ;;  %v796_v37 = vsel %vm8075_vm10, %v4655_v5, %v4640_v11 }
 0x11d   :  { %v4650_v34 = vunpack.i.h.bf16 %v4648_v38  ;;  %v4649_v35 = vunpack.i.l.bf16 %v4648_v38  ;;  %v4663_v8 = vpop.permute.xlu1 %4662  ;;  %v4087_v53 = vpack.c.bf16 %v796_v37, %v795_v54  ;;  %v5035_v37 = vld [vmem:[#allocation6 + $0x48] ss:$12 sps:$4 sm:$0xff]  }
 0x11e   :  { %v4665_v12 = vunpack.i.h.bf16 %v4663_v8  ;;  %v4664_v13 = vunpack.i.l.bf16 %v4663_v8 }
 0x11f   :  { %v772_v24 = vsel %vm8075_vm10, %v4650_v34, %v4655_v5  ;;  %v780_v25 = vsel %vm8075_vm10, %v4645_v22, %v4650_v34  ;;  %v771_v2 = vsel %vm8075_vm10, %v4649_v35, %v4654_v51  ;;  %v779_v4 = vsel %vm8075_vm10, %v4644_v3, %v4649_v35  ;;  %4088 = vmatprep.subr.msk.bf16.mxu1 %vm6320_vm5, %v4087_v53  ;;  %v5039_v53 = vld [vmem:[#allocation6 + $0x50] ss:$12 sps:$4 sm:$0xff]  }
 0x120   :  { %v4090_v9 = vpack.c.bf16 %v772_v24, %v771_v2  ;;  %v4658_v21 = vpop.permute.xlu0 %4657  ;;  %v3991_v32 = vpack.c.bf16 %v780_v25, %v779_v4  ;;  %1089 = vmatmul.mubr.bf16.gmra.mrb[4].mxu0 %v5029_v14 }
 0x121   :  { %v4660_v27 = vunpack.i.h.bf16 %v4658_v21  ;;  %v4659_v46 = vunpack.i.l.bf16 %v4658_v21  ;;  %1098 = vmatprep.mubr.bf16.mxu0 %v5030_v48  ;;  %v4673_v29 = vpop.permute.xlu1 %4672 }
 0x122   :  { %3992 = vmatprep.subr.msk.bf16.mxu0 %vm6304_vm0, %v3991_v32  ;;  %v4675_v0 = vunpack.i.h.bf16 %v4673_v29  ;;  %v4674_v1 = vunpack.i.l.bf16 %v4673_v29  ;;  %4091 = vmatpush1.bf16.msk.msra.mxu1 %vm6336_vm14, %v4090_v9  ;;  %v5036_v32 = vld [vmem:[#allocation6 + $0x8] ss:$12 sps:$4 sm:$0xff]  }
 0x123   :  { %v790_v17 = vsel %vm8075_vm10, %v4660_v27, %v4665_v12  ;;  %v789_v58 = vsel %vm8075_vm10, %v4659_v46, %v4664_v13  ;;  %1235 = vmatmul.mubr.bf16.gmra.mrb[4].mxu1 %v5029_v14  ;;  %3995 = vmatpush1.bf16.msk.msra.mxu0 %vm6329_vm4, %v3994_v15 }
 0x124   :  { %v4668_v30 = vpop.permute.xlu0 %4667  ;;  %1244 = vmatprep.mubr.bf16.mxu1 %v5030_v48  ;;  %v4000_v36 = vpack.c.bf16 %v790_v17, %v789_v58  ;;  %v797_v62 = vsel %vm8075_vm10, %v4674_v1, %v4659_v46  ;;  %v798_v41 = vsel %vm8075_vm10, %v4675_v0, %v4660_v27  ;;  %v5037_v27 = vld [vmem:[#allocation6 + $0x20] ss:$12 sps:$4 sm:$0xff]   ;;  %v5038_v46 = vld [vmem:[#allocation6 + $0x38] ss:$12 sps:$4 sm:$0xff]  }
 0x125   :  { %v4670_v40 = vunpack.i.h.bf16 %v4668_v30  ;;  %v4669_v42 = vunpack.i.l.bf16 %v4668_v30  ;;  %v4683_v3 = vpop.permute.xlu1 %4682  ;;  %v4093_v26 = vpack.c.bf16 %v798_v41, %v797_v62 }
 0x126   :  { %v4685_v47 = vunpack.i.h.bf16 %v4683_v3  ;;  %v4684_v11 = vunpack.i.l.bf16 %v4683_v3 }
 0x127   :  { %v774_v31 = vsel %vm8075_vm10, %v4670_v40, %v4675_v0  ;;  %v782_v16 = vsel %vm8075_vm10, %v4665_v12, %v4670_v40  ;;  %v773_v56 = vsel %vm8075_vm10, %v4669_v42, %v4674_v1  ;;  %v781_v22 = vsel %vm8075_vm10, %v4664_v13, %v4669_v42  ;;  %4094 = vmatprep.subr.msk.bf16.mxu1 %vm6320_vm5, %v4093_v26 }
 0x128   :  { %v4096_v63 = vpack.c.bf16 %v774_v31, %v773_v56  ;;  %v4678_v55 = vpop.permute.xlu0 %4677  ;;  %v3997_v39 = vpack.c.bf16 %v782_v16, %v781_v22  ;;  %1099 = vmatmul.mubr.bf16.gmra.mrb[8].mxu0 %v5032_v19 }
 0x129   :  { %v4680_v43 = vunpack.i.h.bf16 %v4678_v55  ;;  %v4679_v44 = vunpack.i.l.bf16 %v4678_v55  ;;  %1108 = vmatprep.mubr.bf16.mxu0 %v5033_v52  ;;  %v4693_v38 = vpop.permute.xlu1 %4692 }
 0x12a   :  { %3998 = vmatprep.subr.msk.bf16.mxu0 %vm6304_vm0, %v3997_v39  ;;  %v4695_v34 = vunpack.i.h.bf16 %v4693_v38  ;;  %v4694_v35 = vunpack.i.l.bf16 %v4693_v38  ;;  %4097 = vmatpush1.bf16.msk.msra.mxu1 %vm6336_vm14, %v4096_v63 }
 0x12b   :  { %v792_v5 = vsel %vm8075_vm10, %v4680_v43, %v4685_v47  ;;  %v791_v51 = vsel %vm8075_vm10, %v4679_v44, %v4684_v11  ;;  %1245 = vmatmul.mubr.bf16.gmra.mrb[8].mxu1 %v5032_v19  ;;  %4001 = vmatpush1.bf16.msk.msra.mxu0 %vm6329_vm4, %v4000_v36 }
 0x12c   :  { %v4688_v14 = vpop.permute.xlu0 %4687  ;;  %1254 = vmatprep.mubr.bf16.mxu1 %v5033_v52  ;;  %v4006_v48 = vpack.c.bf16 %v792_v5, %v791_v51  ;;  %v799_v24 = vsel %vm8075_vm10, %v4694_v35, %v4679_v44  ;;  %v800_v25 = vsel %vm8075_vm10, %v4695_v34, %v4680_v43 }
 0x12d   :  { %v4690_v15 = vunpack.i.h.bf16 %v4688_v14  ;;  %v4689_v54 = vunpack.i.l.bf16 %v4688_v14  ;;  %v4099_v21 = vpack.c.bf16 %v800_v25, %v799_v24 }
 0x12f   :  { %v776_v2 = vsel %vm8075_vm10, %v4690_v15, %v4695_v34  ;;  %v784_v4 = vsel %vm8075_vm10, %v4685_v47, %v4690_v15  ;;  %v775_v8 = vsel %vm8075_vm10, %v4689_v54, %v4694_v35  ;;  %v783_v9 = vsel %vm8075_vm10, %v4684_v11, %v4689_v54  ;;  %4100 = vmatprep.subr.msk.bf16.mxu1 %vm6320_vm5, %v4099_v21 }
 0x130   :  { %v4102_v12 = vpack.c.bf16 %v776_v2, %v775_v8  ;;  %v4003_v13 = vpack.c.bf16 %v784_v4, %v783_v9  ;;  %1109 = vmatmul.mubr.bf16.gmra.mrb[12].mxu0 %v5035_v37 }
 0x131   :  { %1151 = vmatprep.mubr.bf16.mxu0 %v8140_v23 }
 0x132   :  { %4004 = vmatprep.subr.msk.bf16.mxu0 %vm6304_vm0, %v4003_v13  ;;  %4103 = vmatpush1.bf16.msk.msra.mxu1 %vm6336_vm14, %v4102_v12 }
 0x133   :  { %1255 = vmatmul.mubr.bf16.gmra.mrb[12].mxu1 %v5035_v37  ;;  %4007 = vmatpush1.bf16.msk.msra.mxu0 %vm6329_vm4, %v4006_v48 }
 0x134   :  { %1297 = vmatprep.mubr.bf16.mxu1 %v8140_v23 }
 0x138   :  { %3884 = vmatmul.mubr.msk.bf16.vlgmr.msra.gmra.mrb[0].mxu0 %vm8074_vm12, %v5036_v32 }
 0x139   :  { %1161 = vmatprep.mubr.bf16.mxu0 %v8140_v23 }
 0x13b   :  { %3888 = vmatmul.mubr.msk.bf16.vlgmr.msra.gmra.mrb[0].mxu1 %vm8074_vm12, %v5036_v32 }
 0x13c   :  { %1307 = vmatprep.mubr.bf16.mxu1 %v8140_v23 }
 0x140   :  { %3885 = vmatmul.mubr.msk.bf16.gmra.mrb[4].mxu0 %vm8074_vm12, %v5037_v27 }
 0x141   :  { %1171 = vmatprep.mubr.bf16.mxu0 %v8140_v23 }
 0x143   :  { %3889 = vmatmul.mubr.msk.bf16.gmra.mrb[4].mxu1 %vm8074_vm12, %v5037_v27 }
 0x144   :  { %1317 = vmatprep.mubr.bf16.mxu1 %v8140_v23 }
 0x148   :  { %3886 = vmatmul.mubr.msk.bf16.gmra.mrb[8].mxu0 %vm8074_vm12, %v5038_v46 }
 0x149   :  { %1181 = vmatprep.mubr.bf16.mxu0 %v8140_v23 }
 0x14b   :  { %3890 = vmatmul.mubr.msk.bf16.gmra.mrb[8].mxu1 %vm8074_vm12, %v5038_v46 }
 0x14c   :  { %1327 = vmatprep.mubr.bf16.mxu1 %v8140_v23 }
 0x150   :  { %3887 = vmatmul.mubr.msk.bf16.gmra.mrb[12].mxu0 %vm8074_vm12, %v5039_v53 }
 0x153   :  { %3891 = vmatmul.mubr.msk.bf16.gmra.mrb[12].mxu1 %vm8074_vm12, %v5039_v53 }
 0x155   :  { %v6532_v15 = vpop.permute.xlu1 %1476 }
 0x157   :  { %v6536_v37 = vpop.permute.xlu0 %1486 }
 0x159   :  { %v6534_v54 = vpop.permute.xlu1 %1481 }
 0x15b   :  { %v6540_v24 = vpop.permute.xlu0 %1501 }
 0x15d   :  { %v6538_v48 = vpop.permute.xlu1 %1491 }
 0x15f   :  { %v6544_v2 = vpop.permute.xlu0 %1511 }
 0x161   :  { %v6542_v25 = vpop.permute.xlu1 %1496 }
 0x165   :  { %v6546_v4 = vpop.permute.xlu1 %1506 }
 0x20b   :  { %v6436_v17 = vpop.f32.mrb[0].mxu0 }
 0x20c   :  { %v6438_v58 = vpop.f32.mrb[1].mxu0  ;;  %1338 = vadd.xlane.f32.xlu0 %v6436_v17 }
 0x20d   :  { %v6443_v0 = vpop.f32.mrb[2].mxu0 }
 0x20e   :  { %v6441_v29 = vpop.f32.mrb[0].mxu1  ;;  %v6448_v30 = vpop.f32.mrb[3].mxu0 }
 0x20f   :  { %v6445_v1 = vpop.f32.mrb[1].mxu1  ;;  %1698 = vadd.xlane.f32.xlu1 %v6441_v29 }
 0x210   :  { %v6450_v40 = vpop.f32.mrb[2].mxu1 }
 0x211   :  { %v6452_v42 = vpop.f32.mrb[3].mxu1  ;;  %1700 = vadd.xlane.f32.xlu0 %v6450_v40 }
 0x213   :  { %1538 = vadd.xlane.f32.xlu1 %v6438_v58  ;;  %v6456_v19 = vpop.f32.mrb[4].mxu0 }
 0x214   :  { %v6458_v36 = vpop.f32.mrb[5].mxu0 }
 0x215   :  { %1540 = vadd.xlane.f32.xlu0 %v6448_v30  ;;  %v6463_v41 = vpop.f32.mrb[6].mxu0 }
 0x216   :  { %v6461_v62 = vpop.f32.mrb[4].mxu1  ;;  %v6468_v31 = vpop.f32.mrb[7].mxu0 }
 0x217   :  { %v6465_v52 = vpop.f32.mrb[5].mxu1  ;;  %1858 = vadd.xlane.f32.xlu1 %v6445_v1 }
 0x218   :  { %v6470_v16 = vpop.f32.mrb[6].mxu1 }
 0x219   :  { %v6472_v56 = vpop.f32.mrb[7].mxu1  ;;  %1860 = vadd.xlane.f32.xlu0 %v6452_v42 }
 0x21b   :  { %1340 = vadd.xlane.f32.xlu1 %v6443_v0  ;;  %v6476_v22 = vpop.f32.mrb[8].mxu0 }
 0x21c   :  { %v6478_v3 = vpop.f32.mrb[9].mxu0 }
 0x21d   :  { %1342 = vadd.xlane.f32.xlu0 %v6456_v19  ;;  %v6483_v47 = vpop.f32.mrb[10].mxu0 }
 0x21e   :  { %v6481_v63 = vpop.f32.mrb[8].mxu1  ;;  %v6488_v55 = vpop.f32.mrb[11].mxu0 }
 0x21f   :  { %v6485_v11 = vpop.f32.mrb[9].mxu1  ;;  %1702 = vadd.xlane.f32.xlu1 %v6461_v62 }
 0x220   :  { %v6490_v39 = vpop.f32.mrb[10].mxu1 }
 0x221   :  { %v6492_v43 = vpop.f32.mrb[11].mxu1  ;;  %1542 = vadd.xlane.f32.xlu0 %v6458_v36 }
 0x223   :  { %1862 = vadd.xlane.f32.xlu1 %v6465_v52  ;;  %v6496_v44 = vpop.f32.mrb[12].mxu0 }
 0x224   :  { %v6498_v26 = vpop.f32.mrb[13].mxu0 }
 0x225   :  { %1344 = vadd.xlane.f32.xlu0 %v6463_v41  ;;  %v6503_v51 = vpop.f32.mrb[14].mxu0 }
 0x226   :  { %v6501_v5 = vpop.f32.mrb[12].mxu1  ;;  %v6508_v34 = vpop.f32.mrb[15].mxu0 }
 0x227   :  { %v6505_v38 = vpop.f32.mrb[13].mxu1  ;;  %1544 = vadd.xlane.f32.xlu1 %v6468_v31 }
 0x228   :  { %v6510_v35 = vpop.f32.mrb[14].mxu1 }
 0x229   :  { %v6512_v14 = vpop.f32.mrb[15].mxu1  ;;  %1704 = vadd.xlane.f32.xlu0 %v6470_v16 }
 0x22b   :  { %1346 = vadd.xlane.f32.xlu1 %v6476_v22 }
 0x22d   :  { %1864 = vadd.xlane.f32.xlu0 %v6472_v56 }
 0x22f   :  { %1706 = vadd.xlane.f32.xlu1 %v6481_v63 }
 0x231   :  { %1546 = vadd.xlane.f32.xlu0 %v6478_v3 }
 0x233   :  { %1866 = vadd.xlane.f32.xlu1 %v6485_v11 }
 0x235   :  { %1348 = vadd.xlane.f32.xlu0 %v6483_v47 }
 0x237   :  { %1548 = vadd.xlane.f32.xlu1 %v6488_v55 }
 0x239   :  { %1708 = vadd.xlane.f32.xlu0 %v6490_v39 }
 0x23b   :  { %1350 = vadd.xlane.f32.xlu1 %v6496_v44 }
 0x23d   :  { %1868 = vadd.xlane.f32.xlu0 %v6492_v43 }
 0x23f   :  { %1710 = vadd.xlane.f32.xlu1 %v6501_v5 }
 0x241   :  { %1550 = vadd.xlane.f32.xlu0 %v6498_v26 }
 0x243   :  { %1870 = vadd.xlane.f32.xlu1 %v6505_v38 }
 0x245   :  { %1352 = vadd.xlane.f32.xlu0 %v6503_v51 }
 0x247   :  { %1552 = vadd.xlane.f32.xlu1 %v6508_v34 }
 0x249   :  { %1712 = vadd.xlane.f32.xlu0 %v6510_v35 }
 0x24d   :  { %1872 = vadd.xlane.f32.xlu0 %v6512_v14 }
 0x299   :  { %v1339_v8 = vpop.xlane.xlu0 %1338 }
 0x29a   :  { %v1354_v9 = vmul.f32 0.0078125, %v1339_v8 }
 0x29c   :  { %v1699_v12 = vpop.xlane.xlu1 %1698  ;;  %v6549_v13 = vsub.f32 %v6436_v17, %v1354_v9 }
 0x29d   :  { %v1714_v21 = vmul.f32 0.0078125, %v1699_v12 }
 0x29e   :  { %v1701_v32 = vpop.xlane.xlu0 %1700  ;;  %v1370_v46 = vmul.f32 %v6549_v13, %v6549_v13 }
 0x29f   :  { %v6552_v27 = vsub.f32 %v6441_v29, %v1714_v21 }
 0x2a0   :  { %v1539_v53 = vpop.xlane.xlu1 %1538  ;;  %1378 = vadd.xlane.f32.xlu1 %v1370_v46  ;;  %v1715_v46 = vmul.f32 0.0078125, %v1701_v32 }
 0x2a1   :  { %v1554_v23 = vmul.f32 0.0078125, %v1539_v53  ;;  %v1730_v8 = vmul.f32 %v6552_v27, %v6552_v27 }
 0x2a2   :  { %v1541_v33 = vpop.xlane.xlu0 %1540  ;;  %v6575_v18 = vsub.f32 %v6450_v40, %v1715_v46 }
 0x2a3   :  { %v6557_v61 = vsub.f32 %v6438_v58, %v1554_v23  ;;  %v1555_v9 = vmul.f32 0.0078125, %v1541_v33 }
 0x2a4   :  { %v1859_v17 = vpop.xlane.xlu1 %1858  ;;  %1738 = vadd.xlane.f32.xlu1 %v1730_v8 }
 0x2a5   :  { %v1874_v12 = vmul.f32 0.0078125, %v1859_v17  ;;  %v1570_v29 = vmul.f32 %v6557_v61, %v6557_v61  ;;  %v6567_v23 = vsub.f32 %v6448_v30, %v1555_v9 }
 0x2a6   :  { %v1861_v21 = vpop.xlane.xlu0 %1860 }
 0x2a7   :  { %v6564_v6 = vsub.f32 %v6445_v1, %v1874_v12  ;;  %1578 = vadd.xlane.f32.xlu0 %v1570_v29  ;;  %v1875_v1 = vmul.f32 0.0078125, %v1861_v21  ;;  %v1571_v9 = vmul.f32 %v6567_v23, %v6567_v23 }
 0x2a8   :  { %v1341_v53 = vpop.xlane.xlu1 %1340 }
 0x2a9   :  { %v1355_v58 = vmul.f32 0.0078125, %v1341_v53  ;;  %v1890_v10 = vmul.f32 %v6564_v6, %v6564_v6 }
 0x2aa   :  { %v1343_v33 = vpop.xlane.xlu0 %1342 }
 0x2ab   :  { %v6572_v8 = vsub.f32 %v6443_v0, %v1355_v58  ;;  %v1356_v17 = vmul.f32 0.0078125, %v1343_v33  ;;  %1898 = vadd.xlane.f32.xlu1 %v1890_v10  ;;  %v6587_v0 = vsub.f32 %v6452_v42, %v1875_v1  ;;  %v1731_v58 = vmul.f32 %v6575_v18, %v6575_v18 }
 0x2ac   :  { %v1703_v12 = vpop.xlane.xlu1 %1702 }
 0x2ad   :  { %v6578_v32 = vsub.f32 %v6456_v19, %v1356_v17  ;;  %v1716_v30 = vmul.f32 0.0078125, %v1703_v12  ;;  %v1371_v29 = vmul.f32 %v6572_v8, %v6572_v8 }
 0x2ae   :  { %v1543_v53 = vpop.xlane.xlu0 %1542 }
 0x2af   :  { %1580 = vadd.xlane.f32.xlu1 %v1571_v9  ;;  %1380 = vadd.xlane.f32.xlu0 %v1371_v29  ;;  %v1372_v10 = vmul.f32 %v6578_v32, %v6578_v32  ;;  %v6590_v19 = vsub.f32 %v6461_v62, %v1716_v30  ;;  %v1556_v21 = vmul.f32 0.0078125, %v1543_v53  ;;  %v1891_v9 = vmul.f32 %v6587_v0, %v6587_v0 }
 0x2b0   :  { %v1863_v40 = vpop.xlane.xlu1 %1862 }
 0x2b1   :  { %v1876_v46 = vmul.f32 0.0078125, %v1863_v40  ;;  %v6597_v42 = vsub.f32 %v6458_v36, %v1556_v21  ;;  %v1732_v30 = vmul.f32 %v6590_v19, %v6590_v19 }
 0x2b2   :  { %v1345_v33 = vpop.xlane.xlu0 %1344 }
 0x2b3   :  { %1382 = vadd.xlane.f32.xlu1 %v1372_v10  ;;  %1740 = vadd.xlane.f32.xlu0 %v1731_v58  ;;  %v1357_v17 = vmul.f32 0.0078125, %v1345_v33  ;;  %v6600_v1 = vsub.f32 %v6465_v52, %v1876_v46  ;;  %v1572_v52 = vmul.f32 %v6597_v42, %v6597_v42 }
 0x2b4   :  { %v1545_v12 = vpop.xlane.xlu1 %1544 }
 0x2b5   :  { %v1557_v62 = vmul.f32 0.0078125, %v1545_v12  ;;  %v6605_v53 = vsub.f32 %v6463_v41, %v1357_v17  ;;  %v1892_v21 = vmul.f32 %v6600_v1, %v6600_v1 }
 0x2b6   :  { %v1705_v29 = vpop.xlane.xlu0 %1704 }
 0x2b7   :  { %1900 = vadd.xlane.f32.xlu0 %v1891_v9  ;;  %1742 = vadd.xlane.f32.xlu1 %v1732_v30  ;;  %v1717_v10 = vmul.f32 0.0078125, %v1705_v29  ;;  %v6608_v58 = vsub.f32 %v6468_v31, %v1557_v62  ;;  %v1373_v17 = vmul.f32 %v6605_v53, %v6605_v53 }
 0x2b8   :  { %v1347_v40 = vpop.xlane.xlu1 %1346 }
 0x2b9   :  { %v1358_v36 = vmul.f32 0.0078125, %v1347_v40  ;;  %v6615_v33 = vsub.f32 %v6470_v16, %v1717_v10  ;;  %v1573_v62 = vmul.f32 %v6608_v58, %v6608_v58 }
 0x2ba   :  { %v1865_v46 = vpop.xlane.xlu0 %1864 }
 0x2bb   :  { %1582 = vadd.xlane.f32.xlu0 %v1572_v52  ;;  %1902 = vadd.xlane.f32.xlu1 %v1892_v21  ;;  %v6620_v31 = vsub.f32 %v6476_v22, %v1358_v36  ;;  %v1877_v12 = vmul.f32 0.0078125, %v1865_v46  ;;  %v1733_v16 = vmul.f32 %v6615_v33, %v6615_v33 }
 0x2bc   :  { %v1707_v41 = vpop.xlane.xlu1 %1706 }
 0x2bd   :  { %v1718_v9 = vmul.f32 0.0078125, %v1707_v41  ;;  %v6627_v10 = vsub.f32 %v6472_v56, %v1877_v12  ;;  %v1374_v36 = vmul.f32 %v6620_v31, %v6620_v31 }
 0x2be   :  { %v1547_v30 = vpop.xlane.xlu0 %1546 }
 0x2bf   :  { %1384 = vadd.xlane.f32.xlu0 %v1373_v17  ;;  %1584 = vadd.xlane.f32.xlu1 %v1573_v62  ;;  %v1558_v29 = vmul.f32 0.0078125, %v1547_v30  ;;  %v6630_v52 = vsub.f32 %v6481_v63, %v1718_v9  ;;  %v1893_v63 = vmul.f32 %v6627_v10, %v6627_v10 }
 0x2c0   :  { %v1867_v40 = vpop.xlane.xlu1 %1866 }
 0x2c1   :  { %v1878_v22 = vmul.f32 0.0078125, %v1867_v40  ;;  %v6635_v46 = vsub.f32 %v6478_v3, %v1558_v29  ;;  %v1734_v12 = vmul.f32 %v6630_v52, %v6630_v52 }
 0x2c2   :  { %v1349_v21 = vpop.xlane.xlu0 %1348 }
 0x2c3   :  { %1744 = vadd.xlane.f32.xlu0 %v1733_v16  ;;  %1386 = vadd.xlane.f32.xlu1 %v1374_v36  ;;  %v1359_v41 = vmul.f32 0.0078125, %v1349_v21  ;;  %v6638_v62 = vsub.f32 %v6485_v11, %v1878_v22  ;;  %v1574_v29 = vmul.f32 %v6635_v46, %v6635_v46 }
 0x2c4   :  { %v1549_v17 = vpop.xlane.xlu1 %1548 }
 0x2c5   :  { %v1559_v56 = vmul.f32 0.0078125, %v1549_v17  ;;  %v6645_v30 = vsub.f32 %v6483_v47, %v1359_v41  ;;  %v1894_v22 = vmul.f32 %v6638_v62, %v6638_v62 }
 0x2c6   :  { %v1709_v9 = vpop.xlane.xlu0 %1708 }
 0x2c7   :  { %1904 = vadd.xlane.f32.xlu0 %v1893_v63  ;;  %1746 = vadd.xlane.f32.xlu1 %v1734_v12  ;;  %v6650_v11 = vsub.f32 %v6488_v55, %v1559_v56  ;;  %v1719_v40 = vmul.f32 0.0078125, %v1709_v9  ;;  %v1375_v47 = vmul.f32 %v6645_v30, %v6645_v30 }
 0x2c8   :  { %v1351_v3 = vpop.xlane.xlu1 %1350 }
 0x2c9   :  { %v1360_v16 = vmul.f32 0.0078125, %v1351_v3  ;;  %v6657_v41 = vsub.f32 %v6490_v39, %v1719_v40  ;;  %v1575_v56 = vmul.f32 %v6650_v11, %v6650_v11 }
 0x2ca   :  { %v1869_v36 = vpop.xlane.xlu0 %1868 }
 0x2cb   :  { %1586 = vadd.xlane.f32.xlu0 %v1574_v29  ;;  %1906 = vadd.xlane.f32.xlu1 %v1894_v22  ;;  %v1879_v21 = vmul.f32 0.0078125, %v1869_v36  ;;  %v6660_v63 = vsub.f32 %v6496_v44, %v1360_v16  ;;  %v1735_v44 = vmul.f32 %v6657_v41, %v6657_v41 }
 0x2cc   :  { %v1711_v17 = vpop.xlane.xlu1 %1710 }
 0x2cd   :  { %v1720_v55 = vmul.f32 0.0078125, %v1711_v17  ;;  %v6665_v9 = vsub.f32 %v6492_v43, %v1879_v21  ;;  %v1376_v40 = vmul.f32 %v6660_v63, %v6660_v63 }
 0x2ce   :  { %v1551_v12 = vpop.xlane.xlu0 %1550 }
 0x2cf   :  { %1388 = vadd.xlane.f32.xlu0 %v1375_v47  ;;  %1588 = vadd.xlane.f32.xlu1 %v1575_v56  ;;  %v1560_v3 = vmul.f32 0.0078125, %v1551_v12  ;;  %v6668_v22 = vsub.f32 %v6501_v5, %v1720_v55  ;;  %v1895_v21 = vmul.f32 %v6665_v9, %v6665_v9 }
 0x2d0   :  { %v1871_v29 = vpop.xlane.xlu1 %1870 }
 0x2d1   :  { %v1880_v39 = vmul.f32 0.0078125, %v1871_v29  ;;  %v6675_v36 = vsub.f32 %v6498_v26, %v1560_v3  ;;  %v1736_v55 = vmul.f32 %v6668_v22, %v6668_v22 }
 0x2d2   :  { %v1353_v16 = vpop.xlane.xlu0 %1352 }
 0x2d3   :  { %1748 = vadd.xlane.f32.xlu0 %v1735_v44  ;;  %1390 = vadd.xlane.f32.xlu1 %v1376_v40  ;;  %v6680_v5 = vsub.f32 %v6505_v38, %v1880_v39  ;;  %v1361_v17 = vmul.f32 0.0078125, %v1353_v16  ;;  %v1576_v12 = vmul.f32 %v6675_v36, %v6675_v36 }
 0x2d4   :  { %v1553_v43 = vpop.xlane.xlu1 %1552 }
 0x2d5   :  { %v1561_v47 = vmul.f32 0.0078125, %v1553_v43  ;;  %v6687_v26 = vsub.f32 %v6503_v51, %v1361_v17  ;;  %v1896_v38 = vmul.f32 %v6680_v5, %v6680_v5 }
 0x2d6   :  { %v1713_v56 = vpop.xlane.xlu0 %1712 }
 0x2d7   :  { %1908 = vadd.xlane.f32.xlu0 %v1895_v21  ;;  %1750 = vadd.xlane.f32.xlu1 %v1736_v55  ;;  %v6690_v3 = vsub.f32 %v6508_v34, %v1561_v47  ;;  %v1721_v29 = vmul.f32 0.0078125, %v1713_v56  ;;  %v1377_v16 = vmul.f32 %v6687_v26, %v6687_v26 }
 0x2d9   :  { %v6695_v44 = vsub.f32 %v6510_v35, %v1721_v29  ;;  %v1577_v51 = vmul.f32 %v6690_v3, %v6690_v3 }
 0x2da   :  { %v1873_v39 = vpop.xlane.xlu0 %1872 }
 0x2db   :  { %1590 = vadd.xlane.f32.xlu0 %v1576_v12  ;;  %1910 = vadd.xlane.f32.xlu1 %v1896_v38  ;;  %v1881_v40 = vmul.f32 0.0078125, %v1873_v39  ;;  %v1737_v43 = vmul.f32 %v6695_v44, %v6695_v44 }
 0x2dd   :  { %v6702_v34 = vsub.f32 %v6512_v14, %v1881_v40 }
 0x2df   :  { %1392 = vadd.xlane.f32.xlu0 %v1377_v16  ;;  %1592 = vadd.xlane.f32.xlu1 %v1577_v51  ;;  %8196 = vst [vmem:[#allocation16_spill] sm:$0xff] %v6702_v34  ;;  %v1897_v35 = vmul.f32 %v6702_v34, %v6702_v34 }
 0x2e3   :  { %1752 = vadd.xlane.f32.xlu0 %v1737_v43 }
 0x2e7   :  { %1912 = vadd.xlane.f32.xlu0 %v1897_v35 }
 0x32d   :  { %v1379_v21 = vpop.xlane.xlu1 %1378 }
 0x32e   :  { %v1394_v17 = vmul.f32 0.0078125, %v1379_v21  ;;  %v5184_v21 = vld [vmem:[%s8012_s3] sm:$0xff] }
 0x330   :  { %v1402_v47 = vadd.f32 1e-05, %v1394_v17 }
 0x331   :  { %v1739_v55 = vpop.xlane.xlu1 %1738 }
 0x332   :  { %5056 = vrsqrt.f32 %v1402_v47  ;;  %v1754_v56 = vmul.f32 0.0078125, %v1739_v55 }
 0x334   :  { %v1579_v12 = vpop.xlane.xlu0 %1578  ;;  %v1762_v29 = vadd.f32 1e-05, %v1754_v56 }
 0x335   :  { %v1594_v38 = vmul.f32 0.0078125, %v1579_v12 }
 0x336   :  { %5058 = vrsqrt.f32 %v1762_v29 }
 0x337   :  { %v1602_v14 = vadd.f32 1e-05, %v1594_v38 }
 0x338   :  { %v1899_v39 = vpop.xlane.xlu1 %1898 }
 0x339   :  { %5060 = vrsqrt.f32 %v1602_v14  ;;  %v1914_v40 = vmul.f32 0.0078125, %v1899_v39 }
 0x33b   :  { %v1922_v16 = vadd.f32 1e-05, %v1914_v40 }
 0x33c   :  { %v1381_v51 = vpop.xlane.xlu0 %1380  ;;  %v1581_v43 = vpop.xlane.xlu1 %1580 }
 0x33d   :  { %v5057_v28 = vpop.eup %5056  ;;  %5062 = vrsqrt.f32 %v1922_v16  ;;  %v1395_v35 = vmul.f32 0.0078125, %v1381_v51  ;;  %v1595_v20 = vmul.f32 0.0078125, %v1581_v43 }
 0x33e   :  { %v1418_v17 = vmul.f32 %v5184_v21, %v5057_v28 }
 0x33f   :  { %v1403_v47 = vadd.f32 1e-05, %v1395_v35  ;;  %v1603_v55 = vadd.f32 1e-05, %v1595_v20 }
 0x340   :  { %v1741_v56 = vpop.xlane.xlu0 %1740  ;;  %v1383_v12 = vpop.xlane.xlu1 %1382  ;;  %1428 = vperm.xlu1 %4698, %v1418_v17  }
 0x341   :  { %v5059_v29 = vpop.eup %5058  ;;  %5064 = vrsqrt.f32 %v1403_v47  ;;  %v1755_v38 = vmul.f32 0.0078125, %v1741_v56  ;;  %v1396_v14 = vmul.f32 0.0078125, %v1383_v12 }
 0x342   :  { %5066 = vrsqrt.f32 %v1603_v55  ;;  %v1778_v39 = vmul.f32 %v5184_v21, %v5059_v29 }
 0x343   :  { %v5061_v40 = vpop.eup %5060  ;;  %v1763_v16 = vadd.f32 1e-05, %v1755_v38  ;;  %v1404_v51 = vadd.f32 1e-05, %v1396_v14 }
 0x344   :  { %v1901_v43 = vpop.xlane.xlu0 %1900  ;;  %v1743_v60 = vpop.xlane.xlu1 %1742  ;;  %1788 = vperm.xlu1 %4698, %v1778_v39   ;;  %v1618_v45 = vmul.f32 %v5184_v21, %v5061_v40 }
 0x345   :  { %5068 = vrsqrt.f32 %v1763_v16  ;;  %v1915_v28 = vmul.f32 0.0078125, %v1901_v43  ;;  %v1756_v35 = vmul.f32 0.0078125, %v1743_v60 }
 0x346   :  { %5070 = vrsqrt.f32 %v1404_v51  ;;  %1628 = vperm.xlu0 %4699, %v1618_v45   ;;  %v5185_v45 = vld [vmem:[%s8012_s3 + $0x8] sm:$0xff] }
 0x347   :  { %v5063_v20 = vpop.eup %5062  ;;  %v1923_v17 = vadd.f32 1e-05, %v1915_v28  ;;  %v1764_v59 = vadd.f32 1e-05, %v1756_v35 }
 0x348   :  { %v1583_v47 = vpop.xlane.xlu0 %1582  ;;  %v1903_v56 = vpop.xlane.xlu1 %1902  ;;  %v1938_v12 = vmul.f32 %v5184_v21, %v5063_v20 }
 0x349   :  { %5072 = vrsqrt.f32 %v1923_v17  ;;  %v1596_v55 = vmul.f32 0.0078125, %v1583_v47  ;;  %v1916_v29 = vmul.f32 0.0078125, %v1903_v56 }
 0x34a   :  { %5074 = vrsqrt.f32 %v1764_v59  ;;  %1948 = vperm.xlu1 %4698, %v1938_v12   ;;  %v5186_v12 = vld [vmem:[%s8012_s3 + $0x10] sm:$0xff] }
 0x34b   :  { %v5065_v38 = vpop.eup %5064  ;;  %v1604_v14 = vadd.f32 1e-05, %v1596_v55  ;;  %v1924_v40 = vadd.f32 1e-05, %v1916_v29 }
 0x34c   :  { %v5067_v39 = vpop.eup %5066  ;;  %v1385_v16 = vpop.xlane.xlu0 %1384  ;;  %v1419_v60 = vmul.f32 %v5185_v45, %v5065_v38 }
 0x34d   :  { %v1585_v43 = vpop.xlane.xlu1 %1584  ;;  %5076 = vrsqrt.f32 %v1604_v14  ;;  %v1397_v51 = vmul.f32 0.0078125, %v1385_v16  ;;  %v1619_v28 = vmul.f32 %v5185_v45, %v5067_v39 }
 0x34e   :  { %1433 = vperm.xlu0 %4699, %v1419_v60   ;;  %5078 = vrsqrt.f32 %v1924_v40  ;;  %v1597_v14 = vmul.f32 0.0078125, %v1585_v43 }
 0x34f   :  { %v5069_v21 = vpop.eup %5068  ;;  %1633 = vperm.xlu1 %4698, %v1619_v28   ;;  %v1405_v59 = vadd.f32 1e-05, %v1397_v51 }
 0x350   :  { %v5071_v35 = vpop.eup %5070  ;;  %v1745_v20 = vpop.xlane.xlu0 %1744  ;;  %v1779_v47 = vmul.f32 %v5185_v45, %v5069_v21  ;;  %v1605_v50 = vadd.f32 1e-05, %v1597_v14 }
 0x351   :  { %v1387_v17 = vpop.xlane.xlu1 %1386  ;;  %v1757_v56 = vmul.f32 0.0078125, %v1745_v20  ;;  %v1420_v55 = vmul.f32 %v5186_v12, %v5071_v35  ;;  %5080 = vrsqrt.f32 %v1405_v59 }
 0x352   :  { %1793 = vperm.xlu0 %4699, %v1779_v47   ;;  %v1398_v35 = vmul.f32 0.0078125, %v1387_v17 }
 0x353   :  { %v5073_v29 = vpop.eup %5072  ;;  %1438 = vperm.xlu1 %4698, %v1420_v55   ;;  %v1765_v39 = vadd.f32 1e-05, %v1757_v56 }
 0x354   :  { %v5075_v38 = vpop.eup %5074  ;;  %v1905_v16 = vpop.xlane.xlu0 %1904  ;;  %v1939_v40 = vmul.f32 %v5185_v45, %v5073_v29  ;;  %v1406_v45 = vadd.f32 1e-05, %v1398_v35 }
 0x355   :  { %v1747_v60 = vpop.xlane.xlu1 %1746  ;;  %v1917_v51 = vmul.f32 0.0078125, %v1905_v16  ;;  %v1780_v57 = vmul.f32 %v5186_v12, %v5075_v38  ;;  %5082 = vrsqrt.f32 %v1765_v39 }
 0x356   :  { %v1758_v28 = vmul.f32 0.0078125, %v1747_v60  ;;  %1953 = vperm.xlu0 %4699, %v1939_v40   ;;  %v5187_v60 = vld [vmem:[%s8012_s3 + $0x18] sm:$0xff] }
 0x357   :  { %v5077_v21 = vpop.eup %5076  ;;  %v1925_v20 = vadd.f32 1e-05, %v1917_v51  ;;  %1798 = vperm.xlu1 %4698, %v1780_v57  }
 0x358   :  { %v1766_v49 = vadd.f32 1e-05, %v1758_v28  ;;  %v1587_v47 = vpop.xlane.xlu0 %1586  ;;  %v1620_v7 = vmul.f32 %v5186_v12, %v5077_v21  ;;  %v5079_v43 = vpop.eup %5078 }
 0x359   :  { %v1907_v55 = vpop.xlane.xlu1 %1906  ;;  %5084 = vrsqrt.f32 %v1925_v20  ;;  %v1598_v59 = vmul.f32 0.0078125, %v1587_v47  ;;  %v1940_v38 = vmul.f32 %v5186_v12, %v5079_v43 }
 0x35a   :  { %5086 = vrsqrt.f32 %v1766_v49  ;;  %v1918_v14 = vmul.f32 0.0078125, %v1907_v55 }
 0x35b   :  { %1638 = vperm.xlu1 %4698, %v1620_v7   ;;  %5088 = vrsqrt.f32 %v1605_v50  ;;  %v5081_v16 = vpop.eup %5080  ;;  %v1606_v57 = vadd.f32 1e-05, %v1598_v59 }
 0x35c   :  { %v1389_v56 = vpop.xlane.xlu0 %1388  ;;  %5090 = vrsqrt.f32 %v1406_v45  ;;  %v1421_v40 = vmul.f32 %v5187_v60, %v5081_v16  ;;  %v1926_v50 = vadd.f32 1e-05, %v1918_v14 }
 0x35d   :  { %v1589_v29 = vpop.xlane.xlu1 %1588  ;;  %5092 = vrsqrt.f32 %v1606_v57  ;;  %v1399_v51 = vmul.f32 0.0078125, %v1389_v56  ;;  %v5188_v56 = vld [vmem:[%s8012_s3 + $0x20] sm:$0xff] }
 0x35e   :  { %5094 = vrsqrt.f32 %v1926_v50 }
 0x35f   :  { %1958 = vperm.xlu1 %4698, %v1940_v38   ;;  %v5083_v49 = vpop.eup %5082  ;;  %v1407_v38 = vadd.f32 1e-05, %v1399_v51 }
 0x360   :  { %v1749_v39 = vpop.xlane.xlu0 %1748  ;;  %v1781_v55 = vmul.f32 %v5187_v60, %v5083_v49 }
 0x361   :  { %v1391_v17 = vpop.xlane.xlu1 %1390  ;;  %v1759_v16 = vmul.f32 0.0078125, %v1749_v39 }
 0x363   :  { %v5085_v7 = vpop.eup %5084  ;;  %1443 = vperm.xlu1 %4698, %v1421_v40  }
 0x364   :  { %v1909_v28 = vpop.xlane.xlu0 %1908  ;;  %v1941_v21 = vmul.f32 %v5187_v60, %v5085_v7  ;;  %v5087_v20 = vpop.eup %5086  ;;  %v1599_v7 = vmul.f32 0.0078125, %v1589_v29 }
 0x365   :  { %v1751_v12 = vpop.xlane.xlu1 %1750  ;;  %v1919_v35 = vmul.f32 0.0078125, %v1909_v28  ;;  %v5089_v43 = vpop.eup %5088  ;;  %v1782_v57 = vmul.f32 %v5188_v56, %v5087_v20  ;;  %v1767_v28 = vadd.f32 1e-05, %v1759_v16  ;;  %v1400_v20 = vmul.f32 0.0078125, %v1391_v17 }
 0x366   :  { %v1760_v47 = vmul.f32 0.0078125, %v1751_v12  ;;  %1963 = vperm.xlu0 %4699, %v1941_v21   ;;  %v1621_v14 = vmul.f32 %v5187_v60, %v5089_v43  ;;  %v5091_v40 = vpop.eup %5090 }
 0x367   :  { %v1927_v45 = vadd.f32 1e-05, %v1919_v35  ;;  %1803 = vperm.xlu1 %4698, %v1781_v55   ;;  %v1422_v39 = vmul.f32 %v5188_v56, %v5091_v40  ;;  %v5093_v21 = vpop.eup %5092  ;;  %v1607_v35 = vadd.f32 1e-05, %v1599_v7 }
 0x368   :  { %v1768_v59 = vadd.f32 1e-05, %v1760_v47  ;;  %v1591_v49 = vpop.xlane.xlu0 %1590  ;;  %v1622_v43 = vmul.f32 %v5188_v56, %v5093_v21 }
 0x369   :  { %v1911_v34 = vpop.xlane.xlu1 %1910  ;;  %5096 = vrsqrt.f32 %v1927_v45  ;;  %v5095_v45 = vpop.eup %5094 }
 0x36a   :  { %1808 = vperm.xlu0 %4699, %v1782_v57   ;;  %5098 = vrsqrt.f32 %v1768_v59  ;;  %v1920_v12 = vmul.f32 0.0078125, %v1911_v34  ;;  %v1408_v59 = vadd.f32 1e-05, %v1400_v20  ;;  %v6726_v34 = vld [vmem:[%s8012_s3 + $0x28] sm:$0xff]  ;;  %v1942_v17 = vmul.f32 %v5188_v56, %v5095_v45 }
 0x36b   :  { %1643 = vperm.xlu1 %4698, %v1621_v14   ;;  %5100 = vrsqrt.f32 %v1407_v38  ;;  %v1600_v38 = vmul.f32 0.0078125, %v1591_v49  ;;  %v6732_v49 = vld [vmem:[%s8012_s3 + $0x30] sm:$0xff] }
 0x36c   :  { %5102 = vrsqrt.f32 %v1767_v28  ;;  %v1928_v55 = vadd.f32 1e-05, %v1920_v12  ;;  %v1393_v60 = vpop.xlane.xlu0 %1392 }
 0x36d   :  { %v1593_v50 = vpop.xlane.xlu1 %1592  ;;  %v1608_v7 = vadd.f32 1e-05, %v1600_v38  ;;  %v1401_v28 = vmul.f32 0.0078125, %v1393_v60 }
 0x36e   :  { %v1601_v51 = vmul.f32 0.0078125, %v1593_v50 }
 0x36f   :  { %1448 = vperm.xlu1 %4698, %v1422_v39   ;;  %v1409_v39 = vadd.f32 1e-05, %v1401_v28 }
 0x370   :  { %v1609_v47 = vadd.f32 1e-05, %v1601_v51  ;;  %v1753_v40 = vpop.xlane.xlu0 %1752 }
 0x371   :  { %v1761_v21 = vmul.f32 0.0078125, %v1753_v40 }
 0x372   :  { %5104 = vrsqrt.f32 %v1609_v47 }
 0x373   :  { %v5097_v29 = vpop.eup %5096  ;;  %5106 = vrsqrt.f32 %v1607_v35  ;;  %1648 = vperm.xlu1 %4698, %v1622_v43   ;;  %v1769_v45 = vadd.f32 1e-05, %v1761_v21 }
 0x374   :  { %5108 = vrsqrt.f32 %v1928_v55  ;;  %v1943_v16 = vmul.f32 %v6726_v34, %v5097_v29  ;;  %v5099_v57 = vpop.eup %5098  ;;  %v1913_v47 = vpop.xlane.xlu0 %1912  ;;  %v6740_v55 = vld [vmem:[%s8012_s3 + $0x38] sm:$0xff] }
 0x375   :  { %v5101_v14 = vpop.eup %5100  ;;  %5110 = vrsqrt.f32 %v1408_v59  ;;  %v1784_v12 = vmul.f32 %v6732_v49, %v5099_v57  ;;  %v1921_v29 = vmul.f32 0.0078125, %v1913_v47 }
 0x376   :  { %1973 = vperm.xlu0 %4699, %v1943_v16   ;;  %v1423_v50 = vmul.f32 %v6726_v34, %v5101_v14  ;;  %v5103_v51 = vpop.eup %5102  ;;  %5112 = vrsqrt.f32 %v1608_v7 }
 0x377   :  { %1968 = vperm.xlu1 %4698, %v1942_v17   ;;  %v1783_v20 = vmul.f32 %v6726_v34, %v5103_v51  ;;  %5114 = vrsqrt.f32 %v1409_v39  ;;  %v1929_v57 = vadd.f32 1e-05, %v1921_v29 }
 0x378   :  { %5116 = vrsqrt.f32 %v1769_v45 }
 0x379   :  { %5118 = vrsqrt.f32 %v1929_v57 }
 0x37a   :  { %1818 = vperm.xlu0 %4699, %v1784_v12  }
 0x37b   :  { %1453 = vperm.xlu1 %4698, %v1423_v50  }
 0x37c   :  { %v5105_v56 = vpop.eup %5104 }
 0x37d   :  { %v5107_v35 = vpop.eup %5106  ;;  %v1625_v60 = vmul.f32 %v6740_v55, %v5105_v56 }
 0x37e   :  { %v5109_v43 = vpop.eup %5108  ;;  %v1623_v59 = vmul.f32 %v6726_v34, %v5107_v35 }
 0x37f   :  { %1813 = vperm.xlu1 %4698, %v1783_v20   ;;  %1663 = vperm.xlu0 %4699, %v1625_v60   ;;  %v1944_v38 = vmul.f32 %v6732_v49, %v5109_v43  ;;  %v5111_v16 = vpop.eup %5110 }
 0x380   :  { %v1424_v17 = vmul.f32 %v6732_v49, %v5111_v16  ;;  %v5113_v14 = vpop.eup %5112 }
 0x381   :  { %v1624_v40 = vmul.f32 %v6732_v49, %v5113_v14  ;;  %v5115_v7 = vpop.eup %5114 }
 0x382   :  { %v1425_v28 = vmul.f32 %v6740_v55, %v5115_v7  ;;  %v5117_v12 = vpop.eup %5116 }
 0x383   :  { %1653 = vperm.xlu1 %4698, %v1623_v59   ;;  %1978 = vperm.xlu0 %4699, %v1944_v38   ;;  %v1785_v50 = vmul.f32 %v6740_v55, %v5117_v12  ;;  %v5119_v51 = vpop.eup %5118 }
 0x384   :  { %v1945_v56 = vmul.f32 %v6740_v55, %v5119_v51 }
 0x387   :  { %1458 = vperm.xlu1 %4698, %v1424_v17  }
 0x38b   :  { %1658 = vperm.xlu1 %4698, %v1624_v40  }
 0x38f   :  { %1463 = vperm.xlu1 %4698, %v1425_v28  }
 0x393   :  { %1823 = vperm.xlu1 %4698, %v1785_v50  }
 0x397   :  { %1983 = vperm.xlu1 %4698, %v1945_v56  }
 0x3bf   :  { %v1429_v39 = vpop.permute.xlu1 %1428 }
 0x3c0   :  { %v1466_v47 = vmul.f32 %v1429_v39, %v6549_v13 }
 0x3c2   :  { %v1514_v45 = vadd.f32 %v6532_v15, %v1466_v47 }
 0x3c3   :  { %v1789_v21 = vpop.permute.xlu1 %1788 }
 0x3c4   :  { %v1826_v43 = vmul.f32 %v1789_v21, %v6552_v27  ;;  %v1522_v13 = vmul.f32 0.2, %v1514_v45 }
 0x3c5   :  { %v1629_v35 = vpop.permute.xlu0 %1628 }
 0x3c6   :  { %v1666_v20 = vmul.f32 %v1629_v35, %v6557_v61  ;;  %v1834_v57 = vadd.f32 %v1826_v43, %v6532_v15  ;;  %v6763_v39 = vmax.f32 %v1514_v45, %v1522_v13 }
 0x3c8   :  { %v1674_v29 = vadd.f32 %v1666_v20, %v6532_v15  ;;  %v1842_v51 = vmul.f32 0.2, %v1834_v57 }
 0x3c9   :  { %v1949_v60 = vpop.permute.xlu1 %1948 }
 0x3ca   :  { %v1986_v17 = vmul.f32 %v1949_v60, %v6564_v6  ;;  %v1682_v40 = vmul.f32 0.2, %v1674_v29 }
 0x3cc   :  { %v6768_v21 = vmax.f32 %v1674_v29, %v1682_v40 }
 0x3cd   :  { %v1434_v59 = vpop.permute.xlu0 %1433 }
 0x3ce   :  { %v1467_v38 = vmul.f32 %v1434_v59, %v6572_v8  ;;  %v1634_v16 = vpop.permute.xlu1 %1633  ;;  %v1994_v8 = vadd.f32 %v1986_v17, %v6532_v15  ;;  %v6777_v15 = vmax.f32 %v1834_v57, %v1842_v51 }
 0x3cf   :  { %v1667_v14 = vmul.f32 %v1634_v16, %v6567_v23 }
 0x3d0   :  { %v1515_v61 = vadd.f32 %v6534_v54, %v1467_v38  ;;  %v2002_v45 = vmul.f32 0.2, %v1994_v8 }
 0x3d1   :  { %v1675_v27 = vadd.f32 %v1667_v14, %v6534_v54  ;;  %v1794_v7 = vpop.permute.xlu0 %1793 }
 0x3d2   :  { %v1523_v28 = vmul.f32 0.2, %v1515_v61  ;;  %v1827_v12 = vmul.f32 %v1794_v7, %v6575_v18  ;;  %v1439_v50 = vpop.permute.xlu1 %1438 }
 0x3d3   :  { %v1683_v56 = vmul.f32 0.2, %v1675_v27  ;;  %v1468_v7 = vmul.f32 %v1439_v50, %v6578_v32 }
 0x3d4   :  { %v6765_v6 = vmax.f32 %v1515_v61, %v1523_v28  ;;  %v1835_v23 = vadd.f32 %v1827_v12, %v6534_v54  ;;  %v6798_v61 = vmax.f32 %v1994_v8, %v2002_v45 }
 0x3d5   :  { %v6770_v35 = vmax.f32 %v1675_v27, %v1683_v56  ;;  %v1954_v47 = vpop.permute.xlu0 %1953  ;;  %v1516_v32 = vadd.f32 %v6536_v37, %v1468_v7 }
 0x3d6   :  { %v1843_v20 = vmul.f32 0.2, %v1835_v23  ;;  %v1987_v60 = vmul.f32 %v1954_v47, %v6587_v0  ;;  %v1799_v18 = vpop.permute.xlu1 %1798  ;;  %v6775_v43 = vpack.i.bf16 %v6765_v6, %v6763_v39 }
 0x3d7   :  { %v1828_v59 = vmul.f32 %v1799_v18, %v6590_v19  ;;  %v6782_v29 = vpack.i.bf16 %v6770_v35, %v6768_v21 }
 0x3d8   :  { %v6784_v38 = vmax.f32 %v1835_v23, %v1843_v20  ;;  %v1995_v16 = vadd.f32 %v1987_v60, %v6534_v54  ;;  %4701 = vrot.lane.b32.xlu0 %v6775_v43, %s5306_s2 }
 0x3d9   :  { %v1836_v0 = vadd.f32 %v1828_v59, %v6536_v37  ;;  %4726 = vrot.lane.b32.xlu1 %v6782_v29, %s5307_s25 }
 0x3da   :  { %v2003_v57 = vmul.f32 0.2, %v1995_v16  ;;  %v1639_v17 = vpop.permute.xlu1 %1638  ;;  %v6794_v19 = vpack.i.bf16 %v6784_v38, %v6777_v15 }
 0x3db   :  { %v1844_v14 = vmul.f32 0.2, %v1836_v0  ;;  %v1668_v60 = vmul.f32 %v1639_v17, %v6597_v42 }
 0x3dc   :  { %v6800_v54 = vmax.f32 %v1995_v16, %v2003_v57  ;;  %4706 = vrot.lane.b32.xlu0 %v6794_v19, %s5306_s2 }
 0x3dd   :  { %v6809_v28 = vmax.f32 %v1836_v0, %v1844_v14 }
 0x3de   :  { %v1959_v12 = vpop.permute.xlu1 %1958  ;;  %v6813_v51 = vpack.i.bf16 %v6800_v54, %v6798_v61 }
 0x3df   :  { %v1988_v56 = vmul.f32 %v1959_v12, %v6600_v1  ;;  %v4735_v23 = vpack.i.bf16 %v6798_v61, %v6809_v28  ;;  %v1524_v1 = vmul.f32 0.2, %v1516_v32  ;;  %v1676_v12 = vadd.f32 %v1668_v60, %v6536_v37 }
 0x3e0   :  { %4711 = vrot.lane.b32.xlu0 %v6775_v43, %s5307_s25  ;;  %4731 = vrot.lane.b32.xlu1 %v6813_v51, %s5307_s25 }
 0x3e1   :  { %v1996_v20 = vadd.f32 %v1988_v56, %v6536_v37  ;;  %v6837_v7 = vmax.f32 %v1516_v32, %v1524_v1  ;;  %v1684_v32 = vmul.f32 0.2, %v1676_v12 }
 0x3e2   :  { %v1444_v50 = vpop.permute.xlu1 %1443 }
 0x3e3   :  { %v1469_v47 = vmul.f32 %v1444_v50, %v6605_v53  ;;  %v2004_v53 = vmul.f32 0.2, %v1996_v20 }
 0x3e4   :  { %4716 = vrot.lane.b32.xlu0 %v6794_v19, %s5307_s25  ;;  %4736 = vrot.lane.b32.xlu1 %v4735_v23, %s5306_s2 }
 0x3e5   :  { %v1517_v18 = vadd.f32 %v6538_v48, %v1469_v47  ;;  %v1964_v45 = vpop.permute.xlu0 %1963  ;;  %v6848_v47 = vmax.f32 %v1996_v20, %v2004_v53 }
 0x3e6   :  { %v1989_v59 = vmul.f32 %v1964_v45, %v6627_v10  ;;  %v1804_v16 = vpop.permute.xlu1 %1803 }
 0x3e7   :  { %v1525_v0 = vmul.f32 0.2, %v1517_v18  ;;  %v1829_v57 = vmul.f32 %v1804_v16, %v6615_v33 }
 0x3e8   :  { %v1997_v14 = vadd.f32 %v1989_v59, %v6538_v48  ;;  %4721 = vrot.lane.b32.xlu0 %v6782_v29, %s5306_s2 }
 0x3e9   :  { %v6840_v42 = vmax.f32 %v1517_v18, %v1525_v0  ;;  %v1837_v17 = vadd.f32 %v1829_v57, %v6538_v48  ;;  %v1809_v0 = vpop.permute.xlu0 %1808 }
 0x3ea   :  { %v2005_v56 = vmul.f32 0.2, %v1997_v14  ;;  %v1644_v10 = vpop.permute.xlu1 %1643 }
 0x3eb   :  { %v1845_v50 = vmul.f32 0.2, %v1837_v17  ;;  %v1669_v23 = vmul.f32 %v1644_v10, %v6608_v58  ;;  %v6846_v33 = vpack.i.bf16 %v6840_v42, %v6837_v7 }
 0x3ec   :  { %v6850_v45 = vmax.f32 %v1997_v14, %v2005_v56 }
 0x3ed   :  { %v6852_v1 = vmax.f32 %v1837_v17, %v1845_v50  ;;  %v1677_v37 = vadd.f32 %v1669_v23, %v6538_v48  ;;  %4741 = vrot.lane.b32.xlu1 %v6846_v33, %s5306_s2  ;;  %v6869_v48 = vmax.f32 %v1676_v12, %v1684_v32 }
 0x3ee   :  { %v1449_v58 = vpop.permute.xlu1 %1448  ;;  %v6861_v18 = vpack.i.bf16 %v6850_v45, %v6848_v47 }
 0x3ef   :  { %v1685_v20 = vmul.f32 0.2, %v1677_v37  ;;  %v4745_v59 = vpack.i.bf16 %v6852_v1, %v6800_v54  ;;  %v6867_v16 = vpack.i.bf16 %v6852_v1, %v6809_v28  ;;  %v1470_v50 = vmul.f32 %v1449_v58, %v6620_v31 }
 0x3f1   :  { %v6871_v57 = vmax.f32 %v1677_v37, %v1685_v20  ;;  %4746 = vrot.lane.b32.xlu0 %v4745_v59, %s5306_s2  ;;  %v1830_v20 = vmul.f32 %v1809_v0, %v6630_v52  ;;  %v1518_v60 = vadd.f32 %v6542_v25, %v1470_v50 }
 0x3f2   :  { %v1649_v17 = vpop.permute.xlu1 %1648 }
 0x3f3   :  { %v6880_v56 = vpack.i.bf16 %v6871_v57, %v6869_v48  ;;  %v1670_v0 = vmul.f32 %v1649_v17, %v6635_v46  ;;  %v1526_v50 = vmul.f32 0.2, %v1518_v60 }
 0x3f5   :  { %4751 = vrot.lane.b32.xlu0 %v6846_v33, %s5307_s25  ;;  %4761 = vrot.lane.b32.xlu1 %v6880_v56, %s5306_s2  ;;  %v1974_v10 = vpop.permute.xlu0 %1973  ;;  %v1678_v46 = vadd.f32 %v1670_v0, %v6542_v25 }
 0x3f6   :  { %v1991_v23 = vmul.f32 %v1974_v10, %v6665_v9  ;;  %v1969_v32 = vpop.permute.xlu1 %1968 }
 0x3f7   :  { %v1990_v37 = vmul.f32 %v1969_v32, %v6638_v62  ;;  %v1838_v62 = vadd.f32 %v1830_v20, %v6542_v25 }
 0x3f8   :  { %v1999_v59 = vadd.f32 %v1991_v23, %v6540_v24 }
 0x3f9   :  { %v1998_v14 = vadd.f32 %v1990_v37, %v6542_v25  ;;  %4756 = vrot.lane.b32.xlu0 %v6867_v16, %s5307_s25  ;;  %4766 = vrot.lane.b32.xlu1 %v6861_v18, %s5306_s2  ;;  %v1819_v32 = vpop.permute.xlu0 %1818 }
 0x3fa   :  { %v2007_v31 = vmul.f32 0.2, %v1999_v59  ;;  %v1454_v58 = vpop.permute.xlu1 %1453 }
 0x3fb   :  { %v2006_v9 = vmul.f32 0.2, %v1998_v14  ;;  %v1471_v10 = vmul.f32 %v1454_v58, %v6645_v30  ;;  %v1846_v30 = vmul.f32 0.2, %v1838_v62 }
 0x3fc   :  { %v6901_v52 = vmax.f32 %v1999_v59, %v2007_v31  ;;  %v6922_v31 = vmax.f32 %v1518_v60, %v1526_v50 }
 0x3fd   :  { %v6904_v23 = vmax.f32 %v1998_v14, %v2006_v9  ;;  %v1519_v37 = vadd.f32 %v6540_v24, %v1471_v10  ;;  %4771 = vrot.lane.b32.xlu1 %v6880_v56, %s5307_s25 }
 0x3fe   :  { %v1814_v53 = vpop.permute.xlu1 %1813 }
 0x3ff   :  { %v1527_v27 = vmul.f32 0.2, %v1519_v37  ;;  %v1831_v12 = vmul.f32 %v1814_v53, %v6657_v41  ;;  %v6912_v20 = vpack.i.bf16 %v6901_v52, %v6904_v23  ;;  %v1664_v53 = vpop.permute.xlu0 %1663 }
 0x400   :  { %v1673_v60 = vmul.f32 %v1664_v53, %v6690_v3 }
 0x401   :  { %v6915_v14 = vmax.f32 %v1519_v37, %v1527_v27  ;;  %v1839_v17 = vadd.f32 %v1831_v12, %v6540_v24  ;;  %4776 = vrot.lane.b32.xlu1 %v6861_v18, %s5307_s25  ;;  %v6929_v27 = vmax.f32 %v1838_v62, %v1846_v30  ;;  %v1686_v12 = vmul.f32 0.2, %v1678_v46 }
 0x402   :  { %v1654_v41 = vpop.permute.xlu1 %1653 }
 0x403   :  { %v1847_v58 = vmul.f32 0.2, %v1839_v17  ;;  %v1671_v9 = vmul.f32 %v1654_v41, %v6650_v11  ;;  %v6927_v25 = vpack.i.bf16 %v6915_v14, %v6922_v31  ;;  %8197 = vst [vmem:[#allocation19_spill] sm:$0xff] %v6929_v27  ;;  %v6947_v30 = vmax.f32 %v1678_v46, %v1686_v12 }
 0x404   :  { %v1681_v41 = vadd.f32 %v1673_v60, %v6544_v2  ;;  %v1979_v60 = vpop.permute.xlu0 %1978 }
 0x405   :  { %v6931_v10 = vmax.f32 %v1839_v17, %v1847_v58  ;;  %v1679_v0 = vadd.f32 %v1671_v9, %v6540_v24  ;;  %4796 = vrot.lane.b32.xlu1 %v6912_v20, %s5306_s2  ;;  %4781 = vrot.lane.b32.xlu0 %v6927_v25, %s5306_s2  ;;  %v1832_v24 = vmul.f32 %v1819_v32, %v6668_v22 }
 0x406   :  { %v1459_v11 = vpop.permute.xlu1 %1458  ;;  %v1992_v22 = vmul.f32 %v1979_v60, %v6680_v5 }
 0x407   :  { %8198 = vst [vmem:[#allocation18_spill] sm:$0xff] %v6931_v10  ;;  %v1687_v50 = vmul.f32 0.2, %v1679_v0  ;;  %v6943_v62 = vpack.i.bf16 %v6931_v10, %v6929_v27  ;;  %v1472_v3 = vmul.f32 %v1459_v11, %v6660_v63 }
 0x408   :  { %v2000_v5 = vadd.f32 %v1992_v22, %v6546_v4 }
 0x409   :  { %v6949_v17 = vmax.f32 %v1679_v0, %v1687_v50  ;;  %4786 = vrot.lane.b32.xlu0 %v6943_v62, %s5306_s2  ;;  %v1520_v12 = vadd.f32 %v6546_v4, %v1472_v3  ;;  %v1689_v0 = vmul.f32 0.2, %v1681_v41 }
 0x40a   :  { %v1659_v53 = vpop.permute.xlu1 %1658 }
 0x40b   :  { %v1672_v58 = vmul.f32 %v1659_v53, %v6675_v36  ;;  %v6958_v9 = vpack.i.bf16 %v6949_v17, %v6947_v30  ;;  %v1840_v53 = vadd.f32 %v1832_v24, %v6546_v4  ;;  %v1528_v32 = vmul.f32 0.2, %v1520_v12 }
 0x40c   :  { %v6973_v59 = vmax.f32 %v1681_v41, %v1689_v0 }
 0x40d   :  { %v1680_v63 = vadd.f32 %v1672_v58, %v6546_v4  ;;  %4791 = vrot.lane.b32.xlu0 %v6958_v9, %s5306_s2  ;;  %v1848_v8 = vmul.f32 0.2, %v1840_v53  ;;  %v6983_v24 = vmax.f32 %v1520_v12, %v1528_v32  ;;  %v2008_v4 = vmul.f32 0.2, %v2000_v5 }
 0x40e   :  { %v1464_v11 = vpop.permute.xlu1 %1463 }
 0x40f   :  { %v1688_v36 = vmul.f32 0.2, %v1680_v63  ;;  %v1473_v50 = vmul.f32 %v1464_v11, %v6687_v26  ;;  %8200 = vst [vmem:[#allocation34_spill] sm:$0xff] %v6983_v24  ;;  %v8202_v11 = vld [vmem:[#allocation16_spill] sm:$0xff] }
 0x411   :  { %v6970_v37 = vmax.f32 %v1680_v63, %v1688_v36  ;;  %v1521_v3 = vadd.f32 %v6544_v2, %v1473_v50  ;;  %v8207_v50 = vld [vmem:[#allocation24_spill] sm:$0xff] }
 0x412   :  { %v1824_v58 = vpop.permute.xlu1 %1823  ;;  %vm8208_vm12 = vcmp.lt.s32.totalorder %v8207_v50, 2 }
 0x413   :  { %8199 = vst [vmem:[#allocation33_spill] sm:$0xff] %v6970_v37  ;;  %v1529_v46 = vmul.f32 0.2, %v1521_v3  ;;  %v1833_v40 = vmul.f32 %v1824_v58, %v6695_v44  ;;  %v6978_v13 = vpack.i.bf16 %v6973_v59, %v6970_v37  ;;  %v6995_v58 = vmax.f32 %v1840_v53, %v1848_v8  ;;  %vm8209_vm10 = vmmov %vm8208_vm12 }
 0x414   :  { %vm8212_vm14 = vmmov %vm8209_vm10 }
 0x415   :  { %v6985_v63 = vmax.f32 %v1521_v3, %v1529_v46  ;;  %v1841_v41 = vadd.f32 %v1833_v40, %v6544_v2  ;;  %8203 = vst [vmem:[#allocation16_spill] sm:$0xff] %v6995_v58  ;;  %v7008_v3 = vmax.f32 %v2000_v5, %v2008_v4  ;;  %vm8213_vm5 = vmmov %vm8209_vm10 }
 0x416   :  { %v1984_v0 = vpop.permute.xlu1 %1983  ;;  %vm8214_vm4 = vmmov %vm8213_vm5 }
 0x417   :  { %8201 = vst [vmem:[#allocation35_spill] sm:$0xff] %v6985_v63  ;;  %v1849_v60 = vmul.f32 0.2, %v1841_v41  ;;  %v1993_v44 = vmul.f32 %v1984_v0, %v8202_v11  ;;  %v6991_v36 = vpack.i.bf16 %v6985_v63, %v6983_v24  ;;  %8205 = vst [vmem:[#allocation37_spill] sm:$0xff] %v7008_v3 }
 0x418   :  { %vm8215_vm0 = vmmov %vm8214_vm4 }
 0x419   :  { %v6997_v12 = vmax.f32 %v1841_v41, %v1849_v60  ;;  %v2001_v46 = vadd.f32 %v1993_v44, %v6544_v2  ;;  %4801 = vrot.lane.b32.xlu1 %v6991_v36, %s5306_s2  ;;  %v5042_v41 = vld [vmem:[#allocation8 + $0x4] ss:$12 sps:$4 sm:$0xff]  }
 0x41a   :  { %2890 = vmatprep.mubr.bf16.mxu0 %v5042_v41  ;;  %3036 = vmatprep.mubr.bf16.mxu1 %v5042_v41 }
 0x41b   :  { %8204 = vst [vmem:[#allocation36_spill] sm:$0xff] %v6997_v12  ;;  %v2009_v40 = vmul.f32 0.2, %v2001_v46  ;;  %v7004_v22 = vpack.i.bf16 %v6997_v12, %v6995_v58 }
 0x41d   :  { %v7010_v8 = vmax.f32 %v2001_v46, %v2009_v40  ;;  %4816 = vrot.lane.b32.xlu1 %v6978_v13, %s5306_s2  ;;  %4806 = vrot.lane.b32.xlu0 %v7004_v22, %s5306_s2 }
 0x41f   :  { %8206 = vst [vmem:[#allocation38_spill] sm:$0xff] %v7010_v8  ;;  %v7018_v2 = vpack.i.bf16 %v7010_v8, %v7008_v3 }
 0x421   :  { %4811 = vrot.lane.b32.xlu0 %v6927_v25, %s5307_s25  ;;  %4821 = vrot.lane.b32.xlu1 %v7018_v2, %s5306_s2 }
 0x425   :  { %4831 = vrot.lane.b32.xlu0 %v6943_v62, %s5307_s25  ;;  %4826 = vrot.lane.b32.xlu1 %v6958_v9, %s5307_s25 }
 0x429   :  { %4841 = vrot.lane.b32.xlu0 %v6991_v36, %s5307_s25  ;;  %4836 = vrot.lane.b32.xlu1 %v6912_v20, %s5307_s25 }
 0x42d   :  { %4846 = vrot.lane.b32.xlu0 %v7004_v22, %s5307_s25  ;;  %4856 = vrot.lane.b32.xlu1 %v6978_v13, %s5307_s25 }
 0x431   :  { %4851 = vrot.lane.b32.xlu0 %v6775_v43, %s5308_s26  ;;  %4861 = vrot.lane.b32.xlu1 %v7018_v2, %s5307_s25 }
 0x435   :  { %4871 = vrot.lane.b32.xlu0 %v6794_v19, %s5308_s26  ;;  %4866 = vrot.lane.b32.xlu1 %v6782_v29, %s5308_s26 }
 0x439   :  { %4881 = vrot.lane.b32.xlu0 %v6846_v33, %s5308_s26  ;;  %4876 = vrot.lane.b32.xlu1 %v6813_v51, %s5308_s26 }
 0x43d   :  { %4891 = vrot.lane.b32.xlu0 %v6867_v16, %s5308_s26  ;;  %4886 = vrot.lane.b32.xlu1 %v6880_v56, %s5308_s26 }
 0x441   :  { %4901 = vrot.lane.b32.xlu0 %v6927_v25, %s5308_s26  ;;  %4896 = vrot.lane.b32.xlu1 %v6861_v18, %s5308_s26 }
 0x445   :  { %4911 = vrot.lane.b32.xlu0 %v6943_v62, %s5308_s26  ;;  %4906 = vrot.lane.b32.xlu1 %v6958_v9, %s5308_s26 }
 0x449   :  { %4921 = vrot.lane.b32.xlu0 %v6991_v36, %s5308_s26  ;;  %4916 = vrot.lane.b32.xlu1 %v6912_v20, %s5308_s26 }
 0x44a   :  { %v4702_v5 = vpop.permute.xlu0 %4701 }
 0x44b   :  { %v7076_v11 = vpop.permute.xlu1 %4726  ;;  %v4704_v46 = vunpack.i.h.bf16 %v4702_v5  ;;  %v4703_v40 = vunpack.i.l.bf16 %v4702_v5 }
 0x44d   :  { %4926 = vrot.lane.b32.xlu0 %v7004_v22, %s5308_s26  ;;  %4936 = vrot.lane.b32.xlu1 %v6978_v13, %s5308_s26 }
 0x44e   :  { %v4707_v0 = vpop.permute.xlu0 %4706 }
 0x44f   :  { %v4709_v58 = vunpack.i.h.bf16 %v4707_v0  ;;  %v4708_v12 = vunpack.i.l.bf16 %v4707_v0 }
 0x451   :  { %4931 = vrot.lane.b32.xlu0 %v6775_v43, %s5309_s29  ;;  %4941 = vrot.lane.b32.xlu1 %v7018_v2, %s5308_s26 }
 0x452   :  { %v7074_v60 = vpop.permute.xlu0 %4711  ;;  %v7084_v4 = vpop.permute.xlu1 %4731 }
 0x455   :  { %4951 = vrot.lane.b32.xlu0 %v6794_v19, %s5309_s29  ;;  %4946 = vrot.lane.b32.xlu1 %v6782_v29, %s5309_s29 }
 0x456   :  { %v7082_v44 = vpop.permute.xlu0 %4716  ;;  %v4737_v53 = vpop.permute.xlu1 %4736 }
 0x457   :  { %v4739_v5 = vunpack.i.h.bf16 %v4737_v53 }
 0x459   :  { %4961 = vrot.lane.b32.xlu0 %v6846_v33, %s5309_s29  ;;  %4956 = vrot.lane.b32.xlu1 %v6813_v51, %s5309_s29 }
 0x45a   :  { %v4722_v43 = vpop.permute.xlu0 %4721 }
 0x45b   :  { %v4724_v41 = vunpack.i.h.bf16 %v4722_v43  ;;  %v4723_v32 = vunpack.i.l.bf16 %v4722_v43 }
 0x45d   :  { %v2099_v19 = vsel %vm8208_vm12, %v4704_v46, %v4724_v41  ;;  %v2098_v29 = vsel %vm8209_vm10, %v4703_v40, %v4723_v32  ;;  %4971 = vrot.lane.b32.xlu0 %v6867_v16, %s5309_s29  ;;  %4966 = vrot.lane.b32.xlu1 %v6880_v56, %s5309_s29  ;;  %v2082_v56 = vsel %vm8209_vm10, %v4708_v12, %v4739_v5  ;;  %vm8211_vm12 = vmmov %vm8209_vm10 }
 0x45e   :  { %v4105_v33 = vpack.c.bf16 %v2099_v19, %v2098_v29  ;;  %v2106_v19 = vsel %vm8211_vm12, %v4739_v5, %v4703_v40  ;;  %v2091_v0 = vsel %vm8214_vm4, %v4724_v41, %v4709_v58  ;;  %vm8218_vm4 = vmmov %vm8215_vm0 }
 0x45f   :  { %v4742_v43 = vpop.permute.xlu1 %4741  ;;  %vm8222_vm10 = vmmov %vm8215_vm0 }
 0x460   :  { %4106 = vmatprep.subr.msk.bf16.mxu0 %vm5688_vm2, %v4105_v33  ;;  %v4744_v63 = vunpack.i.h.bf16 %v4742_v43  ;;  %v4743_v40 = vunpack.i.l.bf16 %v4742_v43  ;;  %vm8223_vm12 = vmmov %vm8215_vm0 }
 0x461   :  { %4981 = vrot.lane.b32.xlu0 %v6927_v25, %s5309_s29  ;;  %4976 = vrot.lane.b32.xlu1 %v6861_v18, %s5309_s29 }
 0x463   :  { %v4747_v26 = vpop.permute.xlu0 %4746 }
 0x464   :  { %v4748_v16 = vunpack.i.l.bf16 %v4747_v26  ;;  %v4749_v41 = vunpack.i.h.bf16 %v4747_v26 }
 0x465   :  { %4991 = vrot.lane.b32.xlu0 %v6943_v62, %s5309_s29  ;;  %4986 = vrot.lane.b32.xlu1 %v6958_v9, %s5309_s29  ;;  %v2090_v62 = vsel %vm8215_vm0, %v4723_v32, %v4708_v12  ;;  %v4738_v32 = vunpack.i.l.bf16 %v4737_v53 }
 0x466   :  { %v2083_v25 = vsel %vm8212_vm14, %v4709_v58, %v4748_v16  ;;  %v2107_v18 = vsel %vm8213_vm5, %v4748_v16, %v4704_v46  ;;  %v4204_v9 = vpack.c.bf16 %v2091_v0, %v2090_v62  ;;  %vm8217_vm14 = vmmov %vm8215_vm0 }
 0x467   :  { %v4108_v29 = vpack.c.bf16 %v2107_v18, %v2106_v19  ;;  %v4762_v33 = vpop.permute.xlu1 %4761  ;;  %v4201_v24 = vpack.c.bf16 %v2083_v25, %v2082_v56  ;;  %vm8221_vm5 = vmmov %vm8215_vm0  ;;  %v8277_v56 = vpack.c.bf16 %v6765_v6, %v6763_v39  ;;  %v8280_v39 = vpack.c.bf16 %v6850_v45, %v6848_v47 }
 0x468   :  { %v4764_v5 = vunpack.i.h.bf16 %v4762_v33  ;;  %v4763_v3 = vunpack.i.l.bf16 %v4762_v33  ;;  %v8284_v47 = vpack.c.bf16 %v6949_v17, %v6947_v30 }
 0x469   :  { %5001 = vrot.lane.b32.xlu0 %v6991_v36, %s5309_s29  ;;  %4109 = vmatpush1.bf16.msk.msra.mxu0 %vm5740_vm6, %v4108_v29 }
 0x46a   :  { %v2100_v58 = vsel %vm8217_vm14, %v4743_v40, %v4763_v3  ;;  %v2101_v12 = vsel %vm8218_vm4, %v4744_v63, %v4764_v5  ;;  %4996 = vrot.lane.b32.xlu1 %v6912_v20, %s5309_s29  ;;  %4202 = vmatprep.subr.msk.bf16.mxu1 %vm5755_vm7, %v4201_v24  ;;  %v2093_v18 = vsel %vm8215_vm0, %v4764_v5, %v4749_v41  ;;  %v7142_v20 = vpop.permute.xlu0 %4751  ;;  %vm8224_vm14 = vmmov %vm8215_vm0 }
 0x46b   :  { %v4767_v16 = vpop.permute.xlu1 %4766  ;;  %v4111_v36 = vpack.c.bf16 %v2101_v12, %v2100_v58  ;;  %4205 = vmatpush1.bf16.msk.msra.mxu1 %vm5766_vm8, %v4204_v9  ;;  %v2092_v0 = vsel %vm8221_vm5, %v4763_v3, %v4738_v32  ;;  %vm8225_vm4 = vmmov %vm8215_vm0 }
 0x46c   :  { %v4769_v19 = vunpack.i.h.bf16 %v4767_v16  ;;  %v4768_v25 = vunpack.i.l.bf16 %v4767_v16  ;;  %v4210_v33 = vpack.c.bf16 %v2093_v18, %v2092_v0  ;;  %vm8226_vm5 = vmmov %vm8215_vm0 }
 0x46d   :  { %5006 = vrot.lane.b32.xlu0 %v7004_v22, %s5309_s29  ;;  %4112 = vmatprep.subr.msk.bf16.mxu0 %vm5688_vm2, %v4111_v36 }
 0x46e   :  { %v2085_v26 = vsel %vm8222_vm10, %v4749_v41, %v4769_v19  ;;  %v2084_v24 = vsel %vm8223_vm12, %v4738_v32, %v4768_v25  ;;  %v2108_v53 = vsel %vm8224_vm14, %v4768_v25, %v4743_v40  ;;  %v2109_v3 = vsel %vm8225_vm4, %v4769_v19, %v4744_v63  ;;  %5011 = vrot.lane.b32.xlu1 %v6978_v13, %s5309_s29  ;;  %v7164_v63 = vpop.permute.xlu0 %4756  ;;  %vm8227_vm10 = vmmov %vm8215_vm0 }
 0x46f   :  { %v4114_v22 = vpack.c.bf16 %v2109_v3, %v2108_v53  ;;  %v7154_v62 = vpop.permute.xlu1 %4771  ;;  %v4207_v29 = vpack.c.bf16 %v2085_v26, %v2084_v24  ;;  %vm8228_vm12 = vmmov %vm8215_vm0  ;;  %v4758_v10 = vunpack.i.l.bf16 %v7164_v63 }
 0x470   :  { %vm8229_vm14 = vmmov %vm8215_vm0 }
 0x471   :  { %4115 = vmatpush1.bf16.msk.msra.mxu0 %vm5740_vm6, %v4114_v22  ;;  %4208 = vmatprep.subr.msk.bf16.mxu1 %vm5755_vm7, %v4207_v29  ;;  %vm8230_vm4 = vmmov %vm8215_vm0 }
 0x472   :  { %5016 = vrot.lane.b32.xlu1 %v7018_v2, %s5309_s29  ;;  %4211 = vmatpush1.bf16.msk.msra.mxu1 %vm5766_vm8, %v4210_v33 }
 0x473   :  { %v7166_v13 = vpop.permute.xlu1 %4776 }
 0x477   :  { %v4782_v40 = vpop.permute.xlu0 %4781  ;;  %v4797_v5 = vpop.permute.xlu1 %4796 }
 0x478   :  { %v4799_v58 = vunpack.i.h.bf16 %v4797_v5  ;;  %v4798_v12 = vunpack.i.l.bf16 %v4797_v5  ;;  %v4784_v16 = vunpack.i.h.bf16 %v4782_v40  ;;  %v4783_v36 = vunpack.i.l.bf16 %v4782_v40 }
 0x47a   :  { %v2111_v24 = vsel %vm8227_vm10, %v4799_v58, %v4784_v16  ;;  %v2110_v53 = vsel %vm8228_vm12, %v4798_v12, %v4783_v36  ;;  %vm8232_vm10 = vcmp.lt.s32.totalorder %v8207_v50, 1 }
 0x47b   :  { %v4787_v9 = vpop.permute.xlu0 %4786  ;;  %vm8233_vm12 = vmmov %vm8232_vm10 }
 0x47c   :  { %v4789_v32 = vunpack.i.h.bf16 %v4787_v9  ;;  %v4788_v41 = vunpack.i.l.bf16 %v4787_v9  ;;  %v4120_v9 = vpack.c.bf16 %v2111_v24, %v2110_v53 }
 0x47e   :  { %v2086_v19 = vsel %vm8215_vm0, %v4788_v41, %v4798_v12  ;;  %v2087_v2 = vsel %vm8226_vm5, %v4789_v32, %v4799_v58  ;;  %vm8231_vm5 = vmmov %vm8215_vm0  ;;  %v5312_v58 = vmov 3   ;;  %v5192_v12 = vld [vmem:[%s8012_s3] sm:$0xff] }
 0x47f   :  { %v4792_v25 = vpop.permute.xlu0 %4791  ;;  %v4213_v18 = vpack.c.bf16 %v2087_v2, %v2086_v19  ;;  %5020 = vset.pattern.permute.xlu1 %v5312_v58  ;;  %5021 = vset.pattern.permute.xlu0 %v5312_v58  ;;  %v4733_v19 = vunpack.i.l.bf16 %v7084_v4  ;;  %v4753_v58 = vunpack.i.l.bf16 %v7142_v20 }
 0x480   :  { %v4794_v0 = vunpack.i.h.bf16 %v4792_v25  ;;  %v4793_v26 = vunpack.i.l.bf16 %v4792_v25  ;;  %3287 = vperm.xlu1 %5020, %v5192_v12   ;;  %v5194_v25 = vld [vmem:[%s8012_s3 + $0x8] sm:$0xff] }
 0x481   :  { %4214 = vmatprep.subr.msk.bf16.mxu1 %vm5755_vm7, %v4213_v18  ;;  %v8089_v18 = vunpack.i.h.bf16 %v7076_v11 }
 0x482   :  { %v2095_v3 = vsel %vm8229_vm14, %v4794_v0, %v4789_v32  ;;  %v2103_v22 = vsel %vm8230_vm4, %v4784_v16, %v4794_v0  ;;  %v2094_v29 = vsel %vm8215_vm0, %v4793_v26, %v4788_v41  ;;  %v2102_v33 = vsel %vm8231_vm5, %v4783_v36, %v4793_v26  ;;  %v5193_v32 = vld [vmem:[%s8012_s3 + $0x10] sm:$0xff]  ;;  %vm8234_vm14 = vmmov %vm8232_vm10 }
 0x483   :  { %v4216_v40 = vpack.c.bf16 %v2095_v3, %v2094_v29  ;;  %v4117_v5 = vpack.c.bf16 %v2103_v22, %v2102_v33  ;;  %3295 = vperm.xlu0 %5021, %v5193_v32   ;;  %v4714_v41 = vunpack.i.h.bf16 %v7074_v60  ;;  %v4713_v16 = vunpack.i.l.bf16 %v7074_v60  ;;  %vm8235_vm4 = vmmov %vm8232_vm10 }
 0x484   :  { %v4734_v36 = vunpack.i.h.bf16 %v7084_v4  ;;  %3291 = vperm.xlu1 %5020, %v5194_v25   ;;  %v4728_v0 = vunpack.i.l.bf16 %v7076_v11  ;;  %v4718_v4 = vunpack.i.l.bf16 %v7082_v44  ;;  %vm8236_vm0 = vmmov %vm8235_vm4 }
 0x485   :  { %4118 = vmatprep.subr.msk.bf16.mxu0 %vm5688_vm2, %v4117_v5  ;;  %4217 = vmatpush1.bf16.msk.msra.mxu1 %vm5766_vm8, %v4216_v40  ;;  %v7214_v60 = vsel %vm8233_vm12, %v4733_v19, %v4713_v16  ;;  %v2259_v53 = vsel %vm8235_vm4, %v4714_v41, %v8089_v18  ;;  %vm8238_vm12 = vmmov %vm8236_vm0  ;;  %v4774_v18 = vunpack.i.h.bf16 %v7154_v62 }
 0x486   :  { %4121 = vmatpush1.bf16.msk.msra.mxu0 %vm5740_vm6, %v4120_v9  ;;  %v7210_v26 = vsel %vm8232_vm10, %v4734_v36, %v4714_v41  ;;  %v2258_v24 = vsel %vm8234_vm14, %v4713_v16, %v4728_v0  ;;  %v5195_v9 = vld [vmem:[%s8012_s3 + $0x18] sm:$0xff]  ;;  %vm8237_vm10 = vmmov %vm8231_vm5 }
 0x487   :  { %3307 = vperm.xlu0 %5021, %v6726_v34   ;;  %v4719_v34 = vunpack.i.h.bf16 %v7082_v44  ;;  %v2242_v44 = vsel %vm8236_vm0, %v4718_v4, %v4733_v19  ;;  %vm8239_vm14 = vmmov %vm8236_vm0 }
 0x488   :  { %3299 = vperm.xlu1 %5020, %v5195_v9   ;;  %vm8240_vm4 = vmmov %vm8231_vm5 }
 0x489   :  { %v2243_v25 = vsel %vm8238_vm12, %v4719_v34, %v4734_v36  ;;  %v5196_v36 = vld [vmem:[%s8012_s3 + $0x20] sm:$0xff]  ;;  %vm8241_vm0 = vmmov %vm8240_vm4 }
 0x48a   :  { %vm8244_vm12 = vmmov %vm8241_vm0 }
 0x48b   :  { %v4802_v2 = vpop.permute.xlu1 %4801  ;;  %3315 = vperm.xlu0 %5021, %v6740_v55  }
 0x48c   :  { %v4804_v29 = vunpack.i.h.bf16 %v4802_v2  ;;  %v4803_v33 = vunpack.i.l.bf16 %v4802_v2  ;;  %v4129_v2 = vpack.c.bf16 %v2259_v53, %v2258_v24  ;;  %3303 = vperm.xlu1 %5020, %v5196_v36  }
 0x48f   :  { %v4807_v3 = vpop.permute.xlu0 %4806  ;;  %v4817_v22 = vpop.permute.xlu1 %4816 }
 0x490   :  { %v4819_v40 = vunpack.i.h.bf16 %v4817_v22  ;;  %v4818_v5 = vunpack.i.l.bf16 %v4817_v22  ;;  %v4809_v12 = vunpack.i.h.bf16 %v4807_v3  ;;  %v4808_v32 = vunpack.i.l.bf16 %v4807_v3  ;;  %3311 = vperm.xlu1 %5020, %v6732_v49  }
 0x491   :  { %v7240_v22 = vsel %vm8239_vm14, %v4728_v0, %v4718_v4  ;;  %v4754_v3 = vunpack.i.h.bf16 %v7142_v20  ;;  %v4773_v0 = vunpack.i.l.bf16 %v7154_v62  ;;  %v4779_v4 = vunpack.i.h.bf16 %v7166_v13  ;;  %vm8245_vm14 = vmmov %vm8241_vm0 }
 0x492   :  { %v2104_v41 = vsel %vm8231_vm5, %v4803_v33, %v4818_v5  ;;  %v2105_v16 = vsel %vm8237_vm10, %v4804_v29, %v4819_v40  ;;  %v2097_v24 = vsel %vm8240_vm4, %v4819_v40, %v4809_v12  ;;  %v2096_v53 = vsel %vm8241_vm0, %v4818_v5, %v4808_v32  ;;  %vm8242_vm5 = vmmov %vm8241_vm0 }
 0x493   :  { %v7243_v55 = vpop.permute.xlu0 %4811  ;;  %v4822_v9 = vpop.permute.xlu1 %4821  ;;  %v4123_v19 = vpack.c.bf16 %v2105_v16, %v2104_v41  ;;  %vm8243_vm10 = vmmov %vm8241_vm0  ;;  %v4759_v40 = vunpack.i.h.bf16 %v7164_v63  ;;  %v8248_v63 = vunpack.i.h.bf16 %v7076_v11 }
 0x494   :  { %v4824_v8 = vunpack.i.h.bf16 %v4822_v9  ;;  %v4823_v27 = vunpack.i.l.bf16 %v4822_v9  ;;  %v4778_v9 = vunpack.i.l.bf16 %v7166_v13  ;;  %v4813_v13 = vunpack.i.l.bf16 %v7243_v55 }
 0x495   :  { %4124 = vmatprep.subr.msk.bf16.mxu0 %vm5688_vm2, %v4123_v19  ;;  %vm8246_vm2 = vcmp.lt.s32.totalorder %v8207_v50, 1 }
 0x496   :  { %v2089_v20 = vsel %vm8242_vm5, %v4809_v12, %v4824_v8  ;;  %v2088_v41 = vsel %vm8243_vm10, %v4808_v32, %v4823_v27  ;;  %v2112_v62 = vsel %vm8244_vm12, %v4823_v27, %v4803_v33  ;;  %v2113_v16 = vsel %vm8245_vm14, %v4824_v8, %v4804_v29  ;;  %vm8247_vm4 = vmmov %vm8246_vm2 }
 0x497   :  { %v4126_v5 = vpack.c.bf16 %v2113_v16, %v2112_v62  ;;  %v4832_v36 = vpop.permute.xlu0 %4831  ;;  %v4827_v51 = vpop.permute.xlu1 %4826  ;;  %v4219_v19 = vpack.c.bf16 %v2089_v20, %v2088_v41  ;;  %v2261_v12 = vsel %vm8246_vm2, %v4754_v3, %v4774_v18  ;;  %v2260_v27 = vsel %vm8247_vm4, %v4753_v58, %v4773_v0  ;;  %vm8249_vm0 = vmmov %vm8246_vm2 }
 0x498   :  { %v4829_v32 = vunpack.i.h.bf16 %v4827_v51  ;;  %v4828_v37 = vunpack.i.l.bf16 %v4827_v51  ;;  %v4222_v8 = vpack.c.bf16 %v2097_v24, %v2096_v53  ;;  %v4814_v29 = vunpack.i.h.bf16 %v7243_v55  ;;  %vm8250_vm5 = vmmov %vm8249_vm0 }
 0x499   :  { %4127 = vmatpush1.bf16.msk.msra.mxu0 %vm5740_vm6, %v4126_v5  ;;  %4220 = vmatprep.subr.msk.bf16.mxu1 %vm5755_vm7, %v4219_v19  ;;  %v2251_v33 = vsel %vm8249_vm0, %v8248_v63, %v4719_v34  ;;  %v2245_v49 = vsel %vm8250_vm5, %v4759_v40, %v4779_v4  ;;  %vm8251_vm10 = vmmov %vm8249_vm0  ;;  %v4225_v55 = vpack.c.bf16 %v2243_v25, %v2242_v44  ;;  %v4834_v62 = vunpack.i.h.bf16 %v4832_v36 }
 0x49a   :  { %v2269_v24 = vsel %vm8251_vm10, %v4779_v4, %v4754_v3  ;;  %4130 = vmatprep.subr.msk.bf16.mxu0 %vm5895_vm11, %v4129_v2  ;;  %vm8253_vm6 = vmmov %vm8249_vm0  ;;  %4223 = vmatpush1.bf16.msk.msra.mxu1 %vm5766_vm8, %v4222_v8  ;;  %v4135_v25 = vpack.c.bf16 %v2261_v12, %v2260_v27  ;;  %v4228_v41 = vpack.c.bf16 %v2251_v33, %v7240_v22  ;;  %v4833_v16 = vunpack.i.l.bf16 %v4832_v36 }
 0x49b   :  { %v2244_v46 = vsel %vm8253_vm6, %v4758_v10, %v4778_v9  ;;  %vm8254_vm7 = vmmov %vm8249_vm0  ;;  %v4842_v3 = vpop.permute.xlu0 %4841  ;;  %v4837_v4 = vpop.permute.xlu1 %4836  ;;  %4226 = vmatprep.subr.msk.bf16.mxu1 %vm5978_vm1, %v4225_v55 }
 0x49c   :  { %v2268_v43 = vsel %vm8254_vm7, %v4778_v9, %v4753_v58  ;;  %vm8255_vm12 = vmmov %vm8249_vm0  ;;  %v4839_v20 = vunpack.i.h.bf16 %v4837_v4  ;;  %v4838_v2 = vunpack.i.l.bf16 %v4837_v4  ;;  %v8259_v9 = vpack.c.bf16 %v7210_v26, %v7214_v60 }
 0x49d   :  { %v2263_v11 = vsel %vm8255_vm12, %v4814_v29, %v4829_v32  ;;  %vm8256_vm14 = vmmov %vm8249_vm0  ;;  %v4138_v51 = vpack.c.bf16 %v2269_v24, %v2268_v43  ;;  %v4231_v19 = vpack.c.bf16 %v2245_v49, %v2244_v46  ;;  %v4844_v12 = vunpack.i.h.bf16 %v4842_v3 }
 0x49e   :  { %v2262_v34 = vsel %vm8256_vm14, %v4813_v13, %v4828_v37  ;;  %vm8258_vm2 = vmmov %vm8249_vm0  ;;  %4133 = vmatpush1.bf16.msk.msra.mxu0 %vm5961_vm15, %v8259_v9  ;;  %v4843_v27 = vunpack.i.l.bf16 %v4842_v3  ;;  %v2246_v26 = vsel %vm8249_vm0, %v4833_v16, %v4838_v2  ;;  %4229 = vmatpush1.bf16.msk.msra.mxu1 %vm5989_vm3, %v4228_v41  ;;  %v8279_v60 = vpack.c.bf16 %v6784_v38, %v6777_v15 }
 0x49f   :  { %v2253_v58 = vsel %vm8258_vm2, %v4774_v18, %v4759_v40  ;;  %vm8261_vm8 = vmmov %vm8249_vm0  ;;  %4136 = vmatprep.subr.msk.bf16.mxu0 %vm5895_vm11, %v4135_v25  ;;  %v4141_v22 = vpack.c.bf16 %v2263_v11, %v2262_v34  ;;  %v4847_v40 = vpop.permute.xlu0 %4846  ;;  %v4857_v36 = vpop.permute.xlu1 %4856  ;;  %4232 = vmatprep.subr.msk.bf16.mxu1 %vm5978_vm1, %v4231_v19 }
 0x4a0   :  { %v2252_v5 = vsel %vm8261_vm8, %v4773_v0, %v4758_v10  ;;  %vm8262_vm4 = vmmov %vm8249_vm0  ;;  %v4859_v8 = vunpack.i.h.bf16 %v4857_v36  ;;  %v4858_v63 = vunpack.i.l.bf16 %v4857_v36  ;;  %v4849_v24 = vunpack.i.h.bf16 %v4847_v40 }
 0x4a1   :  { %v2247_v18 = vsel %vm8262_vm4, %v4834_v62, %v4839_v20  ;;  %vm8264_vm5 = vmmov %vm8249_vm0  ;;  %v4234_v33 = vpack.c.bf16 %v2253_v58, %v2252_v5  ;;  %v4848_v55 = vunpack.i.l.bf16 %v4847_v40 }
 0x4a2   :  { %v2271_v10 = vsel %vm8264_vm5, %v4839_v20, %v4814_v29  ;;  %vm8265_vm10 = vmmov %vm8249_vm0  ;;  %4139 = vmatpush1.bf16.msk.msra.mxu0 %vm5961_vm15, %v4138_v51  ;;  %v4237_v43 = vpack.c.bf16 %v2247_v18, %v2246_v26  ;;  %v8276_v18 = vpack.c.bf16 %v6800_v54, %v6798_v61 }
 0x4a3   :  { %v2270_v0 = vsel %vm8265_vm10, %v4838_v2, %v4813_v13  ;;  %vm8266_vm6 = vmmov %vm8249_vm0  ;;  %4142 = vmatprep.subr.msk.bf16.mxu0 %vm5895_vm11, %v4141_v22  ;;  %4235 = vmatpush1.bf16.msk.msra.mxu1 %vm5989_vm3, %v4234_v33  ;;  %v4862_v34 = vpop.permute.xlu1 %4861 }
 0x4a4   :  { %v2255_v49 = vsel %vm8266_vm6, %v4829_v32, %v4834_v62  ;;  %vm8267_vm7 = vmmov %vm8249_vm0  ;;  %v4144_v11 = vpack.c.bf16 %v2271_v10, %v2270_v0  ;;  %v7340_v32 = vpop.permute.xlu0 %4851  ;;  %v4864_v4 = vunpack.i.h.bf16 %v4862_v34  ;;  %4238 = vmatprep.subr.msk.bf16.mxu1 %vm5978_vm1, %v4237_v43  ;;  %v8281_v10 = vpack.c.bf16 %v6840_v42, %v6837_v7 }
 0x4a5   :  { %v2254_v29 = vsel %vm8267_vm7, %v4828_v37, %v4833_v16  ;;  %vm8268_vm12 = vmmov %vm8249_vm0  ;;  %v4863_v37 = vunpack.i.l.bf16 %v4862_v34  ;;  %v4854_v6 = vunpack.i.h.bf16 %v7340_v32  ;;  %v4853_v36 = vunpack.i.l.bf16 %v7340_v32  ;;  %v8297_v32 = vld [vmem:[#allocation19_spill] sm:$0xff] }
 0x4a6   :  { %v2265_v13 = vsel %vm8268_vm12, %v4844_v12, %v4859_v8  ;;  %vm8269_vm14 = vmmov %vm8249_vm0  ;;  %v4240_v20 = vpack.c.bf16 %v2255_v49, %v2254_v29  ;;  %4145 = vmatpush1.bf16.msk.msra.mxu0 %vm5961_vm15, %v4144_v11  ;;  %v2273_v58 = vsel %vm8249_vm0, %v4864_v4, %v4844_v12  ;;  %v8275_v12 = vpack.c.bf16 %v6770_v35, %v6768_v21  ;;  %v8296_v11 = vld [vmem:[#allocation18_spill] sm:$0xff] }
 0x4a7   :  { %v2264_v46 = vsel %vm8269_vm14, %v4843_v27, %v4858_v63  ;;  %vm8270_vm2 = vmmov %vm8249_vm0  ;;  %v4867_v51 = vpop.permute.xlu1 %4866  ;;  %v8278_v35 = vpack.c.bf16 %v6871_v57, %v6869_v48  ;;  %v8285_v7 = vpack.c.bf16 %v6852_v1, %v6809_v28  ;;  %v8286_v49 = vpack.c.bf16 %v6901_v52, %v6904_v23  ;;  %v8292_v23 = vld [vmem:[#allocation33_spill] sm:$0xff] }
 0x4a8   :  { %v4147_v3 = vpack.c.bf16 %v2265_v13, %v2264_v46  ;;  %v2257_v2 = vsel %vm8270_vm2, %v4859_v8, %v4849_v24  ;;  %vm8271_vm8 = vmmov %vm8249_vm0  ;;  %4241 = vmatpush1.bf16.msk.msra.mxu1 %vm5989_vm3, %v4240_v20  ;;  %v7362_v5 = vpop.permute.xlu0 %4871  ;;  %v4869_v40 = vunpack.i.h.bf16 %v4867_v51  ;;  %v4868_v21 = vunpack.i.l.bf16 %v4867_v51 }
 0x4a9   :  { %v2256_v25 = vsel %vm8271_vm8, %v4858_v63, %v4848_v55  ;;  %vm8272_vm4 = vmmov %vm8249_vm0  ;;  %v4874_v44 = vunpack.i.h.bf16 %v7362_v5  ;;  %v4873_v26 = vunpack.i.l.bf16 %v7362_v5  ;;  %v8293_v13 = vpack.c.bf16 %v6973_v59, %v8292_v23  ;;  %v8299_v59 = vld [vmem:[#allocation38_spill] sm:$0xff] }
 0x4aa   :  { %v2249_v41 = vsel %vm8272_vm4, %v4849_v24, %v4864_v4  ;;  %vm8273_vm5 = vmmov %vm8249_vm0  ;;  %4148 = vmatprep.subr.msk.bf16.mxu0 %vm5895_vm11, %v4147_v3  ;;  %v4246_v22 = vpack.c.bf16 %v2257_v2, %v2256_v25  ;;  %vm8282_vm11 = vcmp.lt.s32.totalorder %v8207_v50, 127  ;;  %v8289_v24 = vpack.c.bf16 %v6915_v14, %v6922_v31  ;;  %v8304_v5 = vld [vmem:[#allocation34_spill] sm:$0xff] }
 0x4ab   :  { %v2248_v62 = vsel %vm8273_vm5, %v4848_v55, %v4863_v37  ;;  %vm8274_vm10 = vmmov %vm8249_vm0  ;;  %v2443_v48 = vsel %vm8282_vm11, %v4869_v40, %v4874_v44  ;;  %v8298_v34 = vpack.c.bf16 %v8296_v11, %v8297_v32 }
 0x4ac   :  { %v2272_v16 = vsel %vm8274_vm10, %v4863_v37, %v4843_v27  ;;  %v4243_v19 = vpack.c.bf16 %v2249_v41, %v2248_v62  ;;  %v4882_v53 = vpop.permute.xlu0 %4881  ;;  %v4877_v27 = vpop.permute.xlu1 %4876  ;;  %v8300_v41 = vld [vmem:[#allocation37_spill] sm:$0xff] }
 0x4ad   :  { %v4150_v9 = vpack.c.bf16 %v2273_v58, %v2272_v16  ;;  %v4879_v38 = vunpack.i.h.bf16 %v4877_v27  ;;  %v4878_v57 = vunpack.i.l.bf16 %v4877_v27  ;;  %v4884_v29 = vunpack.i.h.bf16 %v4882_v53 }
 0x4ae   :  { %4244 = vmatprep.subr.msk.bf16.mxu1 %vm5978_vm1, %v4243_v19  ;;  %vm8287_vm1 = vmmov %vm8282_vm11  ;;  %v4883_v28 = vunpack.i.l.bf16 %v4882_v53  ;;  %v8301_v58 = vpack.c.bf16 %v8299_v59, %v8300_v41  ;;  %v5043_v53 = vld [vmem:[#allocation8 + $0x1c] ss:$12 sps:$4 sm:$0xff]  }
 0x4af   :  { %4151 = vmatpush1.bf16.msk.msra.mxu0 %vm5961_vm15, %v4150_v9  ;;  %4247 = vmatpush1.bf16.msk.msra.mxu1 %vm5989_vm3, %v4246_v22  ;;  %vm8283_vm15 = vmmov %vm8282_vm11  ;;  %v2451_v30 = vsel %vm8287_vm1, %v4854_v6, %v4869_v40  ;;  %v8303_v9 = vld [vmem:[#allocation35_spill] sm:$0xff]  ;;  %v8312_v40 = vld [vmem:[#allocation36_spill] sm:$0xff] }
 0x4b0   :  { %2874 = vmatprep.subr.bf16.mxu0 %v8275_v12  ;;  %3020 = vmatprep.subr.bf16.mxu1 %v8276_v18  ;;  %v7387_v61 = vpop.permute.xlu0 %4891  ;;  %v4887_v54 = vpop.permute.xlu1 %4886  ;;  %v2442_v15 = vsel %vm8283_vm15, %v4868_v21, %v4873_v26  ;;  %vm8288_vm3 = vmmov %vm8287_vm1  ;;  %v8305_v51 = vpack.c.bf16 %v8303_v9, %v8304_v5 }
 0x4b1   :  { %v4894_v45 = vunpack.i.h.bf16 %v7387_v61  ;;  %v4893_v0 = vunpack.i.l.bf16 %v7387_v61  ;;  %v4889_v8 = vunpack.i.h.bf16 %v4887_v54  ;;  %v4888_v63 = vunpack.i.l.bf16 %v4887_v54  ;;  %vm8290_vm6 = vmmov %vm8287_vm1 }
 0x4b2   :  { %v2450_v17 = vsel %vm8288_vm3, %v4853_v36, %v4868_v21  ;;  %v4153_v55 = vpack.c.bf16 %v2443_v48, %v2442_v15  ;;  %v2459_v1 = vsel %vm8290_vm6, %v4879_v38, %v4854_v6  ;;  %vm8291_vm7 = vmmov %vm8287_vm1  ;;  %v8313_v21 = vld [vmem:[#allocation16_spill] sm:$0xff] }
 0x4b3   :  { %2875 = vmatpush1.bf16.msra.mxu0 %v8277_v56  ;;  %3021 = vmatpush1.bf16.msra.mxu1 %v8279_v60  ;;  %v2458_v52 = vsel %vm8291_vm7, %v4878_v57, %v4853_v36  ;;  %vm8294_vm12 = vmmov %vm8287_vm1  ;;  %v4156_v62 = vpack.c.bf16 %v2451_v30, %v2450_v17 }
 0x4b4   :  { %2876 = vmatprep.subr.bf16.mxu0 %v8278_v35  ;;  %3022 = vmatprep.subr.bf16.mxu1 %v8280_v39  ;;  %v4902_v42 = vpop.permute.xlu0 %4901  ;;  %v4897_v33 = vpop.permute.xlu1 %4896  ;;  %v2445_v46 = vsel %vm8294_vm12, %v4889_v8, %v4894_v45  ;;  %vm8295_vm14 = vmmov %vm8287_vm1  ;;  %v4249_v27 = vpack.c.bf16 %v2459_v1, %v2458_v52 }
 0x4b5   :  { %v2444_v14 = vsel %vm8295_vm14, %v4888_v63, %v4893_v0  ;;  %v4899_v31 = vunpack.i.h.bf16 %v4897_v33  ;;  %v4898_v43 = vunpack.i.l.bf16 %v4897_v33  ;;  %vm8302_vm2 = vmmov %vm8287_vm1  ;;  %v4904_v18 = vunpack.i.h.bf16 %v4902_v42 }
 0x4b6   :  { %v2435_v16 = vsel %vm8302_vm2, %v4874_v44, %v4879_v38  ;;  %vm8306_vm8 = vmmov %vm8287_vm1  ;;  %v4159_v61 = vpack.c.bf16 %v2445_v46, %v2444_v14  ;;  %v4903_v38 = vunpack.i.l.bf16 %v4902_v42 }
 0x4b7   :  { %2877 = vmatpush1.bf16.msra.mxu0 %v8281_v10  ;;  %3023 = vmatpush1.bf16.msra.mxu1 %v8285_v7  ;;  %v2434_v19 = vsel %vm8306_vm8, %v4873_v26, %v4878_v57  ;;  %vm8307_vm4 = vmmov %vm8287_vm1  ;;  %v8314_v26 = vpack.c.bf16 %v8312_v40, %v8313_v21  ;;  %v8317_v10 = vld [vmem:[#allocation13_spill] sm:$0xff]  ;;  %v8319_v57 = vld [vmem:[#allocation14_spill] sm:$0xff] }
 0x4b8   :  { %2878 = vmatprep.subr.bf16.mxu0 %v8284_v47  ;;  %3024 = vmatprep.subr.bf16.mxu1 %v8286_v49  ;;  %v4912_v3 = vpop.permute.xlu0 %4911  ;;  %v4907_v4 = vpop.permute.xlu1 %4906  ;;  %v2453_v22 = vsel %vm8307_vm4, %v4884_v29, %v4889_v8  ;;  %vm8308_vm0 = vmmov %vm8287_vm1  ;;  %vm8318_vm1 = vnez %v8317_v10  ;;  %v4252_v48 = vpack.c.bf16 %v2435_v16, %v2434_v19  ;;  %vm8320_vm3 = vnez %v8319_v57 }
 0x4b9   :  { %v4914_v37 = vunpack.i.h.bf16 %v4912_v3  ;;  %v4913_v20 = vunpack.i.l.bf16 %v4912_v3  ;;  %v4909_v2 = vunpack.i.h.bf16 %v4907_v4  ;;  %v4908_v25 = vunpack.i.l.bf16 %v4907_v4  ;;  %vm8310_vm5 = vmmov %vm8308_vm0 }
 0x4ba   :  { %v2452_v12 = vsel %vm8308_vm0, %v4883_v28, %v4888_v63  ;;  %v2461_v56 = vsel %vm8310_vm5, %v4899_v31, %v4884_v29  ;;  %vm8311_vm10 = vmmov %vm8308_vm0 }
 0x4bb   :  { %2879 = vmatpush1.bf16.msra.mxu0 %v8289_v24  ;;  %3025 = vmatpush1.bf16.msra.mxu1 %v8298_v34  ;;  %v2460_v44 = vsel %vm8311_vm10, %v4898_v43, %v4883_v28  ;;  %vm8315_vm11 = vmmov %vm8308_vm0  ;;  %v4162_v15 = vpack.c.bf16 %v2453_v22, %v2452_v12 }
 0x4bc   :  { %2880 = vmatprep.subr.bf16.mxu0 %v8293_v13  ;;  %3026 = vmatprep.subr.bf16.mxu1 %v8301_v58  ;;  %v4922_v35 = vpop.permute.xlu0 %4921  ;;  %v4917_v60 = vpop.permute.xlu1 %4916  ;;  %v2447_v54 = vsel %vm8315_vm11, %v4909_v2, %v4914_v37  ;;  %vm8316_vm15 = vmmov %vm8308_vm0  ;;  %v4255_v7 = vpack.c.bf16 %v2461_v56, %v2460_v44 }
 0x4bd   :  { %v2446_v39 = vsel %vm8316_vm15, %v4908_v25, %v4913_v20  ;;  %v4919_v6 = vunpack.i.h.bf16 %v4917_v60  ;;  %v4918_v36 = vunpack.i.l.bf16 %v4917_v60  ;;  %vm8321_vm6 = vmmov %vm8308_vm0  ;;  %v4924_v52 = vunpack.i.h.bf16 %v4922_v35 }
 0x4be   :  { %v2437_v47 = vsel %vm8321_vm6, %v4894_v45, %v4899_v31  ;;  %vm8322_vm7 = vmmov %vm8308_vm0  ;;  %v4165_v17 = vpack.c.bf16 %v2447_v54, %v2446_v39  ;;  %v4923_v23 = vunpack.i.l.bf16 %v4922_v35 }
 0x4bf   :  { %2881 = vmatpush1.bf16.msra.mxu0 %v8305_v51  ;;  %3027 = vmatpush1.bf16.msra.mxu1 %v8314_v26  ;;  %v2436_v8 = vsel %vm8322_vm7, %v4893_v0, %v4898_v43  ;;  %vm8323_vm12 = vmmov %vm8308_vm0  ;;  %v2438_v46 = vsel %vm8308_vm0, %v4913_v20, %v4918_v36 }
 0x4c0   :  { %4154 = vmatprep.subr.msk.bf16.mxu0 %vm6185_vm13, %v4153_v55  ;;  %4250 = vmatprep.subr.msk.bf16.mxu1 %vm8318_vm1, %v4249_v27  ;;  %v2455_v63 = vsel %vm8323_vm12, %v4904_v18, %v4909_v2  ;;  %vm8324_vm14 = vmmov %vm8308_vm0  ;;  %v4927_v0 = vpop.permute.xlu0 %4926  ;;  %v4937_v30 = vpop.permute.xlu1 %4936  ;;  %v4258_v1 = vpack.c.bf16 %v2437_v47, %v2436_v8  ;;  %v5040_v27 = vld [vmem:[#allocation8] ss:$12 sps:$4 sm:$0xff]  }
 0x4c1   :  { %v2454_v33 = vsel %vm8324_vm14, %v4903_v38, %v4908_v25  ;;  %vm8325_vm2 = vmmov %vm8308_vm0  ;;  %v4929_v24 = vunpack.i.h.bf16 %v4927_v0  ;;  %v4928_v55 = vunpack.i.l.bf16 %v4927_v0  ;;  %v4939_v29 = vunpack.i.h.bf16 %v4937_v30  ;;  %v8347_v8 = vld [vmem:[#allocation21_spill] sm:$0xff] }
 0x4c2   :  { %v2463_v42 = vsel %vm8325_vm2, %v4919_v6, %v4904_v18  ;;  %vm8326_vm8 = vmmov %vm8308_vm0  ;;  %v4938_v28 = vunpack.i.l.bf16 %v4937_v30  ;;  %v4168_v11 = vpack.c.bf16 %v2455_v63, %v2454_v33  ;;  %v5045_v0 = vld [vmem:[#allocation8 + $0x18] ss:$12 sps:$4 sm:$0xff]  }
 0x4c3   :  { %4157 = vmatpush1.bf16.msk.msra.mxu0 %vm8320_vm3, %v4156_v62  ;;  %v2462_v49 = vsel %vm8326_vm8, %v4918_v36, %v4903_v38  ;;  %4253 = vmatpush1.bf16.msk.msra.mxu1 %vm6233_vm9, %v4252_v48  ;;  %vm8328_vm4 = vmmov %vm8308_vm0  ;;  %v8341_v48 = vld [vmem:[#allocation23_spill] sm:$0xff] }
 0x4c4   :  { %4160 = vmatprep.subr.msk.bf16.mxu0 %vm6185_vm13, %v4159_v61  ;;  %4256 = vmatprep.subr.msk.bf16.mxu1 %vm8318_vm1, %v4255_v7  ;;  %v2439_v13 = vsel %vm8328_vm4, %v4914_v37, %v4919_v6  ;;  %vm8329_vm5 = vmmov %vm8308_vm0  ;;  %v4261_v43 = vpack.c.bf16 %v2463_v42, %v2462_v49  ;;  %v4932_v32 = vpop.permute.xlu0 %4931  ;;  %v4942_v34 = vpop.permute.xlu1 %4941 }
 0x4c5   :  { %v2449_v14 = vsel %vm8329_vm5, %v4939_v29, %v4929_v24  ;;  %vm8330_vm10 = vmmov %vm8308_vm0  ;;  %v4944_v20 = vunpack.i.h.bf16 %v4942_v34  ;;  %v4943_v2 = vunpack.i.l.bf16 %v4942_v34  ;;  %v4264_v25 = vpack.c.bf16 %v2439_v13, %v2438_v46  ;;  %v8355_v46 = vld [vmem:[#allocation17_spill] sm:$0xff] }
 0x4c6   :  { %v2448_v31 = vsel %vm8330_vm10, %v4938_v28, %v4928_v55  ;;  %vm8331_vm11 = vmmov %vm8308_vm0  ;;  %v4934_v18 = vunpack.i.h.bf16 %v4932_v32  ;;  %v4933_v56 = vunpack.i.l.bf16 %v4932_v32  ;;  %vm8348_vm10 = vnez %v8347_v8  ;;  %v5054_v8 = vld [vmem:[#allocation8 + $0x38] ss:$12 sps:$4 sm:$0xff]  }
 0x4c7   :  { %4163 = vmatpush1.bf16.msk.msra.mxu0 %vm8320_vm3, %v4162_v15  ;;  %4259 = vmatpush1.bf16.msk.msra.mxu1 %vm6233_vm9, %v4258_v1  ;;  %v4171_v3 = vpack.c.bf16 %v2449_v14, %v2448_v31  ;;  %v2457_v4 = vsel %vm8331_vm11, %v4924_v52, %v4939_v29  ;;  %vm8332_vm15 = vmmov %vm8308_vm0  ;;  %v5046_v29 = vld [vmem:[#allocation8 + $0x34] ss:$12 sps:$4 sm:$0xff]  }
 0x4c8   :  { %4166 = vmatprep.subr.msk.bf16.mxu0 %vm6185_vm13, %v4165_v17  ;;  %v2456_v37 = vsel %vm8332_vm15, %v4923_v23, %v4938_v28  ;;  %4262 = vmatprep.subr.msk.bf16.mxu1 %vm8318_vm1, %v4261_v43  ;;  %vm8333_vm6 = vmmov %vm8308_vm0  ;;  %v4952_v5 = vpop.permute.xlu0 %4951  ;;  %v4947_v12 = vpop.permute.xlu1 %4946  ;;  %v8349_v28 = vld [vmem:[#allocation20_spill] sm:$0xff] }
 0x4c9   :  { %v2441_v59 = vsel %vm8333_vm6, %v4929_v24, %v4944_v20  ;;  %vm8334_vm7 = vmmov %vm8308_vm0  ;;  %v4174_v16 = vpack.c.bf16 %v2457_v4, %v2456_v37  ;;  %v4954_v19 = vunpack.i.h.bf16 %v4952_v5  ;;  %v4953_v22 = vunpack.i.l.bf16 %v4952_v5 }
 0x4ca   :  { %v2465_v41 = vsel %vm8334_vm7, %v4944_v20, %v4924_v52  ;;  %vm8335_vm12 = vmmov %vm8308_vm0  ;;  %v4949_v44 = vunpack.i.h.bf16 %v4947_v12  ;;  %v4948_v40 = vunpack.i.l.bf16 %v4947_v12  ;;  %vm8350_vm11 = vnez %v8349_v28  ;;  %v5055_v28 = vld [vmem:[#allocation8 + $0x50] ss:$12 sps:$4 sm:$0xff]  }
 0x4cb   :  { %4169 = vmatpush1.bf16.msk.msra.mxu0 %vm8320_vm3, %v4168_v11  ;;  %v2440_v58 = vsel %vm8335_vm12, %v4928_v55, %v4943_v2  ;;  %vm8336_vm14 = vmmov %vm8308_vm0  ;;  %4265 = vmatpush1.bf16.msk.msra.mxu1 %vm6233_vm9, %v4264_v25 }
 0x4cc   :  { %v2464_v62 = vsel %vm8336_vm14, %v4943_v2, %v4923_v23  ;;  %4172 = vmatprep.subr.msk.bf16.mxu0 %vm6185_vm13, %v4171_v3  ;;  %v4270_v9 = vpack.c.bf16 %v2441_v59, %v2440_v58  ;;  %vm8337_vm13 = vcmp.lt.s32.totalorder %v8207_v50, 126  ;;  %v4962_v61 = vpop.permute.xlu0 %4961  ;;  %v4957_v39 = vpop.permute.xlu1 %4956  ;;  %vm8356_vm14 = vnez %v8355_v46  ;;  %v5053_v50 = vld [vmem:[#allocation8 + $0x20] ss:$12 sps:$4 sm:$0xff]  }
 0x4cd   :  { %v4267_v51 = vpack.c.bf16 %v2465_v41, %v2464_v62  ;;  %v2603_v21 = vsel %vm8337_vm13, %v4949_v44, %v4954_v19  ;;  %vm8338_vm2 = vmmov %vm8337_vm13  ;;  %v4959_v36 = vunpack.i.h.bf16 %v4957_v39  ;;  %v4958_v10 = vunpack.i.l.bf16 %v4957_v39 }
 0x4ce   :  { %v2611_v26 = vsel %vm8338_vm2, %v4934_v18, %v4949_v44  ;;  %vm8339_vm8 = vmmov %vm8338_vm2  ;;  %v4964_v30 = vunpack.i.h.bf16 %v4962_v61  ;;  %v4963_v17 = vunpack.i.l.bf16 %v4962_v61 }
 0x4cf   :  { %4175 = vmatpush1.bf16.msk.msra.mxu0 %vm8320_vm3, %v4174_v16  ;;  %4268 = vmatprep.subr.msk.bf16.mxu1 %vm8318_vm1, %v4267_v51  ;;  %v2602_v35 = vsel %vm8339_vm8, %v4948_v40, %v4953_v22  ;;  %vm8340_vm4 = vmmov %vm8338_vm2  ;;  %vm8342_vm1 = vnez %v8341_v48  ;;  %v5048_v16 = vld [vmem:[#allocation8 + $0x30] ss:$12 sps:$4 sm:$0xff]   ;;  %v5052_v48 = vld [vmem:[#allocation8 + $0x8] ss:$12 sps:$4 sm:$0xff]  }
 0x4d0   :  { %v2610_v60 = vsel %vm8340_vm4, %v4933_v56, %v4948_v40  ;;  %4271 = vmatpush1.bf16.msk.msra.mxu1 %vm6233_vm9, %v4270_v9  ;;  %v4177_v6 = vpack.c.bf16 %v2603_v21, %v2602_v35  ;;  %vm8343_vm3 = vmmov %vm8338_vm2  ;;  %v4972_v63 = vpop.permute.xlu0 %4971  ;;  %v4967_v49 = vpop.permute.xlu1 %4966 }
 0x4d1   :  { %v4180_v54 = vpack.c.bf16 %v2611_v26, %v2610_v60  ;;  %v2595_v15 = vsel %vm8343_vm3, %v4954_v19, %v4959_v36  ;;  %vm8344_vm0 = vmmov %vm8338_vm2  ;;  %v4974_v33 = vunpack.i.h.bf16 %v4972_v63  ;;  %v4973_v42 = vunpack.i.l.bf16 %v4972_v63 }
 0x4d2   :  { %2891 = vmatmul.mubr.bf16.vlgmr.msra.gmra.mrb[16].mxu0 %v5040_v27  ;;  %4178 = vmatprep.subr.msk.bf16.mxu0 %vm8342_vm1, %v4177_v6  ;;  %v2619_v38 = vsel %vm8344_vm0, %v4959_v36, %v4934_v18  ;;  %vm8345_vm9 = vmmov %vm8344_vm0  ;;  %v4969_v24 = vunpack.i.h.bf16 %v4967_v49  ;;  %v4968_v55 = vunpack.i.l.bf16 %v4967_v49 }
 0x4d3   :  { %2900 = vmatprep.mubr.bf16.mxu0 %v5043_v53  ;;  %3037 = vmatmul.mubr.bf16.vlgmr.msra.gmra.mrb[16].mxu1 %v5040_v27  ;;  %v2594_v57 = vsel %vm8345_vm9, %v4953_v22, %v4958_v10  ;;  %vm8346_vm5 = vmmov %vm8344_vm0  ;;  %v5049_v22 = vld [vmem:[#allocation8 + $0x4c] ss:$12 sps:$4 sm:$0xff]  }
 0x4d4   :  { %v2618_v47 = vsel %vm8346_vm5, %v4958_v10, %v4933_v56  ;;  %4181 = vmatpush1.bf16.msk.msra.mxu0 %vm8348_vm10, %v4180_v54  ;;  %v4276_v7 = vpack.c.bf16 %v2595_v15, %v2594_v57  ;;  %3046 = vmatprep.mubr.bf16.mxu1 %v5043_v53  ;;  %vm8351_vm15 = vmmov %vm8344_vm0  ;;  %v4982_v14 = vpop.permute.xlu0 %4981  ;;  %v4977_v43 = vpop.permute.xlu1 %4976 }
 0x4d5   :  { %v4273_v45 = vpack.c.bf16 %v2619_v38, %v2618_v47  ;;  %v2605_v1 = vsel %vm8351_vm15, %v4969_v24, %v4974_v33  ;;  %vm8352_vm6 = vmmov %vm8344_vm0  ;;  %v4979_v32 = vunpack.i.h.bf16 %v4977_v43  ;;  %v4978_v34 = vunpack.i.l.bf16 %v4977_v43  ;;  %v5051_v47 = vld [vmem:[#allocation8 + $0x48] ss:$12 sps:$4 sm:$0xff]  }
 0x4d6   :  { %v2613_v52 = vsel %vm8352_vm6, %v4964_v30, %v4969_v24  ;;  %vm8353_vm7 = vmmov %vm8344_vm0  ;;  %v4984_v9 = vunpack.i.h.bf16 %v4982_v14  ;;  %v4983_v5 = vunpack.i.l.bf16 %v4982_v14 }
 0x4d7   :  { %4274 = vmatprep.subr.msk.bf16.mxu1 %vm8350_vm11, %v4273_v45  ;;  %v2604_v23 = vsel %vm8353_vm7, %v4968_v55, %v4973_v42  ;;  %vm8354_vm12 = vmmov %vm8344_vm0 }
 0x4d8   :  { %v2612_v13 = vsel %vm8354_vm12, %v4963_v17, %v4968_v55  ;;  %4277 = vmatpush1.bf16.msk.msra.mxu1 %vm8356_vm14, %v4276_v7  ;;  %v4183_v11 = vpack.c.bf16 %v2605_v1, %v2604_v23  ;;  %vm8357_vm13 = vmmov %vm8344_vm0  ;;  %v4992_v2 = vpop.permute.xlu0 %4991  ;;  %v4987_v58 = vpop.permute.xlu1 %4986 }
 0x4d9   :  { %v4186_v31 = vpack.c.bf16 %v2613_v52, %v2612_v13  ;;  %v2597_v3 = vsel %vm8357_vm13, %v4974_v33, %v4979_v32  ;;  %vm8358_vm2 = vmmov %vm8344_vm0  ;;  %v4994_v59 = vunpack.i.h.bf16 %v4992_v2  ;;  %v4993_v41 = vunpack.i.l.bf16 %v4992_v2 }
 0x4da   :  { %2901 = vmatmul.mubr.bf16.gmra.mrb[20].mxu0 %v5045_v0  ;;  %4184 = vmatprep.subr.msk.bf16.mxu0 %vm8342_vm1, %v4183_v11  ;;  %v2621_v4 = vsel %vm8358_vm2, %v4979_v32, %v4964_v30  ;;  %vm8359_vm8 = vmmov %vm8344_vm0  ;;  %v4989_v51 = vunpack.i.h.bf16 %v4987_v58  ;;  %v4988_v19 = vunpack.i.l.bf16 %v4987_v58  ;;  %v8372_v52 = vmov 0  }
 0x4db   :  { %2910 = vmatprep.mubr.bf16.mxu0 %v5046_v29  ;;  %3047 = vmatmul.mubr.bf16.gmra.mrb[20].mxu1 %v5045_v0  ;;  %v2596_v37 = vsel %vm8359_vm8, %v4973_v42, %v4978_v34  ;;  %vm8360_vm4 = vmmov %vm8344_vm0 }
 0x4dc   :  { %v2620_v20 = vsel %vm8360_vm4, %v4978_v34, %v4963_v17  ;;  %4187 = vmatpush1.bf16.msk.msra.mxu0 %vm8348_vm10, %v4186_v31  ;;  %v4282_v25 = vpack.c.bf16 %v2597_v3, %v2596_v37  ;;  %3056 = vmatprep.mubr.bf16.mxu1 %v5046_v29  ;;  %vm8361_vm3 = vmmov %vm8344_vm0  ;;  %v2615_v27 = vsel %vm8344_vm0, %v4984_v9, %v4989_v51  ;;  %v5002_v44 = vpop.permute.xlu0 %5001  ;;  %v4997_v53 = vpop.permute.xlu1 %4996 }
 0x4dd   :  { %v4279_v62 = vpack.c.bf16 %v2621_v4, %v2620_v20  ;;  %v2607_v12 = vsel %vm8361_vm3, %v4989_v51, %v4994_v59  ;;  %vm8362_vm9 = vmmov %vm8344_vm0  ;;  %v4999_v26 = vunpack.i.h.bf16 %v4997_v53  ;;  %v4998_v35 = vunpack.i.l.bf16 %v4997_v53 }
 0x4de   :  { %v2606_v18 = vsel %vm8362_vm9, %v4988_v19, %v4993_v41  ;;  %vm8363_vm5 = vmmov %vm8344_vm0  ;;  %v5004_v63 = vunpack.i.h.bf16 %v5002_v44  ;;  %v5003_v7 = vunpack.i.l.bf16 %v5002_v44 }
 0x4df   :  { %4280 = vmatprep.subr.msk.bf16.mxu1 %vm8350_vm11, %v4279_v62  ;;  %v2614_v56 = vsel %vm8363_vm5, %v4983_v5, %v4988_v19  ;;  %v4189_v21 = vpack.c.bf16 %v2607_v12, %v2606_v18  ;;  %vm8364_vm15 = vmmov %vm8344_vm0 }
 0x4e0   :  { %4283 = vmatpush1.bf16.msk.msra.mxu1 %vm8356_vm14, %v4282_v25  ;;  %v4192_v40 = vpack.c.bf16 %v2615_v27, %v2614_v56  ;;  %v2599_v60 = vsel %vm8364_vm15, %v4994_v59, %v4999_v26  ;;  %vm8365_vm6 = vmmov %vm8344_vm0  ;;  %v5007_v6 = vpop.permute.xlu0 %5006  ;;  %v5012_v38 = vpop.permute.xlu1 %5011 }
 0x4e1   :  { %4190 = vmatprep.subr.msk.bf16.mxu0 %vm8342_vm1, %v4189_v21  ;;  %v2623_v61 = vsel %vm8365_vm6, %v4999_v26, %v4984_v9  ;;  %vm8366_vm7 = vmmov %vm8344_vm0  ;;  %v5009_v10 = vunpack.i.h.bf16 %v5007_v6  ;;  %v5008_v15 = vunpack.i.l.bf16 %v5007_v6  ;;  %v5014_v33 = vunpack.i.h.bf16 %v5012_v38 }
 0x4e2   :  { %2911 = vmatmul.mubr.bf16.gmra.mrb[24].mxu0 %v5048_v16  ;;  %v2598_v54 = vsel %vm8366_vm7, %v4993_v41, %v4998_v35  ;;  %vm8367_vm12 = vmmov %vm8344_vm0  ;;  %v5013_v42 = vunpack.i.l.bf16 %v5012_v38 }
 0x4e3   :  { %2920 = vmatprep.mubr.bf16.mxu0 %v5049_v22  ;;  %3057 = vmatmul.mubr.bf16.gmra.mrb[24].mxu1 %v5048_v16  ;;  %v2622_v39 = vsel %vm8367_vm12, %v4998_v35, %v4983_v5  ;;  %v4288_v36 = vpack.c.bf16 %v2599_v60, %v2598_v54  ;;  %vm8368_vm13 = vmmov %vm8344_vm0 }
 0x4e4   :  { %4193 = vmatpush1.bf16.msk.msra.mxu0 %vm8348_vm10, %v4192_v40  ;;  %v4285_v57 = vpack.c.bf16 %v2623_v61, %v2622_v39  ;;  %3066 = vmatprep.mubr.bf16.mxu1 %v5049_v22  ;;  %v2609_v49 = vsel %vm8368_vm13, %v5014_v33, %v5009_v10  ;;  %vm8369_vm2 = vmmov %vm8344_vm0  ;;  %v5017_v24 = vpop.permute.xlu1 %5016 }
 0x4e5   :  { %v2617_v45 = vsel %vm8369_vm2, %v5004_v63, %v5014_v33  ;;  %vm8370_vm8 = vmmov %vm8344_vm0  ;;  %v5019_v29 = vunpack.i.h.bf16 %v5017_v24  ;;  %v5018_v1 = vunpack.i.l.bf16 %v5017_v24 }
 0x4e6   :  { %4286 = vmatprep.subr.msk.bf16.mxu1 %vm8350_vm11, %v4285_v57  ;;  %v2608_v0 = vsel %vm8370_vm8, %v5013_v42, %v5008_v15  ;;  %vm8371_vm4 = vmmov %vm8344_vm0 }
 0x4e7   :  { %v2616_v30 = vsel %vm8371_vm4, %v5003_v7, %v5013_v42  ;;  %4289 = vmatpush1.bf16.msk.msra.mxu1 %vm8356_vm14, %v4288_v36  ;;  %v4195_v55 = vpack.c.bf16 %v2609_v49, %v2608_v0  ;;  %vm8373_vm3 = vmmov %vm8344_vm0  ;;  %v2625_v13 = vsel %vm8344_vm0, %v5019_v29, %v5004_v63 }
 0x4e8   :  { %v4198_v17 = vpack.c.bf16 %v2617_v45, %v2616_v30  ;;  %v2601_v23 = vsel %vm8373_vm3, %v5009_v10, %v5019_v29  ;;  %vm8374_vm9 = vmmov %vm8344_vm0 }
 0x4e9   :  { %4196 = vmatprep.subr.msk.bf16.mxu0 %vm8342_vm1, %v4195_v55  ;;  %v2600_v14 = vsel %vm8374_vm9, %v5008_v15, %v5018_v1  ;;  %vm8375_vm5 = vmmov %vm8344_vm0  ;;  %vm8376_vm1 = vcmask 523264  }
 0x4ea   :  { %2921 = vmatmul.mubr.bf16.gmra.mrb[28].mxu0 %v5051_v47  ;;  %v2624_v31 = vsel %vm8375_vm5, %v5018_v1, %v5003_v7  ;;  %v4294_v43 = vpack.c.bf16 %v2601_v23, %v2600_v14  ;;  %vm8377_vm15 = vmmov %vm8376_vm1 }
 0x4eb   :  { %2963 = vmatprep.mubr.bf16.mxu0 %v8372_v52  ;;  %3067 = vmatmul.mubr.bf16.gmra.mrb[28].mxu1 %v5051_v47  ;;  %v4291_v11 = vpack.c.bf16 %v2625_v13, %v2624_v31  ;;  %vm8379_vm6 = vmmov %vm8376_vm1 }
 0x4ec   :  { %4199 = vmatpush1.bf16.msk.msra.mxu0 %vm8348_vm10, %v4198_v17  ;;  %3109 = vmatprep.mubr.bf16.mxu1 %v8372_v52  ;;  %vm8378_vm10 = vmmov %vm8376_vm1 }
 0x4ed   :  { %4292 = vmatprep.subr.msk.bf16.mxu1 %vm8350_vm11, %v4291_v11  ;;  %vm8380_vm11 = vmmov %vm8376_vm1 }
 0x4ee   :  { %4295 = vmatpush1.bf16.msk.msra.mxu1 %vm8356_vm14, %v4294_v43  ;;  %vm8381_vm14 = vmmov %vm8376_vm1 }
 0x4ef   :  { %vm8382_vm7 = vmmov %vm8376_vm1 }
 0x4f0   :  { %vm8383_vm12 = vmmov %vm8376_vm1 }
 0x4f2   :  { %3904 = vmatmul.mubr.msk.bf16.vlgmr.msra.gmra.mrb[16].mxu0 %vm8376_vm1, %v5052_v48 }
 0x4f3   :  { %2973 = vmatprep.mubr.bf16.mxu0 %v8372_v52  ;;  %3908 = vmatmul.mubr.msk.bf16.vlgmr.msra.gmra.mrb[16].mxu1 %vm8377_vm15, %v5052_v48 }
 0x4f4   :  { %3119 = vmatprep.mubr.bf16.mxu1 %v8372_v52 }
 0x4fa   :  { %3905 = vmatmul.mubr.msk.bf16.gmra.mrb[20].mxu0 %vm8378_vm10, %v5053_v50 }
 0x4fb   :  { %2983 = vmatprep.mubr.bf16.mxu0 %v8372_v52  ;;  %3909 = vmatmul.mubr.msk.bf16.gmra.mrb[20].mxu1 %vm8379_vm6, %v5053_v50 }
 0x4fc   :  { %3129 = vmatprep.mubr.bf16.mxu1 %v8372_v52 }
 0x4ff   :  { %v7730_v39 = vpop.permute.xlu1 %3287 }
 0x502   :  { %3906 = vmatmul.mubr.msk.bf16.gmra.mrb[24].mxu0 %vm8380_vm11, %v5054_v8  ;;  %v7734_v36 = vpop.permute.xlu0 %3295 }
 0x503   :  { %2993 = vmatprep.mubr.bf16.mxu0 %v8372_v52  ;;  %3910 = vmatmul.mubr.msk.bf16.gmra.mrb[24].mxu1 %vm8381_vm14, %v5054_v8  ;;  %v7732_v6 = vpop.permute.xlu1 %3291 }
 0x504   :  { %3139 = vmatprep.mubr.bf16.mxu1 %v8372_v52 }
 0x506   :  { %v7738_v15 = vpop.permute.xlu0 %3307 }
 0x507   :  { %v7736_v10 = vpop.permute.xlu1 %3299 }
 0x50a   :  { %3907 = vmatmul.mubr.msk.bf16.gmra.mrb[28].mxu0 %vm8382_vm7, %v5055_v28  ;;  %v7742_v57 = vpop.permute.xlu0 %3315 }
 0x50b   :  { %3911 = vmatmul.mubr.msk.bf16.gmra.mrb[28].mxu1 %vm8383_vm12, %v5055_v28  ;;  %v7740_v38 = vpop.permute.xlu1 %3303 }
 0x50f   :  { %v7744_v47 = vpop.permute.xlu1 %3311 }
 0x5c5   :  { %v7634_v46 = vpop.f32.mrb[16].mxu0 }
 0x5c6   :  { %3150 = vadd.xlane.f32.xlu0 %v7634_v46  ;;  %v7637_v32 = vpop.f32.mrb[17].mxu0  ;;  %v7639_v34 = vpop.f32.mrb[16].mxu1 }
 0x5c7   :  { %v7641_v3 = vpop.f32.mrb[18].mxu0  ;;  %3518 = vadd.xlane.f32.xlu1 %v7639_v34  ;;  %v7644_v4 = vpop.f32.mrb[17].mxu1 }
 0x5c8   :  { %v7646_v37 = vpop.f32.mrb[19].mxu0  ;;  %v7648_v20 = vpop.f32.mrb[18].mxu1 }
 0x5c9   :  { %v7650_v2 = vpop.f32.mrb[19].mxu1 }
 0x5ca   :  { %3352 = vadd.xlane.f32.xlu0 %v7646_v37 }
 0x5cb   :  { %3350 = vadd.xlane.f32.xlu1 %v7637_v32 }
 0x5cd   :  { %v7654_v25 = vpop.f32.mrb[20].mxu0 }
 0x5ce   :  { %3154 = vadd.xlane.f32.xlu0 %v7654_v25  ;;  %v7657_v59 = vpop.f32.mrb[21].mxu0  ;;  %v7659_v41 = vpop.f32.mrb[20].mxu1 }
 0x5cf   :  { %v7661_v58 = vpop.f32.mrb[22].mxu0  ;;  %3686 = vadd.xlane.f32.xlu1 %v7644_v4  ;;  %v7664_v62 = vpop.f32.mrb[21].mxu1 }
 0x5d0   :  { %v7666_v16 = vpop.f32.mrb[23].mxu0  ;;  %v7668_v9 = vpop.f32.mrb[22].mxu1 }
 0x5d1   :  { %v7670_v5 = vpop.f32.mrb[23].mxu1 }
 0x5d2   :  { %3354 = vadd.xlane.f32.xlu0 %v7657_v59 }
 0x5d3   :  { %3152 = vadd.xlane.f32.xlu1 %v7641_v3 }
 0x5d5   :  { %v7674_v51 = vpop.f32.mrb[24].mxu0 }
 0x5d6   :  { %3156 = vadd.xlane.f32.xlu0 %v7661_v58  ;;  %v7677_v19 = vpop.f32.mrb[25].mxu0  ;;  %v7679_v22 = vpop.f32.mrb[24].mxu1 }
 0x5d7   :  { %v7681_v12 = vpop.f32.mrb[26].mxu0  ;;  %3520 = vadd.xlane.f32.xlu1 %v7648_v20  ;;  %v7684_v27 = vpop.f32.mrb[25].mxu1 }
 0x5d8   :  { %v7686_v18 = vpop.f32.mrb[27].mxu0  ;;  %v7688_v56 = vpop.f32.mrb[26].mxu1 }
 0x5d9   :  { %v7690_v44 = vpop.f32.mrb[27].mxu1 }
 0x5da   :  { %3692 = vadd.xlane.f32.xlu0 %v7670_v5 }
 0x5db   :  { %3688 = vadd.xlane.f32.xlu1 %v7650_v2 }
 0x5dd   :  { %v7694_v40 = vpop.f32.mrb[28].mxu0 }
 0x5de   :  { %v7696_v53 = vpop.f32.mrb[29].mxu0  ;;  %3358 = vadd.xlane.f32.xlu0 %v7677_v19  ;;  %v7699_v21 = vpop.f32.mrb[28].mxu1 }
 0x5df   :  { %v7701_v26 = vpop.f32.mrb[30].mxu0  ;;  %3522 = vadd.xlane.f32.xlu1 %v7659_v41  ;;  %v7704_v35 = vpop.f32.mrb[29].mxu1 }
 0x5e0   :  { %v7706_v60 = vpop.f32.mrb[31].mxu0  ;;  %v7708_v61 = vpop.f32.mrb[30].mxu1 }
 0x5e1   :  { %v7710_v54 = vpop.f32.mrb[31].mxu1 }
 0x5e2   :  { %3160 = vadd.xlane.f32.xlu0 %v7681_v12 }
 0x5e3   :  { %3690 = vadd.xlane.f32.xlu1 %v7664_v62 }
 0x5e6   :  { %3362 = vadd.xlane.f32.xlu0 %v7696_v53 }
 0x5e7   :  { %3524 = vadd.xlane.f32.xlu1 %v7668_v9 }
 0x5ea   :  { %3164 = vadd.xlane.f32.xlu0 %v7701_v26 }
 0x5eb   :  { %3356 = vadd.xlane.f32.xlu1 %v7666_v16 }
 0x5ef   :  { %3158 = vadd.xlane.f32.xlu1 %v7674_v51 }
 0x5f3   :  { %3526 = vadd.xlane.f32.xlu1 %v7679_v22 }
 0x5f7   :  { %3694 = vadd.xlane.f32.xlu1 %v7684_v27 }
 0x5fb   :  { %3528 = vadd.xlane.f32.xlu1 %v7688_v56 }
 0x5ff   :  { %3360 = vadd.xlane.f32.xlu1 %v7686_v18 }
 0x603   :  { %3696 = vadd.xlane.f32.xlu1 %v7690_v44 }
 0x607   :  { %3162 = vadd.xlane.f32.xlu1 %v7694_v40 }
 0x60b   :  { %3530 = vadd.xlane.f32.xlu1 %v7699_v21 }
 0x60f   :  { %3698 = vadd.xlane.f32.xlu1 %v7704_v35 }
 0x613   :  { %3532 = vadd.xlane.f32.xlu1 %v7708_v61 }
 0x617   :  { %3364 = vadd.xlane.f32.xlu1 %v7706_v60 }
 0x61b   :  { %3700 = vadd.xlane.f32.xlu1 %v7710_v54 }
 0x653   :  { %v3151_v63 = vpop.xlane.xlu0 %3150 }
 0x654   :  { %v3166_v7 = vmul.f32 0.0078125, %v3151_v63  ;;  %v3519_v33 = vpop.xlane.xlu1 %3518 }
 0x655   :  { %v3534_v49 = vmul.f32 0.0078125, %v3519_v33 }
 0x656   :  { %v7747_v42 = vsub.f32 %v7634_v46, %v3166_v7 }
 0x657   :  { %v3353_v45 = vpop.xlane.xlu0 %3352  ;;  %v7750_v0 = vsub.f32 %v7639_v34, %v3534_v49 }
 0x658   :  { %v3367_v30 = vmul.f32 0.0078125, %v3353_v45  ;;  %v3182_v17 = vmul.f32 %v7747_v42, %v7747_v42  ;;  %v3351_v24 = vpop.xlane.xlu1 %3350 }
 0x659   :  { %v3366_v29 = vmul.f32 0.0078125, %v3351_v24  ;;  %v3550_v1 = vmul.f32 %v7750_v0, %v7750_v0 }
 0x65a   :  { %v7755_v55 = vsub.f32 %v7646_v37, %v3367_v30  ;;  %3190 = vadd.xlane.f32.xlu1 %v3182_v17 }
 0x65b   :  { %v3155_v52 = vpop.xlane.xlu0 %3154  ;;  %v7760_v23 = vsub.f32 %v7637_v32, %v3366_v29  ;;  %3558 = vadd.xlane.f32.xlu0 %v3550_v1 }
 0x65c   :  { %v3168_v13 = vmul.f32 0.0078125, %v3155_v52  ;;  %v3383_v14 = vmul.f32 %v7755_v55, %v7755_v55  ;;  %v3687_v31 = vpop.xlane.xlu1 %3686 }
 0x65d   :  { %v3702_v11 = vmul.f32 0.0078125, %v3687_v31  ;;  %v3382_v48 = vmul.f32 %v7760_v23, %v7760_v23 }
 0x65e   :  { %v7765_v43 = vsub.f32 %v7654_v25, %v3168_v13  ;;  %3392 = vadd.xlane.f32.xlu1 %v3383_v14 }
 0x65f   :  { %v7770_v50 = vsub.f32 %v7644_v4, %v3702_v11  ;;  %3390 = vadd.xlane.f32.xlu0 %v3382_v48  ;;  %v3355_v63 = vpop.xlane.xlu0 %3354 }
 0x660   :  { %v3184_v8 = vmul.f32 %v7765_v43, %v7765_v43  ;;  %v3153_v28 = vpop.xlane.xlu1 %3152  ;;  %v3368_v49 = vmul.f32 0.0078125, %v3355_v63  ;;  %v5313_v63 = vmov 2  }
 0x661   :  { %v3167_v46 = vmul.f32 0.0078125, %v3153_v28  ;;  %v3718_v32 = vmul.f32 %v7770_v50, %v7770_v50  ;;  %5022 = vset.pattern.permute.xlu1 %v5313_v63  ;;  %5023 = vset.pattern.permute.xlu0 %v5313_v63 }
 0x662   :  { %3194 = vadd.xlane.f32.xlu1 %v3184_v8  ;;  %v7790_v24 = vsub.f32 %v7657_v59, %v3368_v49 }
 0x663   :  { %v7777_v34 = vsub.f32 %v7641_v3, %v3167_v46  ;;  %3726 = vadd.xlane.f32.xlu0 %v3718_v32  ;;  %v3157_v1 = vpop.xlane.xlu0 %3156 }
 0x664   :  { %v3521_v37 = vpop.xlane.xlu1 %3520  ;;  %v3169_v14 = vmul.f32 0.0078125, %v3157_v1 }
 0x665   :  { %v3535_v25 = vmul.f32 0.0078125, %v3521_v37  ;;  %v3183_v4 = vmul.f32 %v7777_v34, %v7777_v34 }
 0x666   :  { %v7805_v8 = vsub.f32 %v7661_v58, %v3169_v14 }
 0x667   :  { %v7782_v7 = vsub.f32 %v7648_v20, %v3535_v25  ;;  %3192 = vadd.xlane.f32.xlu0 %v3183_v4 }
 0x668   :  { %v3689_v33 = vpop.xlane.xlu1 %3688 }
 0x669   :  { %v3703_v45 = vmul.f32 0.0078125, %v3689_v33  ;;  %v3551_v30 = vmul.f32 %v7782_v7, %v7782_v7 }
 0x66b   :  { %v7787_v3 = vsub.f32 %v7650_v2, %v3703_v45  ;;  %3560 = vadd.xlane.f32.xlu0 %v3551_v30  ;;  %v3384_v2 = vmul.f32 %v7790_v24, %v7790_v24 }
 0x66c   :  { %v3523_v17 = vpop.xlane.xlu1 %3522 }
 0x66d   :  { %v3536_v29 = vmul.f32 0.0078125, %v3523_v17  ;;  %v3719_v20 = vmul.f32 %v7787_v3, %v7787_v3 }
 0x66f   :  { %v7795_v52 = vsub.f32 %v7659_v41, %v3536_v29  ;;  %3728 = vadd.xlane.f32.xlu0 %v3719_v20  ;;  %v3693_v41 = vpop.xlane.xlu0 %3692 }
 0x670   :  { %v3691_v13 = vpop.xlane.xlu1 %3690  ;;  %v3705_v32 = vmul.f32 0.0078125, %v3693_v41 }
 0x671   :  { %v3704_v31 = vmul.f32 0.0078125, %v3691_v13  ;;  %v3552_v11 = vmul.f32 %v7795_v52, %v7795_v52 }
 0x672   :  { %v7818_v45 = vsub.f32 %v7670_v5, %v3705_v32 }
 0x673   :  { %v7802_v59 = vsub.f32 %v7664_v62, %v3704_v31  ;;  %3394 = vadd.xlane.f32.xlu0 %v3384_v2  ;;  %3562 = vadd.xlane.f32.xlu1 %v3552_v11  ;;  %v3185_v62 = vmul.f32 %v7805_v8, %v7805_v8  ;;  %v3359_v33 = vpop.xlane.xlu0 %3358 }
 0x674   :  { %v3525_v48 = vpop.xlane.xlu1 %3524  ;;  %v3370_v20 = vmul.f32 0.0078125, %v3359_v33  ;;  %v3721_v13 = vmul.f32 %v7818_v45, %v7818_v45 }
 0x675   :  { %v3537_v28 = vmul.f32 0.0078125, %v3525_v48  ;;  %v3720_v46 = vmul.f32 %v7802_v59, %v7802_v59 }
 0x677   :  { %3730 = vadd.xlane.f32.xlu0 %v3720_v46  ;;  %v7810_v25 = vsub.f32 %v7668_v9, %v3537_v28  ;;  %v3161_v14 = vpop.xlane.xlu0 %3160 }
 0x678   :  { %v3357_v37 = vpop.xlane.xlu1 %3356  ;;  %v3171_v11 = vmul.f32 0.0078125, %v3161_v14 }
 0x679   :  { %v3369_v4 = vmul.f32 0.0078125, %v3357_v37  ;;  %v3553_v9 = vmul.f32 %v7810_v25, %v7810_v25 }
 0x67a   :  { %v7843_v32 = vsub.f32 %v7681_v12, %v3171_v11 }
 0x67b   :  { %v7815_v58 = vsub.f32 %v7666_v16, %v3369_v4  ;;  %3196 = vadd.xlane.f32.xlu0 %v3185_v62 }
 0x67c   :  { %v3159_v49 = vpop.xlane.xlu1 %3158  ;;  %v3187_v63 = vmul.f32 %v7843_v32, %v7843_v32 }
 0x67d   :  { %v3170_v30 = vmul.f32 0.0078125, %v3159_v49  ;;  %v3385_v17 = vmul.f32 %v7815_v58, %v7815_v58 }
 0x67f   :  { %v7825_v29 = vsub.f32 %v7674_v51, %v3170_v30  ;;  %3564 = vadd.xlane.f32.xlu0 %v3553_v9  ;;  %3396 = vadd.xlane.f32.xlu1 %v3385_v17  ;;  %v7835_v51 = vsub.f32 %v7677_v19, %v3370_v20 }
 0x680   :  { %v3527_v16 = vpop.xlane.xlu1 %3526 }
 0x681   :  { %v3538_v1 = vmul.f32 0.0078125, %v3527_v16  ;;  %v3186_v5 = vmul.f32 %v7825_v29, %v7825_v29  ;;  %v3386_v37 = vmul.f32 %v7835_v51, %v7835_v51 }
 0x683   :  { %v7832_v31 = vsub.f32 %v7679_v22, %v3538_v1  ;;  %3732 = vadd.xlane.f32.xlu0 %v3721_v13  ;;  %3198 = vadd.xlane.f32.xlu1 %v3186_v5 }
 0x684   :  { %v3695_v2 = vpop.xlane.xlu1 %3694 }
 0x685   :  { %v3706_v48 = vmul.f32 0.0078125, %v3695_v2  ;;  %v3554_v41 = vmul.f32 %v7832_v31, %v7832_v31 }
 0x687   :  { %v7840_v28 = vsub.f32 %v7684_v27, %v3706_v48  ;;  %3566 = vadd.xlane.f32.xlu0 %v3554_v41 }
 0x688   :  { %v3529_v46 = vpop.xlane.xlu1 %3528 }
 0x689   :  { %v3539_v22 = vmul.f32 0.0078125, %v3529_v46  ;;  %v3722_v19 = vmul.f32 %v7840_v28, %v7840_v28 }
 0x68b   :  { %3398 = vadd.xlane.f32.xlu0 %v3386_v37  ;;  %3734 = vadd.xlane.f32.xlu1 %v3722_v19  ;;  %v7850_v62 = vsub.f32 %v7688_v56, %v3539_v22  ;;  %v3363_v56 = vpop.xlane.xlu0 %3362 }
 0x68c   :  { %v3361_v4 = vpop.xlane.xlu1 %3360  ;;  %v3372_v5 = vmul.f32 0.0078125, %v3363_v56 }
 0x68d   :  { %v3371_v27 = vmul.f32 0.0078125, %v3361_v4  ;;  %v3555_v30 = vmul.f32 %v7850_v62, %v7850_v62 }
 0x68e   :  { %v7875_v41 = vsub.f32 %v7696_v53, %v3372_v5 }
 0x68f   :  { %v7855_v12 = vsub.f32 %v7686_v18, %v3371_v27  ;;  %3200 = vadd.xlane.f32.xlu0 %v3187_v63 }
 0x690   :  { %v3697_v33 = vpop.xlane.xlu1 %3696  ;;  %v3388_v27 = vmul.f32 %v7875_v41, %v7875_v41 }
 0x691   :  { %v3707_v49 = vmul.f32 0.0078125, %v3697_v33  ;;  %v3387_v9 = vmul.f32 %v7855_v12, %v7855_v12 }
 0x693   :  { %v7862_v17 = vsub.f32 %v7690_v44, %v3707_v49  ;;  %3568 = vadd.xlane.f32.xlu0 %v3555_v30  ;;  %3400 = vadd.xlane.f32.xlu1 %v3387_v9  ;;  %v3165_v44 = vpop.xlane.xlu0 %3164 }
 0x694   :  { %v3163_v16 = vpop.xlane.xlu1 %3162  ;;  %v3173_v46 = vmul.f32 0.0078125, %v3165_v44 }
 0x695   :  { %v3172_v20 = vmul.f32 0.0078125, %v3163_v16  ;;  %v3723_v18 = vmul.f32 %v7862_v17, %v7862_v17 }
 0x696   :  { %v7883_v4 = vsub.f32 %v7701_v26, %v3173_v46 }
 0x697   :  { %v7867_v1 = vsub.f32 %v7694_v40, %v3172_v20  ;;  %3736 = vadd.xlane.f32.xlu0 %v3723_v18 }
 0x698   :  { %v3531_v13 = vpop.xlane.xlu1 %3530  ;;  %v3189_v49 = vmul.f32 %v7883_v4, %v7883_v4 }
 0x699   :  { %v3540_v14 = vmul.f32 0.0078125, %v3531_v13  ;;  %v3188_v2 = vmul.f32 %v7867_v1, %v7867_v1 }
 0x69b   :  { %v7872_v11 = vsub.f32 %v7699_v21, %v3540_v14  ;;  %3202 = vadd.xlane.f32.xlu1 %v3188_v2 }
 0x69c   :  { %v3699_v48 = vpop.xlane.xlu1 %3698 }
 0x69d   :  { %v3708_v22 = vmul.f32 0.0078125, %v3699_v48  ;;  %v3556_v40 = vmul.f32 %v7872_v11, %v7872_v11 }
 0x69f   :  { %v7880_v37 = vsub.f32 %v7704_v35, %v3708_v22  ;;  %3570 = vadd.xlane.f32.xlu0 %v3556_v40 }
 0x6a0   :  { %v3533_v19 = vpop.xlane.xlu1 %3532 }
 0x6a1   :  { %v3541_v21 = vmul.f32 0.0078125, %v3533_v19  ;;  %v3724_v53 = vmul.f32 %v7880_v37, %v7880_v37 }
 0x6a3   :  { %3402 = vadd.xlane.f32.xlu0 %v3388_v27  ;;  %3738 = vadd.xlane.f32.xlu1 %v3724_v53  ;;  %v7890_v33 = vsub.f32 %v7708_v61, %v3541_v21 }
 0x6a4   :  { %v3365_v63 = vpop.xlane.xlu1 %3364 }
 0x6a5   :  { %v3373_v35 = vmul.f32 0.0078125, %v3365_v63  ;;  %v3557_v56 = vmul.f32 %v7890_v33, %v7890_v33  ;;  %v5197_v63 = vld [vmem:[%s8012_s3] sm:$0xff] }
 0x6a7   :  { %v7895_v26 = vsub.f32 %v7706_v60, %v3373_v35  ;;  %3204 = vadd.xlane.f32.xlu0 %v3189_v49 }
 0x6a8   :  { %v3701_v30 = vpop.xlane.xlu1 %3700 }
 0x6a9   :  { %v3709_v9 = vmul.f32 0.0078125, %v3701_v30  ;;  %v3389_v16 = vmul.f32 %v7895_v26, %v7895_v26 }
 0x6ab   :  { %v7902_v20 = vsub.f32 %v7710_v54, %v3709_v9  ;;  %3572 = vadd.xlane.f32.xlu0 %v3557_v56  ;;  %3404 = vadd.xlane.f32.xlu1 %v3389_v16 }
 0x6ad   :  { %v3725_v61 = vmul.f32 %v7902_v20, %v7902_v20 }
 0x6af   :  { %3740 = vadd.xlane.f32.xlu0 %v3725_v61 }
 0x6e7   :  { %v3191_v60 = vpop.xlane.xlu1 %3190 }
 0x6e8   :  { %v3206_v18 = vmul.f32 0.0078125, %v3191_v60  ;;  %v3559_v13 = vpop.xlane.xlu0 %3558 }
 0x6e9   :  { %v3574_v14 = vmul.f32 0.0078125, %v3559_v13 }
 0x6ea   :  { %v3214_v5 = vadd.f32 1e-05, %v3206_v18 }
 0x6eb   :  { %v3582_v2 = vadd.f32 1e-05, %v3574_v14  ;;  %v3393_v19 = vpop.xlane.xlu1 %3392 }
 0x6ec   :  { %5120 = vrsqrt.f32 %v3214_v5  ;;  %v3391_v44 = vpop.xlane.xlu0 %3390  ;;  %v3407_v30 = vmul.f32 0.0078125, %v3393_v19 }
 0x6ed   :  { %5122 = vrsqrt.f32 %v3582_v2  ;;  %v3406_v48 = vmul.f32 0.0078125, %v3391_v44 }
 0x6ee   :  { %v3415_v18 = vadd.f32 1e-05, %v3407_v30 }
 0x6ef   :  { %v3414_v46 = vadd.f32 1e-05, %v3406_v48  ;;  %v3195_v5 = vpop.xlane.xlu1 %3194 }
 0x6f0   :  { %v3727_v22 = vpop.xlane.xlu0 %3726 }
 0x6f1   :  { %5124 = vrsqrt.f32 %v3414_v46  ;;  %v3742_v54 = vmul.f32 0.0078125, %v3727_v22  ;;  %v3208_v46 = vmul.f32 0.0078125, %v3195_v5 }
 0x6f3   :  { %v3750_v40 = vadd.f32 1e-05, %v3742_v54 }
 0x6f4   :  { %v3193_v21 = vpop.xlane.xlu0 %3192 }
 0x6f5   :  { %5126 = vrsqrt.f32 %v3750_v40  ;;  %v3207_v53 = vmul.f32 0.0078125, %v3193_v21 }
 0x6f6   :  { %v5121_v27 = vpop.eup %5120 }
 0x6f7   :  { %v3230_v35 = vmul.f32 %v5197_v63, %v5121_v27  ;;  %v5123_v49 = vpop.eup %5122  ;;  %v3215_v9 = vadd.f32 1e-05, %v3207_v53  ;;  %v3216_v53 = vadd.f32 1e-05, %v3208_v46 }
 0x6f8   :  { %v3561_v56 = vpop.xlane.xlu0 %3560  ;;  %v3598_v16 = vmul.f32 %v5197_v63, %v5123_v49 }
 0x6f9   :  { %3240 = vperm.xlu1 %5022, %v3230_v35   ;;  %5128 = vrsqrt.f32 %v3215_v9  ;;  %v3575_v61 = vmul.f32 0.0078125, %v3561_v56  ;;  %v5198_v9 = vld [vmem:[%s8012_s3 + $0x8] sm:$0xff] }
 0x6fa   :  { %3608 = vperm.xlu0 %5023, %v3598_v16  }
 0x6fb   :  { %v5125_v60 = vpop.eup %5124  ;;  %v3583_v13 = vadd.f32 1e-05, %v3575_v61 }
 0x6fc   :  { %v3729_v14 = vpop.xlane.xlu0 %3728  ;;  %v3430_v2 = vmul.f32 %v5197_v63, %v5125_v60 }
 0x6fd   :  { %5130 = vrsqrt.f32 %v3583_v13  ;;  %v3743_v44 = vmul.f32 0.0078125, %v3729_v14 }
 0x6fe   :  { %3440 = vperm.xlu0 %5023, %v3430_v2   ;;  %5132 = vrsqrt.f32 %v3415_v18 }
 0x6ff   :  { %v5127_v48 = vpop.eup %5126  ;;  %v3751_v22 = vadd.f32 1e-05, %v3743_v44 }
 0x700   :  { %v3395_v54 = vpop.xlane.xlu0 %3394  ;;  %v3563_v40 = vpop.xlane.xlu1 %3562  ;;  %v3766_v19 = vmul.f32 %v5197_v63, %v5127_v48 }
 0x701   :  { %v3576_v21 = vmul.f32 0.0078125, %v3563_v40  ;;  %5134 = vrsqrt.f32 %v3751_v22  ;;  %v3408_v35 = vmul.f32 0.0078125, %v3395_v54 }
 0x702   :  { %3776 = vperm.xlu0 %5023, %v3766_v19  }
 0x703   :  { %v5129_v27 = vpop.eup %5128  ;;  %v3584_v49 = vadd.f32 1e-05, %v3576_v21  ;;  %v3416_v60 = vadd.f32 1e-05, %v3408_v35 }
 0x704   :  { %v3731_v30 = vpop.xlane.xlu0 %3730  ;;  %v3231_v56 = vmul.f32 %v5198_v9, %v5129_v27 }
 0x705   :  { %v3744_v16 = vmul.f32 0.0078125, %v3731_v30  ;;  %5136 = vrsqrt.f32 %v3584_v49 }
 0x706   :  { %3245 = vperm.xlu0 %5023, %v3231_v56   ;;  %5138 = vrsqrt.f32 %v3216_v53 }
 0x707   :  { %v5131_v61 = vpop.eup %5130  ;;  %v3752_v63 = vadd.f32 1e-05, %v3744_v16  ;;  %v5199_v16 = vld [vmem:[%s8012_s3 + $0x10] sm:$0xff] }
 0x708   :  { %v3197_v18 = vpop.xlane.xlu0 %3196  ;;  %v3599_v13 = vmul.f32 %v5198_v9, %v5131_v61  ;;  %v5133_v5 = vpop.eup %5132 }
 0x709   :  { %5140 = vrsqrt.f32 %v3752_v63  ;;  %v3209_v14 = vmul.f32 0.0078125, %v3197_v18  ;;  %v3431_v46 = vmul.f32 %v5198_v9, %v5133_v5 }
 0x70a   :  { %3613 = vperm.xlu1 %5022, %v3599_v13   ;;  %5142 = vrsqrt.f32 %v3416_v60 }
 0x70b   :  { %v3217_v2 = vadd.f32 1e-05, %v3209_v14  ;;  %v5135_v22 = vpop.eup %5134 }
 0x70c   :  { %v3565_v44 = vpop.xlane.xlu0 %3564  ;;  %v3397_v48 = vpop.xlane.xlu1 %3396  ;;  %v3767_v49 = vmul.f32 %v5198_v9, %v5135_v22 }
 0x70d   :  { %v3577_v54 = vmul.f32 0.0078125, %v3565_v44  ;;  %v3409_v40 = vmul.f32 0.0078125, %v3397_v48  ;;  %5144 = vrsqrt.f32 %v3217_v2 }
 0x70e   :  { %3445 = vperm.xlu1 %5022, %v3431_v46  }
 0x70f   :  { %v3585_v19 = vadd.f32 1e-05, %v3577_v54  ;;  %v3417_v21 = vadd.f32 1e-05, %v3409_v40  ;;  %v5137_v27 = vpop.eup %5136 }
 0x710   :  { %v3733_v53 = vpop.xlane.xlu0 %3732  ;;  %v3199_v35 = vpop.xlane.xlu1 %3198  ;;  %v3600_v61 = vmul.f32 %v5199_v16, %v5137_v27 }
 0x711   :  { %v5139_v30 = vpop.eup %5138  ;;  %v3745_v56 = vmul.f32 0.0078125, %v3733_v53  ;;  %5146 = vrsqrt.f32 %v3417_v21  ;;  %v3210_v18 = vmul.f32 0.0078125, %v3199_v35 }
 0x712   :  { %3781 = vperm.xlu1 %5022, %v3767_v49   ;;  %5148 = vrsqrt.f32 %v3585_v19  ;;  %3618 = vperm.xlu0 %5023, %v3600_v61   ;;  %v3232_v5 = vmul.f32 %v5199_v16, %v5139_v30  ;;  %v5200_v30 = vld [vmem:[%s8012_s3 + $0x18] sm:$0xff] }
 0x713   :  { %v5141_v60 = vpop.eup %5140  ;;  %v3753_v63 = vadd.f32 1e-05, %v3745_v56  ;;  %v3218_v9 = vadd.f32 1e-05, %v3210_v18 }
 0x714   :  { %v3567_v13 = vpop.xlane.xlu0 %3566  ;;  %v3768_v14 = vmul.f32 %v5199_v16, %v5141_v60  ;;  %v5143_v2 = vpop.eup %5142 }
 0x715   :  { %v3578_v44 = vmul.f32 0.0078125, %v3567_v13  ;;  %5150 = vrsqrt.f32 %v3753_v63  ;;  %v3432_v54 = vmul.f32 %v5199_v16, %v5143_v2 }
 0x716   :  { %3250 = vperm.xlu1 %5022, %v3232_v5   ;;  %3786 = vperm.xlu0 %5023, %v3768_v14  }
 0x717   :  { %v3586_v48 = vadd.f32 1e-05, %v3578_v44  ;;  %v5145_v40 = vpop.eup %5144 }
 0x718   :  { %v3399_v46 = vpop.xlane.xlu0 %3398  ;;  %v3735_v22 = vpop.xlane.xlu1 %3734  ;;  %v3233_v56 = vmul.f32 %v5200_v30, %v5145_v40 }
 0x719   :  { %5152 = vrsqrt.f32 %v3586_v48  ;;  %v3410_v21 = vmul.f32 0.0078125, %v3399_v46  ;;  %v3746_v19 = vmul.f32 0.0078125, %v3735_v22 }
 0x71a   :  { %3450 = vperm.xlu1 %5022, %v3432_v54   ;;  %5154 = vrsqrt.f32 %v3218_v9  ;;  %v5201_v54 = vld [vmem:[%s8012_s3 + $0x20] sm:$0xff] }
 0x71b   :  { %v3418_v27 = vadd.f32 1e-05, %v3410_v21  ;;  %v3754_v53 = vadd.f32 1e-05, %v3746_v19  ;;  %v5147_v35 = vpop.eup %5146 }
 0x71c   :  { %v3201_v49 = vpop.xlane.xlu0 %3200  ;;  %v5149_v61 = vpop.eup %5148  ;;  %v3433_v63 = vmul.f32 %v5200_v30, %v5147_v35 }
 0x71d   :  { %v3211_v60 = vmul.f32 0.0078125, %v3201_v49  ;;  %5156 = vrsqrt.f32 %v3754_v53  ;;  %v3601_v5 = vmul.f32 %v5200_v30, %v5149_v61 }
 0x71e   :  { %3255 = vperm.xlu1 %5022, %v3233_v56   ;;  %5158 = vrsqrt.f32 %v3418_v27  ;;  %3455 = vperm.xlu0 %5023, %v3433_v63  }
 0x71f   :  { %v3219_v16 = vadd.f32 1e-05, %v3211_v60  ;;  %v5151_v14 = vpop.eup %5150 }
 0x720   :  { %v3569_v18 = vpop.xlane.xlu0 %3568  ;;  %v3401_v13 = vpop.xlane.xlu1 %3400  ;;  %v3769_v22 = vmul.f32 %v5200_v30, %v5151_v14 }
 0x721   :  { %v3579_v2 = vmul.f32 0.0078125, %v3569_v18  ;;  %5160 = vrsqrt.f32 %v3219_v16  ;;  %v3411_v48 = vmul.f32 0.0078125, %v3401_v13 }
 0x722   :  { %3623 = vperm.xlu1 %5022, %v3601_v5  }
 0x723   :  { %v5153_v44 = vpop.eup %5152  ;;  %v3587_v9 = vadd.f32 1e-05, %v3579_v2  ;;  %v3419_v19 = vadd.f32 1e-05, %v3411_v48 }
 0x724   :  { %v3737_v46 = vpop.xlane.xlu0 %3736  ;;  %v3602_v40 = vmul.f32 %v5201_v54, %v5153_v44  ;;  %v5155_v21 = vpop.eup %5154 }
 0x725   :  { %5162 = vrsqrt.f32 %v3587_v9  ;;  %v3747_v27 = vmul.f32 0.0078125, %v3737_v46  ;;  %v3234_v49 = vmul.f32 %v5201_v54, %v5155_v21  ;;  %v5202_v9 = vld [vmem:[%s8012_s3 + $0x28] sm:$0xff] }
 0x726   :  { %3791 = vperm.xlu1 %5022, %v3769_v22   ;;  %3628 = vperm.xlu0 %5023, %v3602_v40   ;;  %5164 = vrsqrt.f32 %v3419_v19 }
 0x727   :  { %v5157_v53 = vpop.eup %5156  ;;  %v3755_v60 = vadd.f32 1e-05, %v3747_v27 }
 0x728   :  { %v3203_v35 = vpop.xlane.xlu1 %3202  ;;  %v5159_v56 = vpop.eup %5158  ;;  %v3770_v61 = vmul.f32 %v5201_v54, %v5157_v53 }
 0x729   :  { %v3212_v30 = vmul.f32 0.0078125, %v3203_v35  ;;  %v3434_v16 = vmul.f32 %v5201_v54, %v5159_v56  ;;  %5166 = vrsqrt.f32 %v3755_v60 }
 0x72a   :  { %3260 = vperm.xlu1 %5022, %v3234_v49   ;;  %3796 = vperm.xlu0 %5023, %v3770_v61  }
 0x72b   :  { %v5161_v18 = vpop.eup %5160  ;;  %v3220_v5 = vadd.f32 1e-05, %v3212_v30 }
 0x72c   :  { %v3571_v63 = vpop.xlane.xlu0 %3570  ;;  %v3235_v48 = vmul.f32 %v5202_v9, %v5161_v18 }
 0x72d   :  { %v3580_v13 = vmul.f32 0.0078125, %v3571_v63 }
 0x72e   :  { %3460 = vperm.xlu1 %5022, %v3434_v16  }
 0x72f   :  { %v3588_v14 = vadd.f32 1e-05, %v3580_v13  ;;  %v5163_v46 = vpop.eup %5162 }
 0x730   :  { %v3403_v2 = vpop.xlane.xlu0 %3402  ;;  %v3739_v44 = vpop.xlane.xlu1 %3738  ;;  %v3603_v27 = vmul.f32 %v5202_v9, %v5163_v46 }
 0x731   :  { %5168 = vrsqrt.f32 %v3588_v14  ;;  %v3412_v22 = vmul.f32 0.0078125, %v3403_v2  ;;  %v3748_v40 = vmul.f32 0.0078125, %v3739_v44  ;;  %v5165_v53 = vpop.eup %5164  ;;  %v5203_v2 = vld [vmem:[%s8012_s3 + $0x30] sm:$0xff] }
 0x732   :  { %3265 = vperm.xlu1 %5022, %v3235_v48   ;;  %5170 = vrsqrt.f32 %v3220_v5  ;;  %v3435_v60 = vmul.f32 %v5202_v9, %v5165_v53 }
 0x733   :  { %v3420_v54 = vadd.f32 1e-05, %v3412_v22  ;;  %v3756_v21 = vadd.f32 1e-05, %v3748_v40  ;;  %v5167_v30 = vpop.eup %5166 }
 0x734   :  { %v3205_v19 = vpop.xlane.xlu0 %3204  ;;  %v3771_v48 = vmul.f32 %v5202_v9, %v5167_v30 }
 0x735   :  { %5172 = vrsqrt.f32 %v3420_v54  ;;  %v3213_v35 = vmul.f32 0.0078125, %v3205_v19 }
 0x736   :  { %3633 = vperm.xlu1 %5022, %v3603_v27   ;;  %5174 = vrsqrt.f32 %v3756_v21 }
 0x737   :  { %v3221_v49 = vadd.f32 1e-05, %v3213_v35  ;;  %v5204_v35 = vld [vmem:[%s8012_s3 + $0x38] sm:$0xff]  ;;  %s5314_s3 = smov [#allocation9]  }
 0x738   :  { %v3573_v56 = vpop.xlane.xlu0 %3572  ;;  %v3405_v61 = vpop.xlane.xlu1 %3404  ;;  %s3859_s12 = sshll.u32 %s5314_s3, 4  ;;  %s3860_s12 = int_to_ptr.vmem [resolvable:$true] %s3859_s12 }
 0x739   :  { %5176 = vrsqrt.f32 %v3221_v49  ;;  %v3581_v63 = vmul.f32 0.0078125, %v3573_v56  ;;  %v3413_v16 = vmul.f32 0.0078125, %v3405_v61  ;;  %s5271_s2 = scalar_lea.vmem %s3860_s12, 4096  ;;  %p5276_p11 = scmp.lt.s32.totalorder %s3860_s12, %s3860_s12 }
 0x73a   :  { %3465 = vperm.xlu1 %5022, %v3435_v60   ;;  %p5272_p10 = scmp.ne.s32.totalorder %s3860_s12, %s5271_s2  ;;  %p5277_p12 = scmp.lt.s32.totalorder %s5271_s2, %s5271_s2 }
 0x73b   :  { %v5169_v18 = vpop.eup %5168  ;;  %v3589_v13 = vadd.f32 1e-05, %v3581_v63  ;;  %v3421_v5 = vadd.f32 1e-05, %v3413_v16 }
 0x73c   :  { %v3741_v14 = vpop.xlane.xlu0 %3740  ;;  %v3604_v44 = vmul.f32 %v5203_v2, %v5169_v18  ;;  %v5171_v46 = vpop.eup %5170  ;;  %p5278_p13 = por %p5277_p12, %p5276_p11 }
 0x73d   :  { %5178 = vrsqrt.f32 %v3589_v13  ;;  %v3749_v22 = vmul.f32 0.0078125, %v3741_v14  ;;  %v3236_v19 = vmul.f32 %v5203_v2, %v5171_v46 }
 0x73e   :  { %3638 = vperm.xlu0 %5023, %v3604_v44   ;;  %3801 = vperm.xlu1 %5022, %v3771_v48   ;;  %5180 = vrsqrt.f32 %v3421_v5  ;;  %v3326_v5 = vld [vmem:[#allocation3] sm:$0xff]  ;;  %v3662_v48 = vld [vmem:[#allocation3 + $0x10] sm:$0xff]  ;;  %p5279_p0 = pnand %p5278_p13, %p5272_p10 }
 0x73f   :  { %v5173_v40 = vpop.eup %5172  ;;  %v3757_v54 = vadd.f32 1e-05, %v3749_v22 }
 0x740   :  { %v3436_v21 = vmul.f32 %v5203_v2, %v5173_v40  ;;  %v5175_v27 = vpop.eup %5174 }
 0x741   :  { %5182 = vrsqrt.f32 %v3757_v54  ;;  %v3772_v49 = vmul.f32 %v5203_v2, %v5175_v27 }
 0x742   :  { %3470 = vperm.xlu0 %5023, %v3436_v21   ;;  %3270 = vperm.xlu1 %5022, %v3236_v19   ;;  %v3494_v19 = vld [vmem:[#allocation3 + $0x8] sm:$0xff] }
 0x743   :  { %v5177_v53 = vpop.eup %5176 }
 0x744   :  { %v3237_v9 = vmul.f32 %v5204_v35, %v5177_v53 }
 0x746   :  { %3275 = vperm.xlu1 %5022, %v3237_v9   ;;  %3806 = vperm.xlu0 %5023, %v3772_v49   ;;  %v3830_v9 = vld [vmem:[#allocation3 + $0x18] sm:$0xff] }
 0x747   :  { %v5179_v56 = vpop.eup %5178 }
 0x748   :  { %v3605_v61 = vmul.f32 %v5204_v35, %v5179_v56  ;;  %v5181_v60 = vpop.eup %5180 }
 0x749   :  { %v3437_v30 = vmul.f32 %v5204_v35, %v5181_v60  ;;  %v3327_v60 = vld [vmem:[#allocation3 + $0x20] sm:$0xff] }
 0x74a   :  { %3643 = vperm.xlu1 %5022, %v3605_v61  }
 0x74b   :  { %v5183_v63 = vpop.eup %5182 }
 0x74c   :  { %v3773_v16 = vmul.f32 %v5204_v35, %v5183_v63 }
 0x74e   :  { %3475 = vperm.xlu1 %5022, %v3437_v30  }
 0x752   :  { %3811 = vperm.xlu1 %5022, %v3773_v16  }
 0x778   :  { %v3241_v18 = vpop.permute.xlu1 %3240 }
 0x779   :  { %v3278_v13 = vmul.f32 %v3241_v18, %v7747_v42  ;;  %v3609_v14 = vpop.permute.xlu0 %3608  ;;  %v3663_v18 = vld [vmem:[#allocation3 + $0x30] sm:$0xff] }
 0x77a   :  { %v3646_v2 = vmul.f32 %v3609_v14, %v7750_v0  ;;  %v3495_v14 = vld [vmem:[#allocation3 + $0x28] sm:$0xff] }
 0x77b   :  { %v3318_v44 = vadd.f32 %v7730_v39, %v3278_v13 }
 0x77c   :  { %v3654_v22 = vadd.f32 %v3646_v2, %v7730_v39 }
 0x77d   :  { %v3334_v46 = vadd.f32 %v3326_v5, %v3318_v44  ;;  %v3441_v40 = vpop.permute.xlu0 %3440 }
 0x77e   :  { %v3670_v54 = vadd.f32 %v3662_v48, %v3654_v22  ;;  %v3478_v21 = vmul.f32 %v3441_v40, %v7760_v23  ;;  %v3664_v40 = vld [vmem:[#allocation3 + $0x50] sm:$0xff] }
 0x77f   :  { %3342 = vst [vmem:[#allocation9] sm:$0xff] %v3334_v46 }
 0x780   :  { %3678 = vst [vmem:[#allocation9 + $0x10] sm:$0xff] %v3670_v54  ;;  %v3486_v27 = vadd.f32 %v3478_v21, %v7730_v39 }
 0x781   :  { %v3777_v42 = vpop.permute.xlu0 %3776 }
 0x782   :  { %v3502_v53 = vadd.f32 %v3494_v19, %v3486_v27  ;;  %v3814_v35 = vmul.f32 %v3777_v42, %v7770_v50 }
 0x784   :  { %3510 = vst [vmem:[#allocation9 + $0x8] sm:$0xff] %v3502_v53  ;;  %v3822_v0 = vadd.f32 %v3814_v35, %v7730_v39 }
 0x785   :  { %v3246_v49 = vpop.permute.xlu0 %3245 }
 0x786   :  { %v3838_v56 = vadd.f32 %v3830_v9, %v3822_v0  ;;  %v3279_v61 = vmul.f32 %v3246_v49, %v7777_v34  ;;  %v3328_v9 = vld [vmem:[#allocation3 + $0x40] sm:$0xff] }
 0x788   :  { %3846 = vst [vmem:[#allocation9 + $0x18] sm:$0xff] %v3838_v56  ;;  %v3319_v23 = vadd.f32 %v7732_v6, %v3279_v61 }
 0x789   :  { %v3614_v30 = vpop.permute.xlu1 %3613 }
 0x78a   :  { %v3335_v63 = vadd.f32 %v3327_v60, %v3319_v23  ;;  %v3647_v16 = vmul.f32 %v3614_v30, %v7782_v7  ;;  %v3831_v7 = vld [vmem:[#allocation3 + $0x38] sm:$0xff]  ;;  %v3496_v60 = vld [vmem:[#allocation3 + $0x48] sm:$0xff] }
 0x78c   :  { %3343 = vst [vmem:[#allocation9 + $0x20] sm:$0xff] %v3335_v63  ;;  %v3655_v50 = vadd.f32 %v3647_v16, %v7732_v6 }
 0x78d   :  { %v3446_v13 = vpop.permute.xlu1 %3445 }
 0x78e   :  { %v3671_v5 = vadd.f32 %v3663_v18, %v3655_v50  ;;  %v3479_v39 = vmul.f32 %v3446_v13, %v7755_v55  ;;  %v3329_v18 = vld [vmem:[#allocation3 + $0x60] sm:$0xff]  ;;  %v3497_v50 = vld [vmem:[#allocation3 + $0x68] sm:$0xff] }
 0x790   :  { %3679 = vst [vmem:[#allocation9 + $0x30] sm:$0xff] %v3671_v5  ;;  %v3487_v34 = vadd.f32 %v3479_v39, %v7732_v6 }
 0x791   :  { %v3782_v44 = vpop.permute.xlu1 %3781  ;;  %v3619_v48 = vpop.permute.xlu0 %3618 }
 0x792   :  { %v3503_v2 = vadd.f32 %v3495_v14, %v3487_v34  ;;  %v3815_v46 = vmul.f32 %v3782_v44, %v7787_v3  ;;  %v3648_v22 = vmul.f32 %v3619_v48, %v7795_v52  ;;  %v3832_v3 = vld [vmem:[#allocation3 + $0x58] sm:$0xff]  ;;  %v3665_v34 = vld [vmem:[#allocation3 + $0x70] sm:$0xff] }
 0x794   :  { %3511 = vst [vmem:[#allocation9 + $0x28] sm:$0xff] %v3503_v2  ;;  %v3823_v54 = vadd.f32 %v3815_v46, %v7732_v6  ;;  %v3656_v21 = vadd.f32 %v3648_v22, %v7734_v36  ;;  %v3666_v22 = vld [vmem:[#allocation3 + $0x90] sm:$0xff] }
 0x795   :  { %v3251_v19 = vpop.permute.xlu1 %3250  ;;  %v3787_v27 = vpop.permute.xlu0 %3786 }
 0x796   :  { %v3839_v55 = vadd.f32 %v3831_v7, %v3823_v54  ;;  %v3280_v42 = vmul.f32 %v3251_v19, %v7765_v43  ;;  %v3672_v53 = vadd.f32 %v3664_v40, %v3656_v21  ;;  %v3816_v35 = vmul.f32 %v3787_v27, %v7802_v59  ;;  %v3833_v7 = vld [vmem:[#allocation3 + $0x78] sm:$0xff] }
 0x798   :  { %3847 = vst [vmem:[#allocation9 + $0x38] sm:$0xff] %v3839_v55  ;;  %v3320_v52 = vadd.f32 %v7734_v36, %v3280_v42  ;;  %3680 = vst [vmem:[#allocation9 + $0x50] sm:$0xff] %v3672_v53  ;;  %v3824_v0 = vadd.f32 %v3816_v35, %v7734_v36  ;;  %v3330_v53 = vld [vmem:[#allocation3 + $0x80] sm:$0xff] }
 0x799   :  { %v3451_v49 = vpop.permute.xlu1 %3450 }
 0x79a   :  { %v3336_v6 = vadd.f32 %v3328_v9, %v3320_v52  ;;  %v3480_v56 = vmul.f32 %v3451_v49, %v7790_v24  ;;  %v3840_v61 = vadd.f32 %v3832_v3, %v3824_v0  ;;  %v3498_v0 = vld [vmem:[#allocation3 + $0x88] sm:$0xff] }
 0x79c   :  { %3344 = vst [vmem:[#allocation9 + $0x40] sm:$0xff] %v3336_v6  ;;  %v3488_v43 = vadd.f32 %v3480_v56, %v7734_v36  ;;  %3848 = vst [vmem:[#allocation9 + $0x58] sm:$0xff] %v3840_v61  ;;  %v3331_v56 = vld [vmem:[#allocation3 + $0xa0] sm:$0xff] }
 0x79d   :  { %v3256_v23 = vpop.permute.xlu1 %3255  ;;  %v3456_v30 = vpop.permute.xlu0 %3455 }
 0x79e   :  { %v3504_v59 = vadd.f32 %v3496_v60, %v3488_v43  ;;  %v3281_v63 = vmul.f32 %v3256_v23, %v7805_v8  ;;  %v3481_v16 = vmul.f32 %v3456_v30, %v7815_v58 }
 0x7a0   :  { %3512 = vst [vmem:[#allocation9 + $0x48] sm:$0xff] %v3504_v59  ;;  %v3321_v13 = vadd.f32 %v7736_v10, %v3281_v63  ;;  %v3489_v24 = vadd.f32 %v3481_v16, %v7736_v10  ;;  %v3667_v59 = vld [vmem:[#allocation3 + $0xb0] sm:$0xff]  ;;  %v3499_v16 = vld [vmem:[#allocation3 + $0xa8] sm:$0xff] }
 0x7a1   :  { %v3624_v5 = vpop.permute.xlu1 %3623 }
 0x7a2   :  { %v3337_v39 = vadd.f32 %v3329_v18, %v3321_v13  ;;  %v3649_v14 = vmul.f32 %v3624_v5, %v7810_v25  ;;  %v3505_v36 = vadd.f32 %v3497_v50, %v3489_v24 }
 0x7a4   :  { %3345 = vst [vmem:[#allocation9 + $0x60] sm:$0xff] %v3337_v39  ;;  %v3657_v44 = vadd.f32 %v3649_v14, %v7736_v10  ;;  %3513 = vst [vmem:[#allocation9 + $0x68] sm:$0xff] %v3505_v36  ;;  %v3835_v39 = vld [vmem:[#allocation3 + $0xb8] sm:$0xff] }
 0x7a5   :  { %v3629_v8 = vpop.permute.xlu0 %3628  ;;  %v3792_v2 = vpop.permute.xlu1 %3791 }
 0x7a6   :  { %v3673_v58 = vadd.f32 %v3665_v34, %v3657_v44  ;;  %v3650_v48 = vmul.f32 %v3629_v8, %v7832_v31  ;;  %v3817_v46 = vmul.f32 %v3792_v2, %v7818_v45  ;;  %v3834_v31 = vld [vmem:[#allocation3 + $0x98] sm:$0xff] }
 0x7a8   :  { %3681 = vst [vmem:[#allocation9 + $0x70] sm:$0xff] %v3673_v58  ;;  %v3658_v40 = vadd.f32 %v3650_v48, %v7740_v38  ;;  %v3825_v25 = vadd.f32 %v3817_v46, %v7736_v10  ;;  %v3500_v48 = vld [vmem:[#allocation3 + $0xc8] sm:$0xff]  ;;  %v3332_v46 = vld [vmem:[#allocation3 + $0xc0] sm:$0xff] }
 0x7a9   :  { %v3261_v54 = vpop.permute.xlu1 %3260  ;;  %v3797_v55 = vpop.permute.xlu0 %3796 }
 0x7aa   :  { %v3674_v21 = vadd.f32 %v3666_v22, %v3658_v40  ;;  %v3841_v19 = vadd.f32 %v3833_v7, %v3825_v25  ;;  %v3282_v27 = vmul.f32 %v3261_v54, %v7825_v29  ;;  %v3818_v42 = vmul.f32 %v3797_v55, %v7840_v28 }
 0x7ac   :  { %3682 = vst [vmem:[#allocation9 + $0x90] sm:$0xff] %v3674_v21  ;;  %3849 = vst [vmem:[#allocation9 + $0x78] sm:$0xff] %v3841_v19  ;;  %v3322_v45 = vadd.f32 %v7740_v38, %v3282_v27  ;;  %v3826_v35 = vadd.f32 %v3818_v42, %v7740_v38  ;;  %v3836_v21 = vld [vmem:[#allocation3 + $0xd8] sm:$0xff] }
 0x7ad   :  { %v3461_v9 = vpop.permute.xlu1 %3460 }
 0x7ae   :  { %v3338_v3 = vadd.f32 %v3330_v53, %v3322_v45  ;;  %v3482_v10 = vmul.f32 %v3461_v9, %v7835_v51  ;;  %v3842_v52 = vadd.f32 %v3834_v31, %v3826_v35  ;;  %v3669_v31 = vld [vmem:[#allocation3 + $0xf0] sm:$0xff]  ;;  %v3501_v9 = vld [vmem:[#allocation3 + $0xe8] sm:$0xff] }
 0x7b0   :  { %3346 = vst [vmem:[#allocation9 + $0x80] sm:$0xff] %v3338_v3  ;;  %v3490_v49 = vadd.f32 %v3482_v10, %v7740_v38  ;;  %3850 = vst [vmem:[#allocation9 + $0x98] sm:$0xff] %v3842_v52 }
 0x7b1   :  { %v3266_v29 = vpop.permute.xlu1 %3265 }
 0x7b2   :  { %v3506_v28 = vadd.f32 %v3498_v0, %v3490_v49  ;;  %v3283_v6 = vmul.f32 %v3266_v29, %v7843_v32  ;;  %v3837_v0 = vld [vmem:[#allocation3 + $0xf8] sm:$0xff] }
 0x7b4   :  { %3514 = vst [vmem:[#allocation9 + $0x88] sm:$0xff] %v3506_v28  ;;  %v3323_v61 = vadd.f32 %v7738_v15, %v3283_v6 }
 0x7b5   :  { %v3634_v60 = vpop.permute.xlu1 %3633 }
 0x7b6   :  { %v3339_v43 = vadd.f32 %v3331_v56, %v3323_v61  ;;  %v3651_v23 = vmul.f32 %v3634_v60, %v7850_v62  ;;  %v3668_v62 = vld [vmem:[#allocation3 + $0xd0] sm:$0xff] }
 0x7b8   :  { %3347 = vst [vmem:[#allocation9 + $0xa0] sm:$0xff] %v3339_v43  ;;  %v3659_v51 = vadd.f32 %v3651_v23, %v7738_v15 }
 0x7b9   :  { %v3466_v30 = vpop.permute.xlu1 %3465 }
 0x7ba   :  { %v3675_v63 = vadd.f32 %v3667_v59, %v3659_v51  ;;  %v3483_v38 = vmul.f32 %v3466_v30, %v7855_v12 }
 0x7bc   :  { %3683 = vst [vmem:[#allocation9 + $0xb0] sm:$0xff] %v3675_v63  ;;  %v3491_v32 = vadd.f32 %v3483_v38, %v7738_v15 }
 0x7bd   :  { %v3639_v18 = vpop.permute.xlu0 %3638  ;;  %v3802_v50 = vpop.permute.xlu1 %3801 }
 0x7be   :  { %v3507_v13 = vadd.f32 %v3499_v16, %v3491_v32  ;;  %v3652_v24 = vmul.f32 %v3639_v18, %v7872_v11  ;;  %v3819_v5 = vmul.f32 %v3802_v50, %v7862_v17 }
 0x7c0   :  { %3515 = vst [vmem:[#allocation9 + $0xa8] sm:$0xff] %v3507_v13  ;;  %v3660_v14 = vadd.f32 %v3652_v24, %v7744_v47  ;;  %v3827_v36 = vadd.f32 %v3819_v5, %v7738_v15 }
 0x7c1   :  { %v3471_v34 = vpop.permute.xlu0 %3470  ;;  %v3271_v12 = vpop.permute.xlu1 %3270 }
 0x7c2   :  { %v3676_v44 = vadd.f32 %v3668_v62, %v3660_v14  ;;  %v3843_v8 = vadd.f32 %v3835_v39, %v3827_v36  ;;  %v3484_v2 = vmul.f32 %v3471_v34, %v7875_v41  ;;  %v3284_v58 = vmul.f32 %v3271_v12, %v7867_v1  ;;  %v3333_v41 = vld [vmem:[#allocation3 + $0xe0] sm:$0xff] }
 0x7c4   :  { %3684 = vst [vmem:[#allocation9 + $0xd0] sm:$0xff] %v3676_v44  ;;  %3851 = vst [vmem:[#allocation9 + $0xb8] sm:$0xff] %v3843_v8  ;;  %v3492_v17 = vadd.f32 %v3484_v2, %v7744_v47  ;;  %v3324_v11 = vadd.f32 %v7744_v47, %v3284_v58 }
 0x7c5   :  { %v3807_v22 = vpop.permute.xlu0 %3806  ;;  %v3276_v7 = vpop.permute.xlu1 %3275 }
 0x7c6   :  { %v3508_v40 = vadd.f32 %v3500_v48, %v3492_v17  ;;  %v3340_v15 = vadd.f32 %v3332_v46, %v3324_v11  ;;  %v3820_v25 = vmul.f32 %v3807_v22, %v7880_v37  ;;  %v3285_v54 = vmul.f32 %v3276_v7, %v7883_v4 }
 0x7c8   :  { %3516 = vst [vmem:[#allocation9 + $0xc8] sm:$0xff] %v3508_v40  ;;  %3348 = vst [vmem:[#allocation9 + $0xc0] sm:$0xff] %v3340_v15  ;;  %v3828_v1 = vadd.f32 %v3820_v25, %v7744_v47  ;;  %v3325_v19 = vadd.f32 %v7742_v57, %v3285_v54 }
 0x7c9   :  { %v3644_v55 = vpop.permute.xlu1 %3643 }
 0x7ca   :  { %v3844_v27 = vadd.f32 %v3836_v21, %v3828_v1  ;;  %v3341_v42 = vadd.f32 %v3333_v41, %v3325_v19  ;;  %v3653_v53 = vmul.f32 %v3644_v55, %v7890_v33 }
 0x7cc   :  { %3852 = vst [vmem:[#allocation9 + $0xd8] sm:$0xff] %v3844_v27  ;;  %3349 = vst [vmem:[#allocation9 + $0xe0] sm:$0xff] %v3341_v42  ;;  %v3661_v37 = vadd.f32 %v3653_v53, %v7742_v57 }
 0x7cd   :  { %v3476_v45 = vpop.permute.xlu1 %3475 }
 0x7ce   :  { %v3677_v4 = vadd.f32 %v3669_v31, %v3661_v37  ;;  %v3485_v35 = vmul.f32 %v3476_v45, %v7895_v26 }
 0x7d0   :  { %3685 = vst [vmem:[#allocation9 + $0xf0] sm:$0xff] %v3677_v4  ;;  %v3493_v47 = vadd.f32 %v3485_v35, %v7742_v57 }
 0x7d1   :  { %v3812_v3 = vpop.permute.xlu1 %3811 }
 0x7d2   :  { %v3509_v10 = vadd.f32 %v3501_v9, %v3493_v47  ;;  %v3821_v52 = vmul.f32 %v3812_v3, %v7902_v20 }
 0x7d4   :  { %3517 = vst [vmem:[#allocation9 + $0xe8] sm:$0xff] %v3509_v10  ;;  %v3829_v33 = vadd.f32 %v3821_v52, %v7742_v57 }
 0x7d6   :  { %v3845_v49 = vadd.f32 %v3837_v0, %v3829_v33 }
 0x7d8   :  { %3853 = vst [vmem:[#allocation9 + $0xf8] sm:$0xff] %v3845_v49 }
 0x7d9   :  { %5282 = shalt.err (!%p5279_p0)
}
 0x7da   :  { %s5283_s29 = scalar_lea.hbm %s8013_s4, 4096 }
 0x7db   :  { %p5284_p1 = scmp.ne.s32.totalorder %s8013_s4, %s5283_s29  ;;  %p5287_p2 = scmp.lt.u32.totalorder %s5283_s29, %s8013_s4 }
 0x7dd   :  { %p5289_p3 = pnand %p5287_p2, %p5284_p1 }
 0x7df   :  { %5292 = shalt.err (!%p5289_p3)
}
 0x7e0   :  { %3865 = dma.vmem_to_hbm [thread:$0]  %s3860_s12, 4096, %s8013_s4, [#allocation5], %s5303_s1, %s5303_s1, %s5304_s13  }
 0x7e1   :  { %5297 = dma.done.wait [#allocation5], 4096  }
 0x7e2   :  { %5298 = vsyncadd [#allocation5], 4294963200 }
 0x7e3   :  { %3869 = vsyncpa [#allocation4], 1 }
 0x7e4   :  { %3870 = vsyncpa [#allocation7], 1 }
 0x7e5   :  { %3871 = vsyncpa [#allocation5], 1 }

</bundles_post_ra>
